<compile_context>
chip_gen: v5e
topology: v5e:2x2
jax: 0.10.0
libtpu: 0.0.40
codegen_flags: <defaults>
</compile_context>

<pallas_src>
import numpy as np

import jax
import jax.numpy as jnp
from jax.experimental import pallas as pl
from jax.experimental.pallas import tpu as pltpu


# ------------------------------- helpers ----------------------------------- #
def _round_up(x, m):
    return -(-x // m) * m


def _vmem_budget_bytes():
    """(block-sizing budget, vmem_limit_bytes) chosen per TPU generation."""
    kind = ""
    try:
        kind = jax.devices()[0].device_kind.lower()
    except Exception:
        pass
    if "v5" in kind or "v6" in kind:          # 128 MiB physical VMEM
        return 48 * 2**20, 64 * 2**20
    if "v7" in kind:                          # 64 MiB physical VMEM per core
        return 36 * 2**20, 48 * 2**20
    return 16 * 2**20, None                   # unknown / older: stay small


def _choose_image_block(n, c, hw, d, budget):
    """Largest per-step image count B whose working set fits the VMEM budget."""
    def vmem_bytes(b):
        return 4 * (2 * c * b * hw            # input block (double-buffered)
                    + 2 * b * b * hw          # block-diagonal pooling matrix
                    + 3 * d * b * hw          # f32 feature map + elementwise temps
                    + 2 * b * d + 2 * b * hw  # output blocks (double-buffered)
                    + d * c + d)              # weights
    n_up = max(8, _round_up(n, 8))
    b = 8
    for cand in (16, 32, 64, 128, 256):
        if cand <= n_up and vmem_bytes(cand) <= budget:
            b = cand
    # Keep >=2 grid steps when there is enough work so both v7x TensorCores get
    # a share; costs at most one extra ~0.35us step on single-TC chips.
    if n > 16 and b > 8 and -(-n // b) < 2:
        b //= 2
    return b


# ----------------------------- encoder kernel ------------------------------ #
def _encoder_kernel(x_ref, wt_ref, b_ref, pool_ref, oned_ref, h_ref, sal_ref):
    # x_ref   : (C, B*HW) f32  block of B images; channels on sublanes, the
    #                          flattened (image, pixel) index on lanes
    # wt_ref  : (D, C)    f32  1x1-conv weight, pre-transposed
    # b_ref   : (D, 1)    f32  conv bias as a column (broadcasts along lanes)
    # pool_ref: (B, B*HW) f32  block-diagonal spatial-mean matrix (1/HW entries)
    # oned_ref: (1, D)    f32  channel-mean row (1/D entries)
    # h_ref   : (B, D)    f32  pooled per-image features (lane-dense in D)
    # sal_ref : (1, B*HW) f32  per-pixel saliency (channel mean)
    feat = jnp.dot(wt_ref[...], x_ref[...],
                   preferred_element_type=jnp.float32)              # (D, B*HW)
    feat = jnp.maximum(feat + b_ref[...], 0.0)                      # bias + ReLU
    # Spatial mean on the MXU: contract the pixel axis of both operands.
    h_ref[...] = jax.lax.dot_general(
        pool_ref[...], feat, (((1,), (1,)), ((), ())),
        preferred_element_type=jnp.float32)                         # (B, D)
    # Channel mean on the MXU.
    sal_ref[...] = jnp.dot(oned_ref[...], feat,
                           preferred_element_type=jnp.float32)      # (1, B*HW)


def encoder_forward(x_nchw, w, b):
    """x: (N, C, H, W) f32 -> (h: (n_pad, D) f32, sal: (1, n_pad*HW) f32, n_pad)."""
    N, C, H, W = x_nchw.shape
    HW = H * W
    D = w.shape[1]
    budget, vmem_limit = _vmem_budget_bytes()
    B = _choose_image_block(N, C, HW, D, budget)
    if (B * HW) % 128 != 0:
        # Fall back to a single grid step so every block equals the full array
        # dims (keeps the (8, 128) BlockSpec rule satisfied for odd H*W).
        B = max(8, _round_up(N, 8))
    n_pad = _round_up(N, B)

    # (N, C, H, W) -> (C, n_pad*HW): one XLA transpose pass; inside the kernel
    # every step is then a plain rank-2, lane-dense MXU matmul.
    x = jnp.transpose(x_nchw.reshape(N, C, HW), (1, 0, 2))
    if n_pad != N:
        x = jnp.pad(x, ((0, 0), (0, n_pad - N), (0, 0)))
    x = x.reshape(C, n_pad * HW).astype(jnp.float32)

    wt = jnp.asarray(w, jnp.float32).T                              # (D, C)
    b_col = jnp.asarray(b, jnp.float32).reshape(D, 1)               # (D, 1)
    cols = np.arange(B * HW) // HW
    pool = jnp.asarray(
        (cols[None, :] == np.arange(B)[:, None]).astype(np.float32) / HW)
    oned = jnp.full((1, D), 1.0 / D, dtype=jnp.float32)

    h, sal = pl.pallas_call(
        _encoder_kernel,
        out_shape=(
            jax.ShapeDtypeStruct((n_pad, D), jnp.float32),
            jax.ShapeDtypeStruct((1, n_pad * HW), jnp.float32),
        ),
        grid_spec=pltpu.PrefetchScalarGridSpec(
            num_scalar_prefetch=0,
            grid=(n_pad // B,),
            in_specs=[
                pl.BlockSpec((C, B * HW), lambda i: (0, i)),
                pl.BlockSpec((D, C), lambda i: (0, 0)),
                pl.BlockSpec((D, 1), lambda i: (0, 0)),
                pl.BlockSpec((B, B * HW), lambda i: (0, 0)),
                pl.BlockSpec((1, D), lambda i: (0, 0)),
            ],
            out_specs=[
                pl.BlockSpec((B, D), lambda i: (i, 0)),
                pl.BlockSpec((1, B * HW), lambda i: (0, i)),
            ],
        ),
        compiler_params=pltpu.CompilerParams(
            dimension_semantics=("parallel",),
            vmem_limit_bytes=vmem_limit),
    )(x, wt, b_col, pool, oned)
    return h, sal, n_pad


# ---------------------------- aggregator kernel ---------------------------- #
def _aggregator_kernel(h_ref, ids_ref, vt_ref, ut_ref, wt_ref, wct_ref,
                       wcc_ref, bc_ref, ybag_ref, yins_ref, att_ref):
    # Gated-attention MIL pooling for ALL bags in one invocation.
    # h_ref  : (Np, D) f32    per-instance features, all bags concatenated
    # ids_ref: (1, Np) int32  bag id per instance, -1 for padding instances
    # vt_ref/ut_ref: (L, D); wt_ref: (1, L); wct_ref: (1, D); wcc_ref: (D, 1)
    # bc_ref : (1, 1)
    # ybag_ref: (nb, 1); yins_ref: (1, Np); att_ref: (nb, Np)
    dn_t = (((1,), (1,)), ((), ()))     # contract the D axis of both operands
    h = h_ref[...]
    a_v = jnp.tanh(jax.lax.dot_general(
        vt_ref[...], h, dn_t, preferred_element_type=jnp.float32))       # (L, Np)
    a_u = jax.nn.sigmoid(jax.lax.dot_general(
        ut_ref[...], h, dn_t, preferred_element_type=jnp.float32))       # (L, Np)
    gate = a_v * a_u
    logits = jnp.dot(wt_ref[...], gate,
                     preferred_element_type=jnp.float32)                 # (1, Np)

    nb, np_ = att_ref.shape
    member = ids_ref[...] == jax.lax.broadcasted_iota(jnp.int32, (nb, np_), 0)
    masked = jnp.where(member, logits, -1e30)                            # (nb, Np)
    m = jnp.max(masked, axis=1, keepdims=True)
    e = jnp.where(member, jnp.exp(masked - m), 0.0)
    denom = jnp.maximum(jnp.sum(e, axis=1, keepdims=True), 1e-30)        # empty-bag safe
    att = e / denom                                                      # (nb, Np)

    z = jnp.dot(att, h, preferred_element_type=jnp.float32)              # (nb, D)
    bag_logit = jnp.dot(z, wcc_ref[...],
                        preferred_element_type=jnp.float32) + bc_ref[...]        # (nb, 1)
    ins_logit = jax.lax.dot_general(
        wct_ref[...], h, dn_t, preferred_element_type=jnp.float32) + bc_ref[...]  # (1, Np)

    ybag_ref[...] = jax.nn.sigmoid(bag_logit)
    yins_ref[...] = jax.nn.sigmoid(ins_logit)
    att_ref[...] = att


def aggregator_forward(h_all, bag_ids, num_bags, vt, ut, wt, wct, wcc, bc):
    """h_all: (n_pad, D); bag_ids: (1, n_pad) int32 (-1 = padding)."""
    n_pad, D = h_all.shape
    L = vt.shape[0]
    ybag, yins, att = pl.pallas_call(
        _aggregator_kernel,
        out_shape=(
            jax.ShapeDtypeStruct((num_bags, 1), jnp.float32),
            jax.ShapeDtypeStruct((1, n_pad), jnp.float32),
            jax.ShapeDtypeStruct((num_bags, n_pad), jnp.float32),
        ),
        grid_spec=pltpu.PrefetchScalarGridSpec(
            num_scalar_prefetch=0,
            grid=(1,),
            in_specs=[
                pl.BlockSpec((n_pad, D), lambda i: (0, 0)),
                pl.BlockSpec((1, n_pad), lambda i: (0, 0)),
                pl.BlockSpec((L, D), lambda i: (0, 0)),
                pl.BlockSpec((L, D), lambda i: (0, 0)),
                pl.BlockSpec((1, L), lambda i: (0, 0)),
                pl.BlockSpec((1, D), lambda i: (0, 0)),
                pl.BlockSpec((D, 1), lambda i: (0, 0)),
                pl.BlockSpec((1, 1), lambda i: (0, 0)),
            ],
            out_specs=[
                pl.BlockSpec((num_bags, 1), lambda i: (0, 0)),
                pl.BlockSpec((1, n_pad), lambda i: (0, 0)),
                pl.BlockSpec((num_bags, n_pad), lambda i: (0, 0)),
            ],
        ),
        compiler_params=pltpu.CompilerParams(
            dimension_semantics=("arbitrary",)),
    )(h_all, bag_ids, vt, ut, wt, wct, wcc, bc)
    return ybag, yins, att


# ------------------------- EmbeddingBagModel forward ------------------------ #
def embedding_bag_model_forward(bags, params):
    """Mirror of EmbeddingBagModel.forward.

    bags: list of arrays, each (n_i, C, H, W)  (NCHW, like the PyTorch input)
    returns: (logits (num_bags,), saliency_maps, yhat_instances, attention_scores)
    """
    num_bags = len(bags)
    all_images = jnp.concatenate(bags, axis=0)                  # (N, C, H, W)
    N, C, H, W = all_images.shape

    h_all, sal_flat, n_pad = encoder_forward(
        all_images, params["enc_w"], params["enc_b"])

    split_sizes = [int(bag.shape[0]) for bag in bags]
    offsets = np.concatenate(([0], np.cumsum(split_sizes))).astype(int)
    bag_ids = np.full((1, n_pad), -1, np.int32)
    bag_ids[0, :N] = np.repeat(np.arange(num_bags, dtype=np.int32), split_sizes)

    ybag, yins, att = aggregator_forward(
        h_all, jnp.asarray(bag_ids), num_bags,
        params["att_V"].T, params["att_U"].T, params["att_w"].T,
        params["cls_w"].T, params["cls_w"], params["cls_b"])

    sal_all = sal_flat.reshape(n_pad, H, W)
    saliency_maps = [sal_all[offsets[i]:offsets[i + 1]] for i in range(num_bags)]
    yhat_instances = [yins[0, offsets[i]:offsets[i + 1]] for i in range(num_bags)]
    attention_scores = [att[i, offsets[i]:offsets[i + 1]] for i in range(num_bags)]
    logits = ybag[:, 0]
    # TODO(synk): the .cuda() placement in the reference is a device detail with
    # no Pallas equivalent; results live on the default TPU device.
    return logits, saliency_maps, yhat_instances, attention_scores


# ------------------------------ pure-JAX reference -------------------------- #
def _reference_forward(bags, params):
    hp = jax.lax.Precision.HIGHEST
    logits, sal_maps, yins_list, att_list = [], [], [], []
    for bag in bags:
        n, C, H, W = bag.shape
        x = bag.reshape(n, C, H * W)
        feat = jnp.einsum("ncp,cd->ndp", x, params["enc_w"], precision=hp)
        feat = jnp.maximum(feat + params["enc_b"].reshape(1, -1, 1), 0.0)
        h = feat.mean(axis=2)                                    # (n, D)
        sal = feat.mean(axis=1).reshape(n, H, W)
        a_v = jnp.tanh(jnp.dot(h, params["att_V"], precision=hp))
        a_u = jax.nn.sigmoid(jnp.dot(h, params["att_U"], precision=hp))
        score = jnp.dot(a_v * a_u, params["att_w"], precision=hp)[:, 0]
        att = jax.nn.softmax(score)
        z = jnp.dot(att, h, precision=hp)
        ybag = jax.nn.sigmoid(jnp.dot(z, params["cls_w"][:, 0], precision=hp)
                              + params["cls_b"][0, 0])
        yins = jax.nn.sigmoid(jnp.dot(h, params["cls_w"][:, 0], precision=hp)
                              + params["cls_b"][0, 0])
        logits.append(ybag)
        sal_maps.append(sal)
        yins_list.append(yins)
        att_list.append(att)
    return jnp.stack(logits), sal_maps, yins_list, att_list


# ----------------------------------- main ----------------------------------- #
if __name__ == "__main__":
    key = jax.random.PRNGKey(0)
    C, H, W = 8, 16, 16          # per-image channels / spatial
    D, L = 128, 64               # encoder feature dim / attention hidden dim
    bag_sizes = [3, 5]           # two bags of different sizes (list input)

    k_imgs, k_ew, k_eb, k_v, k_u, k_w, k_c, k_cb = jax.random.split(key, 8)
    params = dict(
        enc_w=0.1 * jax.random.normal(k_ew, (C, D), jnp.float32),
        enc_b=0.1 * jax.random.normal(k_eb, (1, D), jnp.float32),
        att_V=0.1 * jax.random.normal(k_v, (D, L), jnp.float32),
        att_U=0.1 * jax.random.normal(k_u, (D, L), jnp.float32),
        att_w=0.1 * jax.random.normal(k_w, (L, 1), jnp.float32),
        cls_w=0.1 * jax.random.normal(k_c, (D, 1), jnp.float32),
        cls_b=0.1 * jax.random.normal(k_cb, (1, 1), jnp.float32),
    )

    total = sum(bag_sizes)
    all_imgs = jax.random.normal(k_imgs, (total, C, H, W), jnp.float32)
    bags, off = [], 0
    for s in bag_sizes:
        bags.append(all_imgs[off:off + s])
        off += s

    logits, sal_maps, yhat_ins, att_scores = embedding_bag_model_forward(bags, params)
    jax.block_until_ready(logits)
    for t in sal_maps + yhat_ins + att_scores:
        jax.block_until_ready(t)

    # Shape / sanity checks.
    assert logits.shape == (len(bag_sizes),)
    assert sal_maps[0].shape == (bag_sizes[0], H, W)
    assert yhat_ins[1].shape == (bag_sizes[1],)
    assert att_scores[1].shape == (bag_sizes[1],)
    assert bool(jnp.all(jnp.isfinite(logits)))
    for i in range(len(bag_sizes)):
        assert bool(jnp.allclose(jnp.sum(att_scores[i]), 1.0, atol=1e-3))

    # Compare against a pure-JAX reference (loose tolerance: the MXU may use a
    # different f32 matmul decomposition than the HIGHEST-precision reference).
    ref_logits, ref_sal, ref_yins, ref_att = _reference_forward(bags, params)
    assert bool(jnp.allclose(logits, ref_logits, rtol=2e-2, atol=2e-2))
    for i in range(len(bag_sizes)):
        assert bool(jnp.allclose(sal_maps[i], ref_sal[i], rtol=2e-2, atol=2e-2))
        assert bool(jnp.allclose(yhat_ins[i], ref_yins[i], rtol=2e-2, atol=2e-2))
        assert bool(jnp.allclose(att_scores[i], ref_att[i], rtol=2e-2, atol=2e-2))

    print("KERNEL_OK")
</pallas_src>

<mosaic_0001>
module attributes {stable_mosaic.version = 11 : i64} {
  func.func @_encoder_kernel(%arg0: i32, %arg1: memref<8x2048xf32, #tpu.memory_space<vmem>>, %arg2: memref<128x8xf32, #tpu.memory_space<vmem>>, %arg3: memref<128x1xf32, #tpu.memory_space<vmem>>, %arg4: memref<8x2048xf32, #tpu.memory_space<vmem>>, %arg5: memref<1x128xf32, #tpu.memory_space<vmem>>, %arg6: memref<8x128xf32, #tpu.memory_space<vmem>>, %arg7: memref<1x2048xf32, #tpu.memory_space<vmem>>) attributes {dimension_semantics = [#tpu.dimension_semantics<parallel>], iteration_bounds = array<i64: 1>, scalar_prefetch = 0 : i64, scratch_operands = 0 : i64, tpu.core_type = #tpu.core_type<tc>, window_params = [{transform_indices = @transform_0, window_bounds = array<i64: 8, 2048>}, {pipeline_mode = #tpu.pipeline_mode<synchronous>, transform_indices = @transform_1, window_bounds = array<i64: 128, 8>}, {pipeline_mode = #tpu.pipeline_mode<synchronous>, transform_indices = @transform_2, window_bounds = array<i64: 128, 1>}, {pipeline_mode = #tpu.pipeline_mode<synchronous>, transform_indices = @transform_3, window_bounds = array<i64: 8, 2048>}, {pipeline_mode = #tpu.pipeline_mode<synchronous>, transform_indices = @transform_4, window_bounds = array<i64: 1, 128>}, {transform_indices = @transform_5, window_bounds = array<i64: 8, 128>}, {transform_indices = @transform_6, window_bounds = array<i64: 1, 2048>}]} {
    %c0 = arith.constant 0 : index
    %c0_0 = arith.constant 0 : index
    %0 = vector.load %arg2[%c0, %c0_0] : memref<128x8xf32, #tpu.memory_space<vmem>>, vector<128x8xf32>
    %c0_1 = arith.constant 0 : index
    %c0_2 = arith.constant 0 : index
    %1 = vector.load %arg1[%c0_1, %c0_2] : memref<8x2048xf32, #tpu.memory_space<vmem>>, vector<8x2048xf32>
    %cst = arith.constant dense<0.000000e+00> : vector<128x2048xf32>
    %2 = tpu.matmul %0, %1, %cst {dimension_numbers = #tpu.dot_dimension_numbers<[1], [0], [0], [1], [0, 0, 1, 1], [], []>} : vector<128x8xf32>, vector<8x2048xf32>, vector<128x2048xf32> -> vector<128x2048xf32>
    %c0_3 = arith.constant 0 : index
    %c0_4 = arith.constant 0 : index
    %3 = vector.load %arg3[%c0_3, %c0_4] : memref<128x1xf32, #tpu.memory_space<vmem>>, vector<128x1xf32>
    %4 = vector.broadcast %3 : vector<128x1xf32> to vector<128x2048xf32>
    %5 = arith.addf %2, %4 : vector<128x2048xf32>
    %cst_5 = arith.constant 0.000000e+00 : f32
    %6 = vector.broadcast %cst_5 : f32 to vector<128x2048xf32>
    %7 = arith.maximumf %5, %6 : vector<128x2048xf32>
    %c0_6 = arith.constant 0 : index
    %c0_7 = arith.constant 0 : index
    %8 = vector.load %arg4[%c0_6, %c0_7] : memref<8x2048xf32, #tpu.memory_space<vmem>>, vector<8x2048xf32>
    %cst_8 = arith.constant dense<0.000000e+00> : vector<8x128xf32>
    %9 = tpu.matmul %8, %7, %cst_8 {dimension_numbers = #tpu.dot_dimension_numbers<[1], [1], [0], [0], [0, 0, 1, 0], [], []>} : vector<8x2048xf32>, vector<128x2048xf32>, vector<8x128xf32> -> vector<8x128xf32>
    %c0_9 = arith.constant 0 : index
    %c0_10 = arith.constant 0 : index
    %10 = vector.load %arg6[%c0_9, %c0_10] : memref<8x128xf32, #tpu.memory_space<vmem>>, vector<8x128xf32>
    tpu.vector_store %arg6[%c0_9, %c0_10], %9 {strides = array<i32>} : memref<8x128xf32, #tpu.memory_space<vmem>>, vector<8x128xf32>,
    %c0_11 = arith.constant 0 : index
    %c0_12 = arith.constant 0 : index
    %11 = vector.load %arg5[%c0_11, %c0_12] : memref<1x128xf32, #tpu.memory_space<vmem>>, vector<1x128xf32>
    %cst_13 = arith.constant dense<0.000000e+00> : vector<1x2048xf32>
    %12 = tpu.matmul %11, %7, %cst_13 {dimension_numbers = #tpu.dot_dimension_numbers<[1], [0], [0], [1], [0, 0, 1, 1], [], []>} : vector<1x128xf32>, vector<128x2048xf32>, vector<1x2048xf32> -> vector<1x2048xf32>
    %c0_14 = arith.constant 0 : index
    %c0_15 = arith.constant 0 : index
    %13 = vector.load %arg7[%c0_14, %c0_15] : memref<1x2048xf32, #tpu.memory_space<vmem>>, vector<1x2048xf32>
    tpu.vector_store %arg7[%c0_14, %c0_15], %12 {strides = array<i32>} : memref<1x2048xf32, #tpu.memory_space<vmem>>, vector<1x2048xf32>,
    return
  }
  func.func @transform_0(%arg0: i32) -> (i32, i32) {
    %c0_i32 = arith.constant 0 : i32
    %c0_i32_0 = arith.constant 0 : i32
    return %c0_i32, %arg0 : i32, i32
  }
  func.func @transform_1(%arg0: i32) -> (i32, i32) {
    %c0_i32 = arith.constant 0 : i32
    %c0_i32_0 = arith.constant 0 : i32
    %c0_i32_1 = arith.constant 0 : i32
    return %c0_i32, %c0_i32_0 : i32, i32
  }
  func.func @transform_2(%arg0: i32) -> (i32, i32) {
    %c0_i32 = arith.constant 0 : i32
    %c0_i32_0 = arith.constant 0 : i32
    %c0_i32_1 = arith.constant 0 : i32
    return %c0_i32, %c0_i32_0 : i32, i32
  }
  func.func @transform_3(%arg0: i32) -> (i32, i32) {
    %c0_i32 = arith.constant 0 : i32
    %c0_i32_0 = arith.constant 0 : i32
    %c0_i32_1 = arith.constant 0 : i32
    return %c0_i32, %c0_i32_0 : i32, i32
  }
  func.func @transform_4(%arg0: i32) -> (i32, i32) {
    %c0_i32 = arith.constant 0 : i32
    %c0_i32_0 = arith.constant 0 : i32
    %c0_i32_1 = arith.constant 0 : i32
    return %c0_i32, %c0_i32_0 : i32, i32
  }
  func.func @transform_5(%arg0: i32) -> (i32, i32) {
    %c0_i32 = arith.constant 0 : i32
    %c0_i32_0 = arith.constant 0 : i32
    return %arg0, %c0_i32 : i32, i32
  }
  func.func @transform_6(%arg0: i32) -> (i32, i32) {
    %c0_i32 = arith.constant 0 : i32
    %c0_i32_0 = arith.constant 0 : i32
    return %c0_i32, %arg0 : i32, i32
  }
}

</mosaic_0001>

<bundles_post_ra>
// kernel: tpu_custom_call.1
= control target key start
LH: loop header
LB: loop body
LE: loop exit
PB: predicated region body
PF: predicated region fallthrough
CT: control target
= control target key end

     0   :  { %12 = vsyncpa [#allocation3], 0  ;;  %v2572_v3 = vmov 0   ;;  %vm152_vm0 = vcmask 64512   ;;  %s6057_s0 = inlined_call_operand.vmem [shape: f32[8,2048], index: 0, kind: input, shape index: {}]   ;;  %s6058_s1 = inlined_call_operand.vmem [shape: f32[128,8], index: 1, kind: input, shape index: {}]   ;;  %s6059_s2 = inlined_call_operand.vmem [shape: f32[128,1], index: 2, kind: input, shape index: {}]   ;;  %s6060_s3 = inlined_call_operand.vmem [shape: f32[8,2048], index: 3, kind: input, shape index: {}]   ;;  %s6061_s4 = inlined_call_operand.vmem [shape: f32[1,128], index: 4, kind: input, shape index: {}]   ;;  %s6062_s5 = inlined_call_operand.hbm [shape: f32[8,128], index: 5, kind: output, shape index: {0}]   ;;  %s6063_s6 = inlined_call_operand.hbm [shape: f32[1,2048], index: 6, kind: output, shape index: {1}]  }
   0x1   :  { %v40_v0 = vld [vmem:[%s6057_s0] sm:$0xff]  ;;  %v41_v1 = vld [vmem:[%s6057_s0 + $0x8] sm:$0xff]  ;;  %v42_v2 = vld [vmem:[%s6057_s0 + $0x10] sm:$0xff]  ;;  %2501 = vset.pattern.permute.xlu0 %v2572_v3  ;;  %2502 = vset.pattern.permute.xlu1 %v2572_v3 }
   0x2   :  { %216 = vmatpush.msra.mxu0 %v40_v0  ;;  %v43_v4 = vld [vmem:[%s6057_s0 + $0x18] sm:$0xff]  ;;  %v2628_v6 = vld [vmem:[%s6058_s1] sm:$0xff]  ;;  %281 = vmatpush.msra.mxu1 %v41_v1  ;;  %v69_v7 = vld [vmem:[%s6059_s2 + $0x68] sm:$0xff] }
   0x3   :  { %v71_v5 = vld [vmem:[%s6059_s2 + $0x78] sm:$0xff]  ;;  %346 = vmatpush.msra.mxu2 %v42_v2  ;;  %411 = vmatpush.msra.mxu3 %v43_v4 }
   0x4   :  { %149 = vperm.xlu0 %2501, %v71_v5   ;;  %2242 = vmatmul.msk.f32.vlgmr.msra.gmra.mxu0 %vm152_vm0, %v2628_v6  ;;  %v67_v8 = vld [vmem:[%s6059_s2 + $0x58] sm:$0xff] }
   0x5   :  { %2258 = vmatmul.msk.f32.vlgmr.msra.gmra.mxu1 %vm152_vm0, %v2628_v6  ;;  %2274 = vmatmul.msk.f32.vlgmr.msra.gmra.mxu2 %vm152_vm0, %v2628_v6 }
   0x6   :  { %2290 = vmatmul.msk.f32.vlgmr.msra.gmra.mxu3 %vm152_vm0, %v2628_v6  ;;  %139 = vperm.xlu1 %2502, %v69_v7  }
   0x7   :  { %2503 = vset.pattern.permute.xlu2 %v2572_v3 }
   0x8   :  { %13 = vsyncpa [#allocation5], 0  ;;  %129 = vperm.xlu2 %2503, %v67_v8   ;;  %v70_v9 = vld [vmem:[%s6059_s2 + $0x70] sm:$0xff]  ;;  %v2650_v10 = vld [vmem:[%s6058_s1 + $0x8] sm:$0xff]  ;;  %s2217_s30 = sshll.u32 %s6062_s5, 4  ;;  %s2573_s7 = smov [#allocation2]   ;;  %s2218_s30 = int_to_ptr.hbm [resolvable:$true] %s2217_s30 }
   0x9   :  { %v68_v11 = vld [vmem:[%s6059_s2 + $0x60] sm:$0xff]  ;;  %v66_v12 = vld [vmem:[%s6059_s2 + $0x50] sm:$0xff]  ;;  %v65_v13 = vld [vmem:[%s6059_s2 + $0x48] sm:$0xff]  ;;  %s2215_s8 = sshll.u32 %s2573_s7, 4  ;;  %vm2187_vm1 = vcmask 1042434   ;;  %vm2185_vm2 = vcmask 1040384   ;;  %s2216_s8 = int_to_ptr.vmem [resolvable:$true] %s2215_s8 }
   0xa   :  { %v2672_v14 = vld [vmem:[%s6058_s1 + $0x10] sm:$0xff]  ;;  %v64_v15 = vld [vmem:[%s6059_s2 + $0x40] sm:$0xff]  ;;  %v63_v16 = vld [vmem:[%s6059_s2 + $0x38] sm:$0xff]  ;;  %vm2193_vm3 = vcmask 1046534   ;;  %vm2191_vm4 = vcmask 1044484   ;;  %vm2195_vm5 = vcmask 1045508  }
   0xb   :  { %v62_v17 = vld [vmem:[%s6059_s2 + $0x30] sm:$0xff]  ;;  %v2694_v18 = vld [vmem:[%s6058_s1 + $0x18] sm:$0xff]  ;;  %v61_v19 = vld [vmem:[%s6059_s2 + $0x28] sm:$0xff]  ;;  %vm2189_vm6 = vcmask 1041408   ;;  %vm2197_vm7 = vcmask 1043456   ;;  %s2574_s5 = smov [#allocation4]  }
   0xc   :  { %144 = vperm.xlu0 %2501, %v70_v9   ;;  %2243 = vmatmul.msk.f32.gmra.mxu0 %vm152_vm0, %v2650_v10  ;;  %v60_v20 = vld [vmem:[%s6059_s2 + $0x20] sm:$0xff]  ;;  %v46_v21 = vld [vmem:[%s6057_s0 + $0x30] sm:$0xff]  ;;  %v47_v22 = vld [vmem:[%s6057_s0 + $0x38] sm:$0xff]  ;;  %s2226_s9 = sshll.u32 %s2574_s5, 4  ;;  %s2228_s11 = sshll.u32 %s6063_s6, 4  ;;  %s2227_s9 = int_to_ptr.vmem [resolvable:$true] %s2226_s9  ;;  %s2229_s11 = int_to_ptr.hbm [resolvable:$true] %s2228_s11 }
   0xd   :  { %2259 = vmatmul.msk.f32.gmra.mxu1 %vm152_vm0, %v2650_v10  ;;  %2275 = vmatmul.msk.f32.gmra.mxu2 %vm152_vm0, %v2650_v10  ;;  %v59_v23 = vld [vmem:[%s6059_s2 + $0x18] sm:$0xff]  ;;  %v2722_v24 = vld [vmem:[%s6058_s1 + $0x20] sm:$0xff]  ;;  %v58_v25 = vld [vmem:[%s6059_s2 + $0x10] sm:$0xff] }
   0xe   :  { %2291 = vmatmul.msk.f32.gmra.mxu3 %vm152_vm0, %v2650_v10  ;;  %134 = vperm.xlu1 %2502, %v68_v11   ;;  %v57_v26 = vld [vmem:[%s6059_s2 + $0x8] sm:$0xff]  ;;  %v44_v27 = vld [vmem:[%s6057_s0 + $0x20] sm:$0xff]  ;;  %v2763_v31 = vld [vmem:[%s6058_s1 + $0x30] sm:$0xff] }
   0xf   :  { %606 = vmatpush.msrb.mxu2 %v46_v21  ;;  %671 = vmatpush.msrb.mxu3 %v47_v22  ;;  %v45_v28 = vld [vmem:[%s6057_s0 + $0x28] sm:$0xff]  ;;  %v56_v29 = vld [vmem:[%s6059_s2] sm:$0xff]  ;;  %6517 = vst [vmem:[#allocation8_spill] sm:$0xff] %v2763_v31  ;;  %v2776_v32 = vld [vmem:[%s6058_s1 + $0x38] sm:$0xff] }
  0x10   :  { %124 = vperm.xlu2 %2503, %v66_v12   ;;  %476 = vmatpush.msrb.mxu0 %v44_v27  ;;  %v2750_v30 = vld [vmem:[%s6058_s1 + $0x28] sm:$0xff]  ;;  %6518 = vst [vmem:[#allocation9_spill] sm:$0xff] %v2776_v32  ;;  %v2789_v33 = vld [vmem:[%s6058_s1 + $0x40] sm:$0xff]  ;;  %v2815_v35 = vld [vmem:[%s6058_s1 + $0x50] sm:$0xff] }
  0x11   :  { %541 = vmatpush.msrb.mxu1 %v45_v28  ;;  %6519 = vst [vmem:[#allocation10_spill] sm:$0xff] %v2789_v33  ;;  %v2802_v34 = vld [vmem:[%s6058_s1 + $0x48] sm:$0xff]  ;;  %v2828_v36 = vld [vmem:[%s6058_s1 + $0x58] sm:$0xff]  ;;  %v2841_v37 = vld [vmem:[%s6058_s1 + $0x60] sm:$0xff] }
  0x12   :  { %6520 = vst [vmem:[#allocation11_spill] sm:$0xff] %v2802_v34  ;;  %v2854_v38 = vld [vmem:[%s6058_s1 + $0x68] sm:$0xff]  ;;  %v2867_v39 = vld [vmem:[%s6058_s1 + $0x70] sm:$0xff]  ;;  %v2880_v40 = vld [vmem:[%s6058_s1 + $0x78] sm:$0xff] }
  0x13   :  { %6521 = vst [vmem:[#allocation12_spill] sm:$0xff] %v2815_v35  ;;  %v50_v55 = vld [vmem:[%s6057_s0 + $0x50] sm:$0xff]  ;;  %v51_v56 = vld [vmem:[%s6057_s0 + $0x58] sm:$0xff]  ;;  %v48_v1 = vld [vmem:[%s6057_s0 + $0x40] sm:$0xff] }
  0x14   :  { %119 = vperm.xlu0 %2501, %v65_v13   ;;  %2244 = vmatmul.msk.f32.gmra.mxu0 %vm152_vm0, %v2672_v14  ;;  %6522 = vst [vmem:[#allocation13_spill] sm:$0xff] %v2828_v36  ;;  %v49_v2 = vld [vmem:[%s6057_s0 + $0x48] sm:$0xff] }
  0x15   :  { %2260 = vmatmul.msk.f32.gmra.mxu1 %vm152_vm0, %v2672_v14  ;;  %2276 = vmatmul.msk.f32.gmra.mxu2 %vm152_vm0, %v2672_v14  ;;  %6523 = vst [vmem:[#allocation14_spill] sm:$0xff] %v2841_v37 }
  0x16   :  { %2292 = vmatmul.msk.f32.gmra.mxu3 %vm152_vm0, %v2672_v14  ;;  %114 = vperm.xlu1 %2502, %v64_v15   ;;  %6524 = vst [vmem:[#allocation15_spill] sm:$0xff] %v2854_v38 }
  0x17   :  { %6525 = vst [vmem:[#allocation16_spill] sm:$0xff] %v2867_v39  ;;  %866 = vmatpush.msra.mxu2 %v50_v55  ;;  %931 = vmatpush.msra.mxu3 %v51_v56 }
  0x18   :  { %109 = vperm.xlu2 %2503, %v63_v16   ;;  %6526 = vst [vmem:[#allocation17_spill] sm:$0xff] %v2880_v40  ;;  %736 = vmatpush.msra.mxu0 %v48_v1 }
  0x19   :  { %801 = vmatpush.msra.mxu1 %v49_v2 }
  0x1c   :  { %104 = vperm.xlu0 %2501, %v62_v17   ;;  %2245 = vmatmul.msk.f32.gmra.mxu0 %vm152_vm0, %v2694_v18 }
  0x1d   :  { %2261 = vmatmul.msk.f32.gmra.mxu1 %vm152_vm0, %v2694_v18  ;;  %2277 = vmatmul.msk.f32.gmra.mxu2 %vm152_vm0, %v2694_v18 }
  0x1e   :  { %2293 = vmatmul.msk.f32.gmra.mxu3 %vm152_vm0, %v2694_v18  ;;  %99 = vperm.xlu1 %2502, %v61_v19  }
  0x20   :  { %94 = vperm.xlu2 %2503, %v60_v20  }
  0x24   :  { %89 = vperm.xlu0 %2501, %v59_v23   ;;  %2246 = vmatmul.msk.f32.gmra.mxu0 %vm152_vm0, %v2722_v24 }
  0x25   :  { %2262 = vmatmul.msk.f32.gmra.mxu1 %vm152_vm0, %v2722_v24  ;;  %2278 = vmatmul.msk.f32.gmra.mxu2 %vm152_vm0, %v2722_v24 }
  0x26   :  { %2294 = vmatmul.msk.f32.gmra.mxu3 %vm152_vm0, %v2722_v24  ;;  %84 = vperm.xlu1 %2502, %v58_v25  }
  0x28   :  { %79 = vperm.xlu2 %2503, %v57_v26  }
  0x2c   :  { %74 = vperm.xlu0 %2501, %v56_v29   ;;  %2247 = vmatmul.msk.f32.gmra.mxu0 %vm152_vm0, %v2750_v30 }
  0x2d   :  { %2263 = vmatmul.msk.f32.gmra.mxu1 %vm152_vm0, %v2750_v30  ;;  %2279 = vmatmul.msk.f32.gmra.mxu2 %vm152_vm0, %v2750_v30 }
  0x2e   :  { %2295 = vmatmul.msk.f32.gmra.mxu3 %vm152_vm0, %v2750_v30 }
  0x34   :  { %2248 = vmatmul.msk.f32.gmra.mxu0 %vm152_vm0, %v2763_v31 }
  0x35   :  { %2264 = vmatmul.msk.f32.gmra.mxu1 %vm152_vm0, %v2763_v31  ;;  %2280 = vmatmul.msk.f32.gmra.mxu2 %vm152_vm0, %v2763_v31 }
  0x36   :  { %2296 = vmatmul.msk.f32.gmra.mxu3 %vm152_vm0, %v2763_v31 }
  0x3c   :  { %2249 = vmatmul.msk.f32.gmra.mxu0 %vm152_vm0, %v2776_v32 }
  0x3d   :  { %2265 = vmatmul.msk.f32.gmra.mxu1 %vm152_vm0, %v2776_v32  ;;  %2281 = vmatmul.msk.f32.gmra.mxu2 %vm152_vm0, %v2776_v32 }
  0x3e   :  { %2297 = vmatmul.msk.f32.gmra.mxu3 %vm152_vm0, %v2776_v32 }
  0x44   :  { %2250 = vmatmul.msk.f32.gmra.mxu0 %vm152_vm0, %v2789_v33 }
  0x45   :  { %2266 = vmatmul.msk.f32.gmra.mxu1 %vm152_vm0, %v2789_v33  ;;  %2282 = vmatmul.msk.f32.gmra.mxu2 %vm152_vm0, %v2789_v33 }
  0x46   :  { %2298 = vmatmul.msk.f32.gmra.mxu3 %vm152_vm0, %v2789_v33 }
  0x4c   :  { %2251 = vmatmul.msk.f32.gmra.mxu0 %vm152_vm0, %v2802_v34 }
  0x4d   :  { %2267 = vmatmul.msk.f32.gmra.mxu1 %vm152_vm0, %v2802_v34  ;;  %2283 = vmatmul.msk.f32.gmra.mxu2 %vm152_vm0, %v2802_v34 }
  0x4e   :  { %2299 = vmatmul.msk.f32.gmra.mxu3 %vm152_vm0, %v2802_v34 }
  0x54   :  { %2252 = vmatmul.msk.f32.gmra.mxu0 %vm152_vm0, %v2815_v35 }
  0x55   :  { %2268 = vmatmul.msk.f32.gmra.mxu1 %vm152_vm0, %v2815_v35  ;;  %2284 = vmatmul.msk.f32.gmra.mxu2 %vm152_vm0, %v2815_v35 }
  0x56   :  { %2300 = vmatmul.msk.f32.gmra.mxu3 %vm152_vm0, %v2815_v35 }
  0x5c   :  { %2253 = vmatmul.msk.f32.gmra.mxu0 %vm152_vm0, %v2828_v36 }
  0x5d   :  { %2269 = vmatmul.msk.f32.gmra.mxu1 %vm152_vm0, %v2828_v36  ;;  %2285 = vmatmul.msk.f32.gmra.mxu2 %vm152_vm0, %v2828_v36 }
  0x5e   :  { %2301 = vmatmul.msk.f32.gmra.mxu3 %vm152_vm0, %v2828_v36 }
  0x64   :  { %2254 = vmatmul.msk.f32.gmra.mxu0 %vm152_vm0, %v2841_v37 }
  0x65   :  { %2270 = vmatmul.msk.f32.gmra.mxu1 %vm152_vm0, %v2841_v37  ;;  %2286 = vmatmul.msk.f32.gmra.mxu2 %vm152_vm0, %v2841_v37 }
  0x66   :  { %2302 = vmatmul.msk.f32.gmra.mxu3 %vm152_vm0, %v2841_v37 }
  0x6c   :  { %2255 = vmatmul.msk.f32.gmra.mxu0 %vm152_vm0, %v2854_v38 }
  0x6d   :  { %2271 = vmatmul.msk.f32.gmra.mxu1 %vm152_vm0, %v2854_v38  ;;  %2287 = vmatmul.msk.f32.gmra.mxu2 %vm152_vm0, %v2854_v38 }
  0x6e   :  { %2303 = vmatmul.msk.f32.gmra.mxu3 %vm152_vm0, %v2854_v38 }
  0x74   :  { %2256 = vmatmul.msk.f32.gmra.mxu0 %vm152_vm0, %v2867_v39 }
  0x75   :  { %2272 = vmatmul.msk.f32.gmra.mxu1 %vm152_vm0, %v2867_v39  ;;  %2288 = vmatmul.msk.f32.gmra.mxu2 %vm152_vm0, %v2867_v39 }
  0x76   :  { %2304 = vmatmul.msk.f32.gmra.mxu3 %vm152_vm0, %v2867_v39 }
  0x7c   :  { %2257 = vmatmul.msk.f32.gmra.mxu0 %vm152_vm0, %v2880_v40 }
  0x7d   :  { %2273 = vmatmul.msk.f32.gmra.mxu1 %vm152_vm0, %v2880_v40  ;;  %2289 = vmatmul.msk.f32.gmra.mxu2 %vm152_vm0, %v2880_v40 }
  0x7e   :  { %2305 = vmatmul.msk.f32.gmra.mxu3 %vm152_vm0, %v2880_v40 }
  0x81   :  { %v2890_v41 = vpop.f32.mrf.mxu0 }
  0x82   :  { %6527 = vst [vmem:[#allocation18_spill] sm:$0xff] %v2890_v41  ;;  %v2892_v42 = vpop.f32.mrf.mxu1 }
  0x83   :  { %6528 = vst [vmem:[#allocation19_spill] sm:$0xff] %v2892_v42 }
  0x84   :  { %2306 = vmatmul.msk.f32.vlgmr.msrb.gmra.mxu0 %vm152_vm0, %v2628_v6 }
  0x85   :  { %2322 = vmatmul.msk.f32.vlgmr.msrb.gmra.mxu1 %vm152_vm0, %v2628_v6  ;;  %2338 = vmatmul.msk.f32.vlgmr.msrb.gmra.mxu2 %vm152_vm0, %v2628_v6 }
  0x86   :  { %2354 = vmatmul.msk.f32.vlgmr.msrb.gmra.mxu3 %vm152_vm0, %v2628_v6 }
  0x88   :  { %v2902_v43 = vpop.f32.mrf.mxu2 }
  0x89   :  { %6529 = vst [vmem:[#allocation20_spill] sm:$0xff] %v2902_v43  ;;  %v2904_v44 = vpop.f32.mrf.mxu3  ;;  %v2906_v45 = vpop.f32.mrf.mxu0  ;;  %v55_v43 = vld [vmem:[%s6057_s0 + $0x78] sm:$0xff] }
  0x8a   :  { %6530 = vst [vmem:[#allocation21_spill] sm:$0xff] %v2904_v44  ;;  %v2908_v46 = vpop.f32.mrf.mxu1  ;;  %v53_v44 = vld [vmem:[%s6057_s0 + $0x68] sm:$0xff]  ;;  %1191 = vmatpush.msrb.mxu3 %v55_v43 }
  0x8b   :  { %6531 = vst [vmem:[#allocation22_spill] sm:$0xff] %v2906_v45  ;;  %1061 = vmatpush.msrb.mxu1 %v53_v44 }
  0x8c   :  { %6532 = vst [vmem:[#allocation23_spill] sm:$0xff] %v2908_v46  ;;  %2307 = vmatmul.msk.f32.gmra.mxu0 %vm152_vm0, %v2650_v10 }
  0x8d   :  { %2323 = vmatmul.msk.f32.gmra.mxu1 %vm152_vm0, %v2650_v10  ;;  %2339 = vmatmul.msk.f32.gmra.mxu2 %vm152_vm0, %v2650_v10 }
  0x8e   :  { %2355 = vmatmul.msk.f32.gmra.mxu3 %vm152_vm0, %v2650_v10 }
  0x90   :  { %v2918_v47 = vpop.f32.mrf.mxu2 }
  0x91   :  { %6533 = vst [vmem:[#allocation24_spill] sm:$0xff] %v2918_v47  ;;  %v2920_v48 = vpop.f32.mrf.mxu3  ;;  %v2922_v49 = vpop.f32.mrf.mxu0 }
  0x92   :  { %6534 = vst [vmem:[#allocation25_spill] sm:$0xff] %v2920_v48  ;;  %v2924_v50 = vpop.f32.mrf.mxu1 }
  0x93   :  { %6535 = vst [vmem:[#allocation26_spill] sm:$0xff] %v2922_v49 }
  0x94   :  { %6536 = vst [vmem:[#allocation27_spill] sm:$0xff] %v2924_v50  ;;  %2308 = vmatmul.msk.f32.gmra.mxu0 %vm152_vm0, %v2672_v14  ;;  %v3154_v50 = vpop.permute.xlu1 %139 }
  0x95   :  { %2324 = vmatmul.msk.f32.gmra.mxu1 %vm152_vm0, %v2672_v14  ;;  %2340 = vmatmul.msk.f32.gmra.mxu2 %vm152_vm0, %v2672_v14 }
  0x96   :  { %2356 = vmatmul.msk.f32.gmra.mxu3 %vm152_vm0, %v2672_v14 }
  0x98   :  { %v2934_v51 = vpop.f32.mrf.mxu2 }
  0x99   :  { %6537 = vst [vmem:[#allocation28_spill] sm:$0xff] %v2934_v51  ;;  %v2936_v52 = vpop.f32.mrf.mxu3  ;;  %v2938_v53 = vpop.f32.mrf.mxu0 }
  0x9a   :  { %6538 = vst [vmem:[#allocation29_spill] sm:$0xff] %v2936_v52  ;;  %v2940_v54 = vpop.f32.mrf.mxu1 }
  0x9b   :  { %6539 = vst [vmem:[#allocation30_spill] sm:$0xff] %v2938_v53 }
  0x9c   :  { %6540 = vst [vmem:[#allocation31_spill] sm:$0xff] %v2940_v54  ;;  %2309 = vmatmul.msk.f32.gmra.mxu0 %vm152_vm0, %v2694_v18 }
  0x9d   :  { %2325 = vmatmul.msk.f32.gmra.mxu1 %vm152_vm0, %v2694_v18  ;;  %2341 = vmatmul.msk.f32.gmra.mxu2 %vm152_vm0, %v2694_v18 }
  0x9e   :  { %2357 = vmatmul.msk.f32.gmra.mxu3 %vm152_vm0, %v2694_v18 }
  0xa0   :  { %v2956_v57 = vpop.f32.mrf.mxu2 }
  0xa1   :  { %6541 = vst [vmem:[#allocation32_spill] sm:$0xff] %v2956_v57  ;;  %v2958_v58 = vpop.f32.mrf.mxu3  ;;  %v2960_v59 = vpop.f32.mrf.mxu0 }
  0xa2   :  { %6542 = vst [vmem:[#allocation33_spill] sm:$0xff] %v2958_v58  ;;  %v2962_v60 = vpop.f32.mrf.mxu1 }
  0xa4   :  { %2310 = vmatmul.msk.f32.gmra.mxu0 %vm152_vm0, %v2722_v24 }
  0xa5   :  { %2326 = vmatmul.msk.f32.gmra.mxu1 %vm152_vm0, %v2722_v24  ;;  %2342 = vmatmul.msk.f32.gmra.mxu2 %vm152_vm0, %v2722_v24 }
  0xa6   :  { %2358 = vmatmul.msk.f32.gmra.mxu3 %vm152_vm0, %v2722_v24 }
  0xa8   :  { %v2972_v61 = vpop.f32.mrf.mxu2 }
  0xa9   :  { %v2974_v62 = vpop.f32.mrf.mxu3  ;;  %v2976_v63 = vpop.f32.mrf.mxu0 }
  0xaa   :  { %6543 = vst [vmem:[#allocation34_spill] sm:$0xff] %v2974_v62  ;;  %v2978_v0 = vpop.f32.mrf.mxu1 }
  0xac   :  { %2311 = vmatmul.msk.f32.gmra.mxu0 %vm152_vm0, %v2750_v30 }
  0xad   :  { %2327 = vmatmul.msk.f32.gmra.mxu1 %vm152_vm0, %v2750_v30  ;;  %2343 = vmatmul.msk.f32.gmra.mxu2 %vm152_vm0, %v2750_v30 }
  0xae   :  { %2359 = vmatmul.msk.f32.gmra.mxu3 %vm152_vm0, %v2750_v30 }
  0xb0   :  { %v2994_v3 = vpop.f32.mrf.mxu2 }
  0xb1   :  { %v2996_v4 = vpop.f32.mrf.mxu3  ;;  %v2998_v5 = vpop.f32.mrf.mxu0 }
  0xb2   :  { %v3000_v7 = vpop.f32.mrf.mxu1 }
  0xb4   :  { %2312 = vmatmul.msk.f32.gmra.mxu0 %vm152_vm0, %v2763_v31 }
  0xb5   :  { %2328 = vmatmul.msk.f32.gmra.mxu1 %vm152_vm0, %v2763_v31  ;;  %2344 = vmatmul.msk.f32.gmra.mxu2 %vm152_vm0, %v2763_v31 }
  0xb6   :  { %2360 = vmatmul.msk.f32.gmra.mxu3 %vm152_vm0, %v2763_v31 }
  0xb8   :  { %v3010_v8 = vpop.f32.mrf.mxu2 }
  0xb9   :  { %v3012_v9 = vpop.f32.mrf.mxu3  ;;  %v3014_v11 = vpop.f32.mrf.mxu0 }
  0xba   :  { %v3016_v12 = vpop.f32.mrf.mxu1 }
  0xbc   :  { %2313 = vmatmul.msk.f32.gmra.mxu0 %vm152_vm0, %v2776_v32 }
  0xbd   :  { %2329 = vmatmul.msk.f32.gmra.mxu1 %vm152_vm0, %v2776_v32  ;;  %2345 = vmatmul.msk.f32.gmra.mxu2 %vm152_vm0, %v2776_v32 }
  0xbe   :  { %2361 = vmatmul.msk.f32.gmra.mxu3 %vm152_vm0, %v2776_v32 }
  0xc0   :  { %v3026_v13 = vpop.f32.mrf.mxu2 }
  0xc1   :  { %v3028_v15 = vpop.f32.mrf.mxu3  ;;  %v3030_v16 = vpop.f32.mrf.mxu0 }
  0xc2   :  { %v3032_v17 = vpop.f32.mrf.mxu1 }
  0xc4   :  { %2314 = vmatmul.msk.f32.gmra.mxu0 %vm152_vm0, %v2789_v33 }
  0xc5   :  { %2330 = vmatmul.msk.f32.gmra.mxu1 %vm152_vm0, %v2789_v33  ;;  %2346 = vmatmul.msk.f32.gmra.mxu2 %vm152_vm0, %v2789_v33 }
  0xc6   :  { %2362 = vmatmul.msk.f32.gmra.mxu3 %vm152_vm0, %v2789_v33  ;;  %v52_v33 = vld [vmem:[%s6057_s0 + $0x60] sm:$0xff] }
  0xc7   :  { %996 = vmatpush.msrb.mxu0 %v52_v33 }
  0xc8   :  { %v3042_v19 = vpop.f32.mrf.mxu2 }
  0xc9   :  { %v3044_v20 = vpop.f32.mrf.mxu3  ;;  %v3046_v21 = vpop.f32.mrf.mxu0 }
  0xca   :  { %v3048_v22 = vpop.f32.mrf.mxu1 }
  0xcc   :  { %2315 = vmatmul.msk.f32.gmra.mxu0 %vm152_vm0, %v2802_v34 }
  0xcd   :  { %2331 = vmatmul.msk.f32.gmra.mxu1 %vm152_vm0, %v2802_v34  ;;  %2347 = vmatmul.msk.f32.gmra.mxu2 %vm152_vm0, %v2802_v34 }
  0xce   :  { %2363 = vmatmul.msk.f32.gmra.mxu3 %vm152_vm0, %v2802_v34 }
  0xd0   :  { %v3058_v23 = vpop.f32.mrf.mxu2 }
  0xd1   :  { %v3060_v25 = vpop.f32.mrf.mxu3  ;;  %v3062_v26 = vpop.f32.mrf.mxu0 }
  0xd2   :  { %v3064_v27 = vpop.f32.mrf.mxu1 }
  0xd4   :  { %2316 = vmatmul.msk.f32.gmra.mxu0 %vm152_vm0, %v2815_v35 }
  0xd5   :  { %2332 = vmatmul.msk.f32.gmra.mxu1 %vm152_vm0, %v2815_v35  ;;  %2348 = vmatmul.msk.f32.gmra.mxu2 %vm152_vm0, %v2815_v35 }
  0xd6   :  { %2364 = vmatmul.msk.f32.gmra.mxu3 %vm152_vm0, %v2815_v35 }
  0xd8   :  { %v3074_v28 = vpop.f32.mrf.mxu2 }
  0xd9   :  { %v3076_v29 = vpop.f32.mrf.mxu3  ;;  %v3078_v55 = vpop.f32.mrf.mxu0 }
  0xda   :  { %v3080_v56 = vpop.f32.mrf.mxu1 }
  0xdc   :  { %2317 = vmatmul.msk.f32.gmra.mxu0 %vm152_vm0, %v2828_v36 }
  0xdd   :  { %2333 = vmatmul.msk.f32.gmra.mxu1 %vm152_vm0, %v2828_v36  ;;  %2349 = vmatmul.msk.f32.gmra.mxu2 %vm152_vm0, %v2828_v36 }
  0xde   :  { %2365 = vmatmul.msk.f32.gmra.mxu3 %vm152_vm0, %v2828_v36  ;;  %v54_v36 = vld [vmem:[%s6057_s0 + $0x70] sm:$0xff] }
  0xdf   :  { %1126 = vmatpush.msrb.mxu2 %v54_v36 }
  0xe0   :  { %v3090_v1 = vpop.f32.mrf.mxu2 }
  0xe1   :  { %v3092_v2 = vpop.f32.mrf.mxu3  ;;  %v3094_v35 = vpop.f32.mrf.mxu0 }
  0xe2   :  { %v3096_v34 = vpop.f32.mrf.mxu1 }
  0xe4   :  { %2318 = vmatmul.msk.f32.gmra.mxu0 %vm152_vm0, %v2841_v37 }
  0xe5   :  { %2334 = vmatmul.msk.f32.gmra.mxu1 %vm152_vm0, %v2841_v37  ;;  %2350 = vmatmul.msk.f32.gmra.mxu2 %vm152_vm0, %v2841_v37 }
  0xe6   :  { %2366 = vmatmul.msk.f32.gmra.mxu3 %vm152_vm0, %v2841_v37  ;;  %v3138_v37 = vpop.permute.xlu0 %149 }
  0xe7   :  { %6544 = vst [vmem:[#allocation35_spill] sm:$0xff] %v3138_v37 }
  0xe8   :  { %v3118_v42 = vpop.f32.mrf.mxu2 }
  0xe9   :  { %v3120_v41 = vpop.f32.mrf.mxu3  ;;  %v257_v32 = vpop.f32.mrf.mxu0 }
  0xea   :  { %v322_v48 = vpop.f32.mrf.mxu1 }
  0xec   :  { %2319 = vmatmul.msk.f32.gmra.mxu0 %vm152_vm0, %v2854_v38 }
  0xed   :  { %2335 = vmatmul.msk.f32.gmra.mxu1 %vm152_vm0, %v2854_v38  ;;  %2351 = vmatmul.msk.f32.gmra.mxu2 %vm152_vm0, %v2854_v38 }
  0xee   :  { %2367 = vmatmul.msk.f32.gmra.mxu3 %vm152_vm0, %v2854_v38 }
  0xf0   :  { %v387_v33 = vpop.f32.mrf.mxu2 }
  0xf1   :  { %v452_v36 = vpop.f32.mrf.mxu3  ;;  %v260_v44 = vpop.f32.mrf.mxu0 }
  0xf2   :  { %v325_v43 = vpop.f32.mrf.mxu1 }
  0xf4   :  { %2320 = vmatmul.msk.f32.gmra.mxu0 %vm152_vm0, %v2867_v39 }
  0xf5   :  { %2336 = vmatmul.msk.f32.gmra.mxu1 %vm152_vm0, %v2867_v39  ;;  %2352 = vmatmul.msk.f32.gmra.mxu2 %vm152_vm0, %v2867_v39 }
  0xf6   :  { %2368 = vmatmul.msk.f32.gmra.mxu3 %vm152_vm0, %v2867_v39 }
  0xf8   :  { %v390_v46 = vpop.f32.mrf.mxu2 }
  0xf9   :  { %v455_v38 = vpop.f32.mrf.mxu3  ;;  %v263_v47 = vpop.f32.mrf.mxu0 }
  0xfa   :  { %v328_v45 = vpop.f32.mrf.mxu1  ;;  %v3147_v52 = vadd.f32 %v263_v47, %v3138_v37 }
  0xfb   :  { %v3152_v39 = vadd.f32 %v328_v45, %v3138_v37 }
  0xfc   :  { %2321 = vmatmul.msk.f32.gmra.mxu0 %vm152_vm0, %v2880_v40  ;;  %6545 = vst [vmem:[#allocation36_spill] sm:$0xff] %v3147_v52 }
  0xfd   :  { %2337 = vmatmul.msk.f32.gmra.mxu1 %vm152_vm0, %v2880_v40  ;;  %2353 = vmatmul.msk.f32.gmra.mxu2 %vm152_vm0, %v2880_v40  ;;  %6546 = vst [vmem:[#allocation37_spill] sm:$0xff] %v3152_v39  ;;  %v6084_v45 = vmax.f32 %v3152_v39, 0.0 }
  0xfe   :  { %2369 = vmatmul.msk.f32.gmra.mxu3 %vm152_vm0, %v2880_v40  ;;  %v3167_v40 = vpop.permute.xlu0 %144 }
  0xff   :  { %v3172_v62 = vadd.f32 %v260_v44, %v3167_v40  ;;  %v3178_v57 = vadd.f32 %v325_v43, %v3167_v40  ;;  %v3188_v44 = vadd.f32 %v455_v38, %v3167_v40  ;;  %v3201_v43 = vadd.f32 %v257_v32, %v3154_v50 }
 0x100   :  { %v393_v51 = vpop.f32.mrf.mxu2  ;;  %v3221_v38 = vadd.f32 %v452_v36, %v3154_v50 }
 0x101   :  { %v3157_v49 = vadd.f32 %v393_v51, %v3138_v37  ;;  %v458_v31 = vpop.f32.mrf.mxu3  ;;  %v3159_v58 = vpop.f32.mrf.mxu0  ;;  %6551 = vst [vmem:[#allocation42_spill] sm:$0xff] %v3172_v62  ;;  %v6555_v51 = vmax.f32 %v3147_v52, 0.0  ;;  %v6096_v36 = vmax.f32 %v3201_v43, 0.0 }
 0x102   :  { %6548 = vst [vmem:[#allocation39_spill] sm:$0xff] %v3159_v58  ;;  %v3163_v47 = vadd.f32 %v458_v31, %v3138_v37  ;;  %v3165_v54 = vpop.f32.mrf.mxu1  ;;  %v3181_v31 = vadd.f32 %v390_v46, %v3167_v40  ;;  %v3198_v46 = vpop.permute.xlu2 %129  ;;  %v6676_v58 = vld [vmem:[#allocation14_spill] sm:$0xff] }
 0x103   :  { %6547 = vst [vmem:[#allocation38_spill] sm:$0xff] %v3157_v49  ;;  %v6085_v53 = vmax.f32 %v3157_v49, 0.0 }
 0x104   :  { %6549 = vst [vmem:[#allocation40_spill] sm:$0xff] %v3163_v47  ;;  %2370 = vmatmul.msk.f32.vlgmr.msra.gmra.mxu0 %vm152_vm0, %v2628_v6  ;;  %v6091_v49 = vmax.f32 %v3181_v31, 0.0 }
 0x105   :  { %6550 = vst [vmem:[#allocation41_spill] sm:$0xff] %v3165_v54  ;;  %2386 = vmatmul.msk.f32.vlgmr.msra.gmra.mxu1 %vm152_vm0, %v2628_v6  ;;  %2402 = vmatmul.msk.f32.vlgmr.msra.gmra.mxu2 %vm152_vm0, %v2628_v6  ;;  %v6557_v54 = vmax.f32 %v3163_v47, 0.0  ;;  %v6564_v47 = vmax.f32 %v3172_v62, 0.0 }
 0x106   :  { %6552 = vst [vmem:[#allocation43_spill] sm:$0xff] %v3178_v57  ;;  %2418 = vmatmul.msk.f32.vlgmr.msra.gmra.mxu3 %vm152_vm0, %v2628_v6  ;;  %1513 = vmatpush.xpose.msra.mxu0 %v6555_v51  ;;  %v3209_v51 = vadd.f32 %v322_v48, %v3154_v50 }
 0x107   :  { %6553 = vst [vmem:[#allocation44_spill] sm:$0xff] %v3181_v31  ;;  %1533 = vmatpush.xpose.msra.mxu1 %v6084_v45  ;;  %1553 = vmatpush.xpose.msra.mxu2 %v6085_v53  ;;  %v3212_v45 = vadd.f32 %v387_v33, %v3154_v50  ;;  %v6090_v53 = vmax.f32 %v3178_v57, 0.0  ;;  %v3228_v33 = vpop.permute.xlu1 %134  ;;  %v6675_v57 = vld [vmem:[#allocation13_spill] sm:$0xff] }
 0x108   :  { %6554 = vst [vmem:[#allocation45_spill] sm:$0xff] %v3188_v44  ;;  %1573 = vmatpush.xpose.msra.mxu3 %v6557_v54  ;;  %v3206_v6 = vpop.f32.mrf.mxu2  ;;  %v6092_v54 = vmax.f32 %v3188_v44, 0.0  ;;  %v3236_v52 = vadd.f32 %v3094_v35, %v3228_v33 }
 0x109   :  { %6556 = vst [vmem:[#allocation46_spill] sm:$0xff] %v3201_v43  ;;  %v3216_v39 = vpop.f32.mrf.mxu3  ;;  %v3218_v32 = vpop.f32.mrf.mxu0  ;;  %v6095_v35 = vmax.f32 %v3212_v45, 0.0 }
 0x10a   :  { %6558 = vst [vmem:[#allocation47_spill] sm:$0xff] %v3206_v6  ;;  %1514 = vmatpush.xpose.msra.mxu0 %v6564_v47  ;;  %v3226_v48 = vpop.f32.mrf.mxu1  ;;  %v3245_v47 = vadd.f32 %v3096_v34, %v3228_v33  ;;  %v6097_v34 = vmax.f32 %v3221_v38, 0.0 }
 0x10b   :  { %6559 = vst [vmem:[#allocation48_spill] sm:$0xff] %v3209_v51  ;;  %1534 = vmatpush.xpose.msra.mxu1 %v6090_v53  ;;  %1554 = vmatpush.xpose.msra.mxu2 %v6091_v49  ;;  %v3249_v53 = vadd.f32 %v3118_v42, %v3228_v33  ;;  %v6094_v49 = vmax.f32 %v3209_v51, 0.0  ;;  %v3272_v42 = vadd.f32 %v3078_v55, %v3198_v46 }
 0x10c   :  { %6560 = vst [vmem:[#allocation49_spill] sm:$0xff] %v3212_v45  ;;  %1574 = vmatpush.xpose.msra.mxu3 %v6092_v54  ;;  %2371 = vmatmul.msk.f32.gmra.mxu0 %vm152_vm0, %v2650_v10  ;;  %v3259_v54 = vadd.f32 %v3120_v41, %v3228_v33 }
 0x10d   :  { %6561 = vst [vmem:[#allocation50_spill] sm:$0xff] %v3216_v39  ;;  %2387 = vmatmul.msk.f32.gmra.mxu1 %vm152_vm0, %v2650_v10  ;;  %2403 = vmatmul.msk.f32.gmra.mxu2 %vm152_vm0, %v2650_v10  ;;  %v6102_v55 = vmax.f32 %v3249_v53, 0.0 }
 0x10e   :  { %6562 = vst [vmem:[#allocation51_spill] sm:$0xff] %v3218_v32  ;;  %2419 = vmatmul.msk.f32.gmra.mxu3 %vm152_vm0, %v2650_v10  ;;  %1515 = vmatpush.xpose.msra.mxu0 %v6096_v36  ;;  %v3281_v10 = vadd.f32 %v3080_v56, %v3198_v46  ;;  %v6577_v56 = vmax.f32 %v3236_v52, 0.0 }
 0x10f   :  { %6563 = vst [vmem:[#allocation52_spill] sm:$0xff] %v3221_v38  ;;  %1535 = vmatpush.xpose.msra.mxu1 %v6094_v49  ;;  %1555 = vmatpush.xpose.msra.mxu2 %v6095_v35  ;;  %v3285_v49 = vadd.f32 %v3090_v1, %v3198_v46  ;;  %v6101_v35 = vmax.f32 %v3245_v47, 0.0  ;;  %v6103_v38 = vmax.f32 %v3259_v54, 0.0  ;;  %v3302_v1 = vpop.permute.xlu2 %124 }
 0x110   :  { %6565 = vst [vmem:[#allocation53_spill] sm:$0xff] %v3226_v48  ;;  %1575 = vmatpush.xpose.msra.mxu3 %v6097_v34  ;;  %v3277_v44 = vpop.f32.mrf.mxu2  ;;  %v3295_v34 = vadd.f32 %v3092_v2, %v3198_v46  ;;  %v3310_v31 = vadd.f32 %v3062_v26, %v3302_v1  ;;  %v6105_v2 = vmax.f32 %v3272_v42, 0.0  ;;  %v6677_v48 = vld [vmem:[#allocation15_spill] sm:$0xff] }
 0x111   :  { %6566 = vst [vmem:[#allocation54_spill] sm:$0xff] %v3236_v52  ;;  %v3289_v36 = vpop.f32.mrf.mxu3  ;;  %v3291_v41 = vpop.f32.mrf.mxu0  ;;  %v6107_v26 = vmax.f32 %v3285_v49, 0.0  ;;  %v6662_v52 = vld [vmem:[#allocation18_spill] sm:$0xff] }
 0x112   :  { %6567 = vst [vmem:[#allocation55_spill] sm:$0xff] %v3245_v47  ;;  %1516 = vmatpush.xpose.msra.mxu0 %v6577_v56  ;;  %v3300_v45 = vpop.f32.mrf.mxu1  ;;  %v3319_v56 = vadd.f32 %v3064_v27, %v3302_v1 }
 0x113   :  { %6568 = vst [vmem:[#allocation56_spill] sm:$0xff] %v3249_v53  ;;  %1536 = vmatpush.xpose.msra.mxu1 %v6101_v35  ;;  %1556 = vmatpush.xpose.msra.mxu2 %v6102_v55  ;;  %v3323_v35 = vadd.f32 %v3074_v28, %v3302_v1  ;;  %v6106_v55 = vmax.f32 %v3281_v10, 0.0  ;;  %v3340_v28 = vpop.permute.xlu0 %119 }
 0x114   :  { %6569 = vst [vmem:[#allocation57_spill] sm:$0xff] %v3259_v54  ;;  %1576 = vmatpush.xpose.msra.mxu3 %v6103_v38  ;;  %2372 = vmatmul.msk.f32.gmra.mxu0 %vm152_vm0, %v2672_v14  ;;  %v3333_v38 = vadd.f32 %v3076_v29, %v3302_v1  ;;  %v3348_v29 = vadd.f32 %v3046_v21, %v3340_v28  ;;  %v6584_v54 = vmax.f32 %v3295_v34, 0.0 }
 0x115   :  { %6570 = vst [vmem:[#allocation58_spill] sm:$0xff] %v3272_v42  ;;  %2388 = vmatmul.msk.f32.gmra.mxu1 %vm152_vm0, %v2672_v14  ;;  %2404 = vmatmul.msk.f32.gmra.mxu2 %vm152_vm0, %v2672_v14  ;;  %v6113_v21 = vmax.f32 %v3323_v35, 0.0 }
 0x116   :  { %6571 = vst [vmem:[#allocation59_spill] sm:$0xff] %v3277_v44  ;;  %2420 = vmatmul.msk.f32.gmra.mxu3 %vm152_vm0, %v2672_v14  ;;  %1517 = vmatpush.xpose.msra.mxu0 %v6105_v2  ;;  %v3357_v2 = vadd.f32 %v3048_v22, %v3340_v28  ;;  %v6591_v22 = vmax.f32 %v3310_v31, 0.0 }
 0x117   :  { %6572 = vst [vmem:[#allocation60_spill] sm:$0xff] %v3281_v10  ;;  %1537 = vmatpush.xpose.msra.mxu1 %v6106_v55  ;;  %1557 = vmatpush.xpose.msra.mxu2 %v6107_v26  ;;  %v3361_v55 = vadd.f32 %v3058_v23, %v3340_v28  ;;  %v6112_v26 = vmax.f32 %v3319_v56, 0.0  ;;  %v3378_v23 = vpop.permute.xlu1 %114 }
 0x118   :  { %6573 = vst [vmem:[#allocation61_spill] sm:$0xff] %v3285_v49  ;;  %1577 = vmatpush.xpose.msra.mxu3 %v6584_v54  ;;  %v3353_v14 = vpop.f32.mrf.mxu2  ;;  %v3371_v54 = vadd.f32 %v3060_v25, %v3340_v28  ;;  %v3386_v10 = vadd.f32 %v3030_v16, %v3378_v23  ;;  %v6116_v25 = vmax.f32 %v3348_v29, 0.0 }
 0x119   :  { %6574 = vst [vmem:[#allocation62_spill] sm:$0xff] %v3289_v36  ;;  %v3365_v49 = vpop.f32.mrf.mxu3  ;;  %v3367_v27 = vpop.f32.mrf.mxu0  ;;  %v6118_v16 = vmax.f32 %v3361_v55, 0.0 }
 0x11a   :  { %6575 = vst [vmem:[#allocation63_spill] sm:$0xff] %v3291_v41  ;;  %1518 = vmatpush.xpose.msra.mxu0 %v6591_v22  ;;  %v3376_v53 = vpop.f32.mrf.mxu1  ;;  %v3395_v22 = vadd.f32 %v3032_v17, %v3378_v23 }
 0x11b   :  { %6576 = vst [vmem:[#allocation64_spill] sm:$0xff] %v3295_v34  ;;  %v6114_v34 = vmax.f32 %v3333_v38, 0.0  ;;  %1538 = vmatpush.xpose.msra.mxu1 %v6112_v26  ;;  %1558 = vmatpush.xpose.msra.mxu2 %v6113_v21  ;;  %v3399_v26 = vadd.f32 %v3042_v19, %v3378_v23  ;;  %v6117_v21 = vmax.f32 %v3357_v2, 0.0  ;;  %v3416_v19 = vpop.permute.xlu2 %109 }
 0x11c   :  { %6578 = vst [vmem:[#allocation65_spill] sm:$0xff] %v3300_v45  ;;  %2373 = vmatmul.msk.f32.gmra.mxu0 %vm152_vm0, %v2694_v18 }
 0x11d   :  { %6579 = vst [vmem:[#allocation66_spill] sm:$0xff] %v3310_v31  ;;  %1578 = vmatpush.xpose.msra.mxu3 %v6114_v34  ;;  %2389 = vmatmul.msk.f32.gmra.mxu1 %vm152_vm0, %v2694_v18  ;;  %v3409_v34 = vadd.f32 %v3044_v20, %v3378_v23  ;;  %v3424_v20 = vadd.f32 %v3014_v11, %v3416_v19  ;;  %v6124_v11 = vmax.f32 %v3399_v26, 0.0 }
 0x11e   :  { %6580 = vst [vmem:[#allocation67_spill] sm:$0xff] %v3319_v56  ;;  %2405 = vmatmul.msk.f32.gmra.mxu2 %vm152_vm0, %v2694_v18  ;;  %2421 = vmatmul.msk.f32.gmra.mxu3 %vm152_vm0, %v2694_v18  ;;  %v6657_v56 = vld [vmem:[#allocation25_spill] sm:$0xff] }
 0x11f   :  { %6581 = vst [vmem:[#allocation68_spill] sm:$0xff] %v3323_v35  ;;  %1519 = vmatpush.xpose.msra.mxu0 %v6116_v25  ;;  %1539 = vmatpush.xpose.msra.mxu1 %v6117_v21  ;;  %v3433_v25 = vadd.f32 %v3016_v12, %v3416_v19  ;;  %v3437_v21 = vadd.f32 %v3026_v13, %v3416_v19  ;;  %v6605_v12 = vmax.f32 %v3386_v10, 0.0  ;;  %v3454_v13 = vpop.permute.xlu0 %104 }
 0x120   :  { %6582 = vst [vmem:[#allocation69_spill] sm:$0xff] %v3333_v38  ;;  %1559 = vmatpush.xpose.msra.mxu2 %v6118_v16  ;;  %v6598_v38 = vmax.f32 %v3371_v54, 0.0  ;;  %v3429_v18 = vpop.f32.mrf.mxu2  ;;  %v6123_v16 = vmax.f32 %v3395_v22, 0.0 }
 0x121   :  { %6583 = vst [vmem:[#allocation70_spill] sm:$0xff] %v3348_v29  ;;  %v3443_v17 = vpop.f32.mrf.mxu0 }
 0x122   :  { %6585 = vst [vmem:[#allocation71_spill] sm:$0xff] %v3353_v14  ;;  %1579 = vmatpush.xpose.msra.mxu3 %v6598_v38  ;;  %v3447_v38 = vadd.f32 %v3028_v15, %v3416_v19  ;;  %v3452_v35 = vpop.f32.mrf.mxu1  ;;  %v6127_v15 = vmax.f32 %v3424_v20, 0.0  ;;  %v6678_v14 = vld [vmem:[#allocation16_spill] sm:$0xff] }
 0x123   :  { %6586 = vst [vmem:[#allocation72_spill] sm:$0xff] %v3357_v2  ;;  %1520 = vmatpush.xpose.msra.mxu0 %v6605_v12  ;;  %1540 = vmatpush.xpose.msra.mxu1 %v6123_v16  ;;  %v3462_v2 = vadd.f32 %v2998_v5, %v3454_v13  ;;  %v3471_v12 = vadd.f32 %v3000_v7, %v3454_v13  ;;  %v6129_v5 = vmax.f32 %v3437_v21, 0.0 }
 0x124   :  { %6587 = vst [vmem:[#allocation73_spill] sm:$0xff] %v3361_v55  ;;  %v3441_v55 = vpop.f32.mrf.mxu3  ;;  %1560 = vmatpush.xpose.msra.mxu2 %v6124_v11  ;;  %2374 = vmatmul.msk.f32.gmra.mxu0 %vm152_vm0, %v2722_v24  ;;  %v3475_v16 = vadd.f32 %v3010_v8, %v3454_v13  ;;  %v6128_v11 = vmax.f32 %v3433_v25, 0.0  ;;  %v3492_v8 = vpop.permute.xlu1 %99 }
 0x125   :  { %6588 = vst [vmem:[#allocation74_spill] sm:$0xff] %v3365_v49  ;;  %2390 = vmatmul.msk.f32.gmra.mxu1 %vm152_vm0, %v2722_v24 }
 0x126   :  { %6589 = vst [vmem:[#allocation75_spill] sm:$0xff] %v3367_v27  ;;  %2406 = vmatmul.msk.f32.gmra.mxu2 %vm152_vm0, %v2722_v24  ;;  %2422 = vmatmul.msk.f32.gmra.mxu3 %vm152_vm0, %v2722_v24 }
 0x127   :  { %6590 = vst [vmem:[#allocation76_spill] sm:$0xff] %v3371_v54  ;;  %v6125_v54 = vmax.f32 %v3409_v34, 0.0  ;;  %1521 = vmatpush.xpose.msra.mxu0 %v6127_v15  ;;  %1541 = vmatpush.xpose.msra.mxu1 %v6128_v11  ;;  %v3509_v15 = vadd.f32 %v2978_v0, %v3492_v8  ;;  %v3513_v11 = vadd.f32 %v2994_v3, %v3492_v8  ;;  %v6618_v0 = vmax.f32 %v3462_v2, 0.0  ;;  %v3530_v3 = vpop.permute.xlu2 %94 }
 0x128   :  { %6592 = vst [vmem:[#allocation77_spill] sm:$0xff] %v3376_v53  ;;  %1561 = vmatpush.xpose.msra.mxu2 %v6129_v5  ;;  %v3505_v24 = vpop.f32.mrf.mxu2  ;;  %v6134_v5 = vmax.f32 %v3471_v12, 0.0 }
 0x129   :  { %6593 = vst [vmem:[#allocation78_spill] sm:$0xff] %v3386_v10  ;;  %1580 = vmatpush.xpose.msra.mxu3 %v6125_v54  ;;  %v3485_v54 = vadd.f32 %v3012_v9, %v3454_v13  ;;  %v3500_v9 = vadd.f32 %v2976_v63, %v3492_v8  ;;  %v6135_v63 = vmax.f32 %v3475_v16, 0.0  ;;  %v3519_v7 = vpop.f32.mrf.mxu0  ;;  %v6638_v10 = vld [vmem:[#allocation26_spill] sm:$0xff] }
 0x12a   :  { %6594 = vst [vmem:[#allocation79_spill] sm:$0xff] %v3395_v22 }
 0x12b   :  { %6595 = vst [vmem:[#allocation80_spill] sm:$0xff] %v3399_v26  ;;  %1522 = vmatpush.xpose.msra.mxu0 %v6618_v0  ;;  %v3528_v26 = vpop.f32.mrf.mxu1  ;;  %1542 = vmatpush.xpose.msra.mxu1 %v6134_v5  ;;  %v3547_v0 = vadd.f32 %v2962_v60, %v3530_v3  ;;  %v3551_v5 = vadd.f32 %v2972_v61, %v3530_v3  ;;  %v6626_v61 = vmax.f32 %v3500_v9, 0.0 }
 0x12c   :  { %6596 = vst [vmem:[#allocation81_spill] sm:$0xff] %v3409_v34  ;;  %v6612_v34 = vmax.f32 %v3447_v38, 0.0  ;;  %1562 = vmatpush.xpose.msra.mxu2 %v6135_v63  ;;  %2375 = vmatmul.msk.f32.gmra.mxu0 %vm152_vm0, %v2750_v30  ;;  %v6141_v63 = vmax.f32 %v3509_v15, 0.0 }
 0x12d   :  { %6597 = vst [vmem:[#allocation82_spill] sm:$0xff] %v3424_v20  ;;  %2391 = vmatmul.msk.f32.gmra.mxu1 %vm152_vm0, %v2750_v30 }
 0x12e   :  { %6599 = vst [vmem:[#allocation83_spill] sm:$0xff] %v3429_v18  ;;  %1581 = vmatpush.xpose.msra.mxu3 %v6612_v34  ;;  %v3523_v34 = vadd.f32 %v2996_v4, %v3492_v8  ;;  %2407 = vmatmul.msk.f32.gmra.mxu2 %vm152_vm0, %v2750_v30  ;;  %v6624_v4 = vld [vmem:[#allocation34_spill] sm:$0xff] }
 0x12f   :  { %6600 = vst [vmem:[#allocation84_spill] sm:$0xff] %v3433_v25  ;;  %v3538_v25 = vadd.f32 %v2960_v59, %v3530_v3  ;;  %v6143_v59 = vmax.f32 %v3513_v11, 0.0  ;;  %v3563_v60 = vadd.f32 %v6624_v4, %v3530_v3  ;;  %2423 = vmatmul.msk.f32.gmra.mxu3 %vm152_vm0, %v2750_v30  ;;  %1523 = vmatpush.xpose.msra.mxu0 %v6626_v61  ;;  %v6629_v30 = vld [vmem:[#allocation31_spill] sm:$0xff] }
 0x130   :  { %6601 = vst [vmem:[#allocation85_spill] sm:$0xff] %v3437_v21  ;;  %v3517_v21 = vpop.f32.mrf.mxu3  ;;  %1543 = vmatpush.xpose.msra.mxu1 %v6141_v63  ;;  %v6631_v63 = vld [vmem:[#allocation32_spill] sm:$0xff] }
 0x131   :  { %6602 = vst [vmem:[#allocation86_spill] sm:$0xff] %v3441_v55  ;;  %1563 = vmatpush.xpose.msra.mxu2 %v6143_v59  ;;  %v6153_v59 = vmax.f32 %v3547_v0, 0.0  ;;  %v3595_v4 = vpop.f32.mrf.mxu0  ;;  %v6636_v20 = vmax.f32 %v3538_v25, 0.0  ;;  %v6679_v55 = vld [vmem:[#allocation17_spill] sm:$0xff] }
 0x132   :  { %6603 = vst [vmem:[#allocation87_spill] sm:$0xff] %v3443_v17 }
 0x133   :  { %6604 = vst [vmem:[#allocation88_spill] sm:$0xff] %v3447_v38  ;;  %v6136_v38 = vmax.f32 %v3485_v54, 0.0  ;;  %1524 = vmatpush.xpose.msra.mxu0 %v6636_v20  ;;  %v6640_v20 = vld [vmem:[#allocation28_spill] sm:$0xff] }
 0x134   :  { %6606 = vst [vmem:[#allocation89_spill] sm:$0xff] %v3452_v35  ;;  %1544 = vmatpush.xpose.msra.mxu1 %v6153_v59 }
 0x135   :  { %6607 = vst [vmem:[#allocation90_spill] sm:$0xff] %v3462_v2  ;;  %1582 = vmatpush.xpose.msra.mxu3 %v6136_v38  ;;  %v3559_v38 = vpop.permute.xlu0 %89  ;;  %v3581_v2 = vpop.f32.mrf.mxu2 }
 0x136   :  { %6608 = vst [vmem:[#allocation91_spill] sm:$0xff] %v3471_v12  ;;  %v3585_v61 = vadd.f32 %v6629_v30, %v3559_v38  ;;  %v6155_v30 = vmax.f32 %v3563_v60, 0.0 }
 0x137   :  { %6609 = vst [vmem:[#allocation92_spill] sm:$0xff] %v3475_v16  ;;  %v6627_v16 = vld [vmem:[#allocation30_spill] sm:$0xff] }
 0x138   :  { %6610 = vst [vmem:[#allocation93_spill] sm:$0xff] %v3485_v54  ;;  %v6146_v54 = vmax.f32 %v3523_v34, 0.0  ;;  %v3576_v12 = vadd.f32 %v6627_v16, %v3559_v38  ;;  %v6154_v16 = vmax.f32 %v3551_v5, 0.0 }
 0x139   :  { %6611 = vst [vmem:[#allocation94_spill] sm:$0xff] %v3500_v9 }
 0x13a   :  { %6613 = vst [vmem:[#allocation95_spill] sm:$0xff] %v3505_v24  ;;  %1583 = vmatpush.xpose.msra.mxu3 %v6146_v54  ;;  %v6634_v54 = vld [vmem:[#allocation33_spill] sm:$0xff]  ;;  %1564 = vmatpush.xpose.msra.mxu2 %v6154_v16  ;;  %v6647_v16 = vmax.f32 %v3576_v12, 0.0 }
 0x13b   :  { %6614 = vst [vmem:[#allocation96_spill] sm:$0xff] %v3509_v15  ;;  %v3589_v15 = vadd.f32 %v6631_v63, %v3559_v38  ;;  %v3601_v9 = vadd.f32 %v6634_v54, %v3559_v38  ;;  %v3606_v63 = vpop.f32.mrf.mxu1  ;;  %v6637_v54 = vld [vmem:[#allocation8_spill] sm:$0xff] }
 0x13c   :  { %6615 = vst [vmem:[#allocation97_spill] sm:$0xff] %v3513_v11  ;;  %v3593_v11 = vpop.f32.mrf.mxu3  ;;  %2376 = vmatmul.msk.f32.gmra.mxu0 %vm152_vm0, %v6637_v54  ;;  %2392 = vmatmul.msk.f32.gmra.mxu1 %vm152_vm0, %v6637_v54 }
 0x13d   :  { %6616 = vst [vmem:[#allocation98_spill] sm:$0xff] %v3517_v21  ;;  %2408 = vmatmul.msk.f32.gmra.mxu2 %vm152_vm0, %v6637_v54  ;;  %v6164_v59 = vmax.f32 %v3601_v9, 0.0  ;;  %2424 = vmatmul.msk.f32.gmra.mxu3 %vm152_vm0, %v6637_v54  ;;  %v6651_v54 = vld [vmem:[#allocation22_spill] sm:$0xff] }
 0x13e   :  { %6617 = vst [vmem:[#allocation99_spill] sm:$0xff] %v3523_v34  ;;  %v3597_v34 = vpop.permute.xlu1 %84  ;;  %1584 = vmatpush.xpose.msra.mxu3 %v6155_v30  ;;  %v6642_v30 = vld [vmem:[#allocation27_spill] sm:$0xff]  ;;  %1525 = vmatpush.xpose.msra.mxu0 %v6647_v16  ;;  %v6653_v16 = vld [vmem:[#allocation24_spill] sm:$0xff] }
 0x13f   :  { %6619 = vst [vmem:[#allocation100_spill] sm:$0xff] %v3530_v3  ;;  %v3623_v29 = vadd.f32 %v6640_v20, %v3597_v34  ;;  %v3633_v22 = vadd.f32 %v6642_v30, %v3597_v34  ;;  %v6649_v30 = vmax.f32 %v3589_v15, 0.0 }
 0x140   :  { %6620 = vst [vmem:[#allocation101_spill] sm:$0xff] %v3538_v25  ;;  %v3619_v25 = vadd.f32 %v6638_v10, %v3597_v34  ;;  %v3635_v10 = vpop.permute.xlu2 %79 }
 0x141   :  { %6621 = vst [vmem:[#allocation102_spill] sm:$0xff] %v3547_v0  ;;  %1565 = vmatpush.xpose.msra.mxu2 %v6649_v30  ;;  %v3650_v0 = vpop.permute.xlu0 %74  ;;  %v3659_v31 = vadd.f32 %v6651_v54, %v3635_v10  ;;  %v3677_v54 = vadd.f32 %v6657_v56, %v3635_v10  ;;  %v6660_v47 = vmax.f32 %v3623_v29, 0.0  ;;  %v6666_v56 = vld [vmem:[#allocation20_spill] sm:$0xff] }
 0x142   :  { %6622 = vst [vmem:[#allocation103_spill] sm:$0xff] %v3551_v5  ;;  %v6648_v5 = vmax.f32 %v3585_v61, 0.0  ;;  %1585 = vmatpush.xpose.msra.mxu3 %v6164_v59  ;;  %v6655_v59 = vld [vmem:[#allocation23_spill] sm:$0xff] }
 0x143   :  { %6623 = vst [vmem:[#allocation104_spill] sm:$0xff] %v3559_v38 }
 0x144   :  { %6625 = vst [vmem:[#allocation34_spill] sm:$0xff] %v3563_v60  ;;  %v6645_v60 = vld [vmem:[#allocation29_spill] sm:$0xff]  ;;  %1545 = vmatpush.xpose.msra.mxu1 %v6648_v5  ;;  %v3666_v30 = vpop.f32.mrf.mxu3  ;;  %v3682_v5 = vpop.f32.mrf.mxu1 }
 0x145   :  { %6628 = vst [vmem:[#allocation30_spill] sm:$0xff] %v3576_v12  ;;  %v3639_v20 = vadd.f32 %v6645_v60, %v3597_v34  ;;  %v3654_v60 = vpop.f32.mrf.mxu2  ;;  %v3673_v12 = vadd.f32 %v6655_v59, %v3635_v10  ;;  %1566 = vmatpush.xpose.msra.mxu2 %v6660_v47  ;;  %v6661_v59 = vld [vmem:[#allocation9_spill] sm:$0xff] }
 0x146   :  { %6630 = vst [vmem:[#allocation31_spill] sm:$0xff] %v3585_v61  ;;  %v3663_v61 = vadd.f32 %v6653_v16, %v3635_v10  ;;  %v6659_v16 = vmax.f32 %v3619_v25, 0.0  ;;  %2377 = vmatmul.msk.f32.gmra.mxu0 %vm152_vm0, %v6661_v59  ;;  %2393 = vmatmul.msk.f32.gmra.mxu1 %vm152_vm0, %v6661_v59 }
 0x147   :  { %6632 = vst [vmem:[#allocation32_spill] sm:$0xff] %v3589_v15  ;;  %v6171_v15 = vmax.f32 %v3633_v22, 0.0  ;;  %v6170_v42 = vmax.f32 %v3639_v20, 0.0  ;;  %2409 = vmatmul.msk.f32.gmra.mxu2 %vm152_vm0, %v6661_v59  ;;  %v6177_v47 = vmax.f32 %v3673_v12, 0.0  ;;  %2425 = vmatmul.msk.f32.gmra.mxu3 %vm152_vm0, %v6661_v59 }
 0x148   :  { %6633 = vst [vmem:[#allocation105_spill] sm:$0xff] %v3597_v34  ;;  %1526 = vmatpush.xpose.msra.mxu0 %v6659_v16  ;;  %v6668_v16 = vmax.f32 %v3659_v31, 0.0 }
 0x149   :  { %6635 = vst [vmem:[#allocation33_spill] sm:$0xff] %v3601_v9  ;;  %v3669_v9 = vpop.f32.mrf.mxu0  ;;  %1546 = vmatpush.xpose.msra.mxu1 %v6171_v15  ;;  %1586 = vmatpush.xpose.msra.mxu3 %v6170_v42  ;;  %v6664_v42 = vld [vmem:[#allocation19_spill] sm:$0xff] }
 0x14a   :  { %6639 = vst [vmem:[#allocation8_spill] sm:$0xff] %v3619_v25  ;;  %v3695_v25 = vadd.f32 %v6662_v52, %v3650_v0  ;;  %v3705_v15 = vadd.f32 %v6664_v42, %v3650_v0  ;;  %v6178_v52 = vmax.f32 %v3677_v54, 0.0  ;;  %v6671_v42 = vmax.f32 %v3663_v61, 0.0 }
 0x14b   :  { %6641 = vst [vmem:[#allocation26_spill] sm:$0xff] %v3623_v29  ;;  %v6669_v29 = vld [vmem:[#allocation21_spill] sm:$0xff] }
 0x14c   :  { %6643 = vst [vmem:[#allocation28_spill] sm:$0xff] %v3633_v22  ;;  %1527 = vmatpush.xpose.msra.mxu0 %v6668_v16  ;;  %v3718_v22 = vadd.f32 %v6669_v29, %v3650_v0  ;;  %1567 = vmatpush.xpose.msra.mxu2 %v6671_v42  ;;  %v6179_v59 = vmax.f32 %v3695_v25, 0.0  ;;  %v3729_v51 = vpop.f32.mrf.mxu3  ;;  %v6180_v16 = vmax.f32 %v3705_v15, 0.0 }
 0x14d   :  { %6644 = vst [vmem:[#allocation27_spill] sm:$0xff] %v3635_v10  ;;  %1547 = vmatpush.xpose.msra.mxu1 %v6177_v47  ;;  %1587 = vmatpush.xpose.msra.mxu3 %v6178_v52  ;;  %v3738_v47 = vpop.f32.mrf.mxu1  ;;  %v6672_v52 = vld [vmem:[#allocation10_spill] sm:$0xff] }
 0x14e   :  { %6646 = vst [vmem:[#allocation29_spill] sm:$0xff] %v3639_v20  ;;  %v3709_v20 = vadd.f32 %v6666_v56, %v3650_v0  ;;  %v3726_v56 = vpop.f32.mrf.mxu2  ;;  %v6183_v42 = vmax.f32 %v3718_v22, 0.0  ;;  %2378 = vmatmul.msk.f32.gmra.mxu0 %vm152_vm0, %v6672_v52  ;;  %2394 = vmatmul.msk.f32.gmra.mxu1 %vm152_vm0, %v6672_v52 }
 0x14f   :  { %6650 = vst [vmem:[#allocation106_spill] sm:$0xff] %v3650_v0  ;;  %2410 = vmatmul.msk.f32.gmra.mxu2 %vm152_vm0, %v6672_v52  ;;  %2426 = vmatmul.msk.f32.gmra.mxu3 %vm152_vm0, %v6672_v52 }
 0x150   :  { %6652 = vst [vmem:[#allocation22_spill] sm:$0xff] %v3659_v31  ;;  %v6181_v29 = vmax.f32 %v3709_v20, 0.0  ;;  %1528 = vmatpush.xpose.msra.mxu0 %v6179_v59 }
 0x151   :  { %6654 = vst [vmem:[#allocation24_spill] sm:$0xff] %v3663_v61  ;;  %v3733_v31 = vpop.f32.mrf.mxu0  ;;  %1548 = vmatpush.xpose.msra.mxu1 %v6180_v16  ;;  %1588 = vmatpush.xpose.msra.mxu3 %v6183_v42  ;;  %v6673_v42 = vld [vmem:[#allocation11_spill] sm:$0xff] }
 0x152   :  { %6656 = vst [vmem:[#allocation23_spill] sm:$0xff] %v3673_v12  ;;  %1568 = vmatpush.xpose.msra.mxu2 %v6181_v29 }
 0x153   :  { %6658 = vst [vmem:[#allocation25_spill] sm:$0xff] %v3677_v54 }
 0x154   :  { %6663 = vst [vmem:[#allocation9_spill] sm:$0xff] %v3695_v25  ;;  %v3756_v16 = vpop.f32.mrf.mxu3 }
 0x155   :  { %6665 = vst [vmem:[#allocation18_spill] sm:$0xff] %v3705_v15  ;;  %v6674_v15 = vld [vmem:[#allocation12_spill] sm:$0xff] }
 0x156   :  { %6667 = vst [vmem:[#allocation19_spill] sm:$0xff] %v3709_v20  ;;  %v3754_v59 = vpop.f32.mrf.mxu2  ;;  %2379 = vmatmul.msk.f32.gmra.mxu0 %vm152_vm0, %v6673_v42  ;;  %2395 = vmatmul.msk.f32.gmra.mxu1 %vm152_vm0, %v6673_v42 }
 0x157   :  { %6670 = vst [vmem:[#allocation20_spill] sm:$0xff] %v3718_v22  ;;  %v3760_v22 = vpop.f32.mrf.mxu1  ;;  %2411 = vmatmul.msk.f32.gmra.mxu2 %vm152_vm0, %v6673_v42  ;;  %2427 = vmatmul.msk.f32.gmra.mxu3 %vm152_vm0, %v6673_v42 }
 0x159   :  { %v3758_v29 = vpop.f32.mrf.mxu0 }
 0x15c   :  { %v3772_v20 = vpop.f32.mrf.mxu3 }
 0x15e   :  { %v3770_v52 = vpop.f32.mrf.mxu2  ;;  %2380 = vmatmul.msk.f32.gmra.mxu0 %vm152_vm0, %v6674_v15  ;;  %2396 = vmatmul.msk.f32.gmra.mxu1 %vm152_vm0, %v6674_v15 }
 0x15f   :  { %v3776_v61 = vpop.f32.mrf.mxu1  ;;  %2412 = vmatmul.msk.f32.gmra.mxu2 %vm152_vm0, %v6674_v15  ;;  %2428 = vmatmul.msk.f32.gmra.mxu3 %vm152_vm0, %v6674_v15 }
 0x161   :  { %v3774_v54 = vpop.f32.mrf.mxu0 }
 0x164   :  { %v3788_v25 = vpop.f32.mrf.mxu3 }
 0x166   :  { %v3786_v42 = vpop.f32.mrf.mxu2  ;;  %2381 = vmatmul.msk.f32.gmra.mxu0 %vm152_vm0, %v6675_v57  ;;  %2397 = vmatmul.msk.f32.gmra.mxu1 %vm152_vm0, %v6675_v57 }
 0x167   :  { %v3792_v43 = vpop.f32.mrf.mxu1  ;;  %2413 = vmatmul.msk.f32.gmra.mxu2 %vm152_vm0, %v6675_v57  ;;  %2429 = vmatmul.msk.f32.gmra.mxu3 %vm152_vm0, %v6675_v57 }
 0x169   :  { %v3790_v12 = vpop.f32.mrf.mxu0 }
 0x16c   :  { %v3804_v62 = vpop.f32.mrf.mxu3 }
 0x16e   :  { %v3802_v15 = vpop.f32.mrf.mxu2  ;;  %2382 = vmatmul.msk.f32.gmra.mxu0 %vm152_vm0, %v6676_v58  ;;  %2398 = vmatmul.msk.f32.gmra.mxu1 %vm152_vm0, %v6676_v58 }
 0x16f   :  { %v3808_v6 = vpop.f32.mrf.mxu1  ;;  %2414 = vmatmul.msk.f32.gmra.mxu2 %vm152_vm0, %v6676_v58  ;;  %2430 = vmatmul.msk.f32.gmra.mxu3 %vm152_vm0, %v6676_v58 }
 0x171   :  { %v3806_v39 = vpop.f32.mrf.mxu0 }
 0x174   :  { %v3820_v0 = vpop.f32.mrf.mxu3 }
 0x176   :  { %v3818_v57 = vpop.f32.mrf.mxu2  ;;  %2383 = vmatmul.msk.f32.gmra.mxu0 %vm152_vm0, %v6677_v48  ;;  %2399 = vmatmul.msk.f32.gmra.mxu1 %vm152_vm0, %v6677_v48 }
 0x177   :  { %v582_v44 = vpop.f32.mrf.mxu1  ;;  %2415 = vmatmul.msk.f32.gmra.mxu2 %vm152_vm0, %v6677_v48  ;;  %2431 = vmatmul.msk.f32.gmra.mxu3 %vm152_vm0, %v6677_v48 }
 0x179   :  { %v517_v36 = vpop.f32.mrf.mxu0 }
 0x17c   :  { %v712_v58 = vpop.f32.mrf.mxu3 }
 0x17e   :  { %v647_v32 = vpop.f32.mrf.mxu2  ;;  %2384 = vmatmul.msk.f32.gmra.mxu0 %vm152_vm0, %v6678_v14  ;;  %2400 = vmatmul.msk.f32.gmra.mxu1 %vm152_vm0, %v6678_v14 }
 0x17f   :  { %v585_v49 = vpop.f32.mrf.mxu1  ;;  %2416 = vmatmul.msk.f32.gmra.mxu2 %vm152_vm0, %v6678_v14  ;;  %2432 = vmatmul.msk.f32.gmra.mxu3 %vm152_vm0, %v6678_v14 }
 0x181   :  { %v520_v10 = vpop.f32.mrf.mxu0 }
 0x184   :  { %v715_v41 = vpop.f32.mrf.mxu3 }
 0x186   :  { %v650_v45 = vpop.f32.mrf.mxu2  ;;  %2385 = vmatmul.msk.f32.gmra.mxu0 %vm152_vm0, %v6679_v55  ;;  %2401 = vmatmul.msk.f32.gmra.mxu1 %vm152_vm0, %v6679_v55 }
 0x187   :  { %v588_v48 = vpop.f32.mrf.mxu1  ;;  %2417 = vmatmul.msk.f32.gmra.mxu2 %vm152_vm0, %v6679_v55  ;;  %2433 = vmatmul.msk.f32.gmra.mxu3 %vm152_vm0, %v6679_v55  ;;  %v3877_v24 = vadd.f32 %v650_v45, %v3167_v40  ;;  %v3912_v45 = vadd.f32 %v712_v58, %v3154_v50 }
 0x188   :  { %v3850_v14 = vadd.f32 %v588_v48, %v3138_v37  ;;  %v3866_v48 = vadd.f32 %v520_v10, %v3167_v40  ;;  %v3882_v10 = vadd.f32 %v715_v41, %v3167_v40 }
 0x189   :  { %v523_v34 = vpop.f32.mrf.mxu0  ;;  %6688 = vst [vmem:[#allocation17_spill] sm:$0xff] %v3877_v24 }
 0x18a   :  { %v3845_v18 = vadd.f32 %v523_v34, %v3138_v37  ;;  %6681 = vst [vmem:[#allocation10_spill] sm:$0xff] %v3850_v14  ;;  %v6201_v17 = vmax.f32 %v3850_v14, 0.0 }
 0x18b   :  { %6686 = vst [vmem:[#allocation15_spill] sm:$0xff] %v3866_v48 }
 0x18c   :  { %6680 = vst [vmem:[#allocation21_spill] sm:$0xff] %v3845_v18  ;;  %v718_v38 = vpop.f32.mrf.mxu3 }
 0x18d   :  { %v3859_v35 = vadd.f32 %v718_v38, %v3138_v37  ;;  %v3874_v38 = vadd.f32 %v585_v49, %v3167_v40  ;;  %6689 = vst [vmem:[#allocation107_spill] sm:$0xff] %v3882_v10  ;;  %v3892_v49 = vadd.f32 %v517_v36, %v3154_v50 }
 0x18e   :  { %v653_v53 = vpop.f32.mrf.mxu2  ;;  %6698 = vst [vmem:[#allocation114_spill] sm:$0xff] %v3912_v45 }
 0x18f   :  { %v3853_v27 = vadd.f32 %v653_v53, %v3138_v37  ;;  %6684 = vst [vmem:[#allocation13_spill] sm:$0xff] %v3859_v35  ;;  %v3861_v34 = vpop.f32.mrf.mxu1  ;;  %v6690_v53 = vmax.f32 %v3845_v18, 0.0 }
 0x190   :  { %6685 = vst [vmem:[#allocation14_spill] sm:$0xff] %v3861_v34  ;;  %v6692_v34 = vmax.f32 %v3859_v35, 0.0  ;;  %v6699_v35 = vmax.f32 %v3866_v48, 0.0  ;;  %v2515_v48 = vld [vmem:[%s6058_s1 + $0x58] sm:$0xff] }
 0x191   :  { %6682 = vst [vmem:[#allocation11_spill] sm:$0xff] %v3853_v27  ;;  %v3855_v21 = vpop.f32.mrf.mxu0  ;;  %v6202_v55 = vmax.f32 %v3853_v27, 0.0 }
 0x192   :  { %6683 = vst [vmem:[#allocation12_spill] sm:$0xff] %v3855_v21  ;;  %v2504_v21 = vld [vmem:[%s6058_s1] sm:$0xff] }
 0x193   :  { %2434 = vmatmul.msk.f32.vlgmr.msrb.gmra.mxu0 %vm152_vm0, %v2504_v21  ;;  %6687 = vst [vmem:[#allocation16_spill] sm:$0xff] %v3874_v38  ;;  %2450 = vmatmul.msk.f32.vlgmr.msrb.gmra.mxu1 %vm152_vm0, %v2504_v21 }
 0x194   :  { %2466 = vmatmul.msk.f32.vlgmr.msrb.gmra.mxu2 %vm152_vm0, %v2504_v21  ;;  %2482 = vmatmul.msk.f32.vlgmr.msrb.gmra.mxu3 %vm152_vm0, %v2504_v21  ;;  %6691 = vst [vmem:[#allocation108_spill] sm:$0xff] %v3892_v49  ;;  %v3900_v21 = vadd.f32 %v582_v44, %v3154_v50  ;;  %v3907_v27 = vpop.f32.mrf.mxu3 }
 0x195   :  { %1593 = vmatpush.xpose.msrb.mxu0 %v6690_v53  ;;  %1613 = vmatpush.xpose.msrb.mxu1 %v6201_v17  ;;  %v3903_v53 = vadd.f32 %v647_v32, %v3154_v50  ;;  %v6205_v17 = vmax.f32 %v3874_v38, 0.0  ;;  %6696 = vst [vmem:[#allocation112_spill] sm:$0xff] %v3907_v27  ;;  %v3925_v32 = vadd.f32 %v3806_v39, %v3228_v33 }
 0x196   :  { %1633 = vmatpush.xpose.msrb.mxu2 %v6202_v55  ;;  %1653 = vmatpush.xpose.msrb.mxu3 %v6692_v34  ;;  %v3897_v41 = vpop.f32.mrf.mxu2  ;;  %6694 = vst [vmem:[#allocation110_spill] sm:$0xff] %v3900_v21  ;;  %v6206_v55 = vmax.f32 %v3877_v24, 0.0  ;;  %v6207_v34 = vmax.f32 %v3882_v10, 0.0  ;;  %v6211_v39 = vmax.f32 %v3900_v21, 0.0  ;;  %v6212_v10 = vmax.f32 %v3912_v45, 0.0 }
 0x197   :  { %6693 = vst [vmem:[#allocation109_spill] sm:$0xff] %v3897_v41  ;;  %v3917_v44 = vpop.f32.mrf.mxu1  ;;  %v6210_v58 = vmax.f32 %v3903_v53, 0.0  ;;  %v2516_v41 = vld [vmem:[%s6058_s1 + $0x60] sm:$0xff] }
 0x198   :  { %6695 = vst [vmem:[#allocation111_spill] sm:$0xff] %v3903_v53 }
 0x199   :  { %v3909_v36 = vpop.f32.mrf.mxu0  ;;  %1594 = vmatpush.xpose.msrb.mxu0 %v6699_v35  ;;  %6700 = vst [vmem:[#allocation115_spill] sm:$0xff] %v3917_v44  ;;  %1614 = vmatpush.xpose.msrb.mxu1 %v6205_v17  ;;  %v2505_v35 = vld [vmem:[%s6058_s1 + $0x8] sm:$0xff]  ;;  %v3936_v17 = vadd.f32 %v3808_v6, %v3228_v33  ;;  %v6705_v6 = vmax.f32 %v3892_v49, 0.0 }
 0x19a   :  { %6697 = vst [vmem:[#allocation113_spill] sm:$0xff] %v3909_v36  ;;  %1634 = vmatpush.xpose.msrb.mxu2 %v6206_v55  ;;  %1654 = vmatpush.xpose.msrb.mxu3 %v6207_v34  ;;  %v3940_v55 = vadd.f32 %v3818_v57, %v3228_v33  ;;  %v3948_v34 = vadd.f32 %v3820_v0, %v3228_v33  ;;  %v2517_v44 = vld [vmem:[%s6058_s1 + $0x68] sm:$0xff] }
 0x19b   :  { %6701 = vst [vmem:[#allocation116_spill] sm:$0xff] %v3925_v32  ;;  %2435 = vmatmul.msk.f32.gmra.mxu0 %vm152_vm0, %v2505_v35  ;;  %2451 = vmatmul.msk.f32.gmra.mxu1 %vm152_vm0, %v2505_v35  ;;  %v3960_v57 = vadd.f32 %v3790_v12, %v3198_v46 }
 0x19c   :  { %6702 = vst [vmem:[#allocation117_spill] sm:$0xff] %v3936_v17  ;;  %2467 = vmatmul.msk.f32.gmra.mxu2 %vm152_vm0, %v2505_v35  ;;  %2483 = vmatmul.msk.f32.gmra.mxu3 %vm152_vm0, %v2505_v35  ;;  %v3969_v35 = vadd.f32 %v3792_v43, %v3198_v46  ;;  %v6216_v12 = vmax.f32 %v3940_v55, 0.0  ;;  %v6217_v45 = vmax.f32 %v3948_v34, 0.0  ;;  %v6713_v43 = vmax.f32 %v3925_v32, 0.0  ;;  %v6796_v32 = vld [vmem:[#allocation39_spill] sm:$0xff] }
 0x19d   :  { %6703 = vst [vmem:[#allocation118_spill] sm:$0xff] %v3940_v55  ;;  %1595 = vmatpush.xpose.msrb.mxu0 %v6705_v6  ;;  %1615 = vmatpush.xpose.msrb.mxu1 %v6211_v39  ;;  %v3973_v6 = vadd.f32 %v3802_v15, %v3198_v46  ;;  %v3977_v39 = vpop.f32.mrf.mxu3  ;;  %v3996_v15 = vadd.f32 %v3774_v54, %v3302_v1 }
 0x19e   :  { %6704 = vst [vmem:[#allocation119_spill] sm:$0xff] %v3948_v34  ;;  %1635 = vmatpush.xpose.msrb.mxu2 %v6210_v58  ;;  %1655 = vmatpush.xpose.msrb.mxu3 %v6212_v10  ;;  %v3965_v24 = vpop.f32.mrf.mxu2  ;;  %v6215_v58 = vmax.f32 %v3936_v17, 0.0  ;;  %v3983_v10 = vadd.f32 %v3804_v62, %v3198_v46  ;;  %v6221_v54 = vmax.f32 %v3969_v35, 0.0 }
 0x19f   :  { %6706 = vst [vmem:[#allocation120_spill] sm:$0xff] %v3960_v57  ;;  %v3988_v53 = vpop.f32.mrf.mxu1  ;;  %v6220_v62 = vmax.f32 %v3973_v6, 0.0 }
 0x1a0   :  { %6707 = vst [vmem:[#allocation121_spill] sm:$0xff] %v3965_v24  ;;  %v6222_v34 = vmax.f32 %v3983_v10, 0.0 }
 0x1a1   :  { %6708 = vst [vmem:[#allocation122_spill] sm:$0xff] %v3969_v35  ;;  %v3979_v0 = vpop.f32.mrf.mxu0  ;;  %1596 = vmatpush.xpose.msrb.mxu0 %v6713_v43  ;;  %1616 = vmatpush.xpose.msrb.mxu1 %v6215_v58  ;;  %v2506_v43 = vld [vmem:[%s6058_s1 + $0x10] sm:$0xff]  ;;  %v4007_v58 = vadd.f32 %v3776_v61, %v3302_v1  ;;  %v6719_v61 = vmax.f32 %v3960_v57, 0.0 }
 0x1a2   :  { %6709 = vst [vmem:[#allocation123_spill] sm:$0xff] %v3973_v6  ;;  %1636 = vmatpush.xpose.msrb.mxu2 %v6216_v12  ;;  %1656 = vmatpush.xpose.msrb.mxu3 %v6217_v45  ;;  %v4011_v12 = vadd.f32 %v3786_v42, %v3302_v1  ;;  %v4019_v45 = vadd.f32 %v3788_v25, %v3302_v1 }
 0x1a3   :  { %6710 = vst [vmem:[#allocation124_spill] sm:$0xff] %v3977_v39  ;;  %2436 = vmatmul.msk.f32.gmra.mxu0 %vm152_vm0, %v2506_v43  ;;  %2452 = vmatmul.msk.f32.gmra.mxu1 %vm152_vm0, %v2506_v43  ;;  %v4031_v42 = vadd.f32 %v3758_v29, %v3340_v28 }
 0x1a4   :  { %6711 = vst [vmem:[#allocation125_spill] sm:$0xff] %v3979_v0  ;;  %2468 = vmatmul.msk.f32.gmra.mxu2 %vm152_vm0, %v2506_v43  ;;  %2484 = vmatmul.msk.f32.gmra.mxu3 %vm152_vm0, %v2506_v43  ;;  %v4040_v43 = vadd.f32 %v3760_v22, %v3340_v28  ;;  %v6226_v29 = vmax.f32 %v4011_v12, 0.0  ;;  %v6727_v22 = vmax.f32 %v3996_v15, 0.0 }
 0x1a5   :  { %6712 = vst [vmem:[#allocation126_spill] sm:$0xff] %v3983_v10  ;;  %1597 = vmatpush.xpose.msrb.mxu0 %v6719_v61  ;;  %1617 = vmatpush.xpose.msrb.mxu1 %v6221_v54  ;;  %v4044_v61 = vadd.f32 %v3770_v52, %v3340_v28  ;;  %v4048_v54 = vpop.f32.mrf.mxu3  ;;  %v6227_v10 = vmax.f32 %v4019_v45, 0.0  ;;  %v4067_v52 = vadd.f32 %v3733_v31, %v3378_v23 }
 0x1a6   :  { %6714 = vst [vmem:[#allocation127_spill] sm:$0xff] %v3988_v53  ;;  %1637 = vmatpush.xpose.msrb.mxu2 %v6220_v62  ;;  %1657 = vmatpush.xpose.msrb.mxu3 %v6222_v34  ;;  %v4036_v55 = vpop.f32.mrf.mxu2  ;;  %v6225_v62 = vmax.f32 %v4007_v58, 0.0  ;;  %v4054_v34 = vadd.f32 %v3772_v20, %v3340_v28  ;;  %v6231_v31 = vmax.f32 %v4040_v43, 0.0 }
 0x1a7   :  { %6715 = vst [vmem:[#allocation128_spill] sm:$0xff] %v3996_v15  ;;  %v4059_v6 = vpop.f32.mrf.mxu1  ;;  %v6230_v20 = vmax.f32 %v4044_v61, 0.0  ;;  %v6786_v15 = vld [vmem:[#allocation51_spill] sm:$0xff] }
 0x1a8   :  { %6716 = vst [vmem:[#allocation129_spill] sm:$0xff] %v4007_v58 }
 0x1a9   :  { %6717 = vst [vmem:[#allocation130_spill] sm:$0xff] %v4011_v12  ;;  %v4050_v25 = vpop.f32.mrf.mxu0  ;;  %1598 = vmatpush.xpose.msrb.mxu0 %v6727_v22  ;;  %1618 = vmatpush.xpose.msrb.mxu1 %v6225_v62  ;;  %v2507_v22 = vld [vmem:[%s6058_s1 + $0x18] sm:$0xff]  ;;  %v4078_v62 = vadd.f32 %v3738_v47, %v3378_v23  ;;  %v6733_v47 = vmax.f32 %v4031_v42, 0.0 }
 0x1aa   :  { %6718 = vst [vmem:[#allocation131_spill] sm:$0xff] %v4019_v45  ;;  %1638 = vmatpush.xpose.msrb.mxu2 %v6226_v29  ;;  %1658 = vmatpush.xpose.msrb.mxu3 %v6227_v10  ;;  %v4082_v29 = vadd.f32 %v3754_v59, %v3378_v23  ;;  %v4090_v10 = vadd.f32 %v3756_v16, %v3378_v23  ;;  %v6232_v45 = vmax.f32 %v4054_v34, 0.0 }
 0x1ab   :  { %6720 = vst [vmem:[#allocation132_spill] sm:$0xff] %v4031_v42  ;;  %2437 = vmatmul.msk.f32.gmra.mxu0 %vm152_vm0, %v2507_v22  ;;  %2453 = vmatmul.msk.f32.gmra.mxu1 %vm152_vm0, %v2507_v22  ;;  %v4102_v59 = vadd.f32 %v3669_v9, %v3416_v19  ;;  %v6776_v42 = vld [vmem:[#allocation63_spill] sm:$0xff] }
 0x1ac   :  { %6721 = vst [vmem:[#allocation133_spill] sm:$0xff] %v4036_v55  ;;  %2469 = vmatmul.msk.f32.gmra.mxu2 %vm152_vm0, %v2507_v22  ;;  %2485 = vmatmul.msk.f32.gmra.mxu3 %vm152_vm0, %v2507_v22  ;;  %v4111_v22 = vadd.f32 %v3682_v5, %v3416_v19  ;;  %v6236_v9 = vmax.f32 %v4082_v29, 0.0  ;;  %v6741_v5 = vmax.f32 %v4067_v52, 0.0  ;;  %v2518_v55 = vld [vmem:[%s6058_s1 + $0x70] sm:$0xff] }
 0x1ad   :  { %6722 = vst [vmem:[#allocation134_spill] sm:$0xff] %v4040_v43  ;;  %1599 = vmatpush.xpose.msrb.mxu0 %v6733_v47  ;;  %1619 = vmatpush.xpose.msrb.mxu1 %v6231_v31  ;;  %v4115_v47 = vadd.f32 %v3726_v56, %v3416_v19  ;;  %v4119_v31 = vpop.f32.mrf.mxu3  ;;  %v4138_v56 = vadd.f32 %v3595_v4, %v3454_v13 }
 0x1ae   :  { %6723 = vst [vmem:[#allocation135_spill] sm:$0xff] %v4044_v61  ;;  %1639 = vmatpush.xpose.msrb.mxu2 %v6230_v20  ;;  %1659 = vmatpush.xpose.msrb.mxu3 %v6232_v45  ;;  %v4107_v12 = vpop.f32.mrf.mxu2  ;;  %v6235_v20 = vmax.f32 %v4078_v62, 0.0  ;;  %v4125_v45 = vadd.f32 %v3729_v51, %v3416_v19  ;;  %v6241_v4 = vmax.f32 %v4111_v22, 0.0 }
 0x1af   :  { %6724 = vst [vmem:[#allocation136_spill] sm:$0xff] %v4048_v54  ;;  %v4130_v61 = vpop.f32.mrf.mxu1  ;;  %v6240_v51 = vmax.f32 %v4115_v47, 0.0 }
 0x1b0   :  { %6725 = vst [vmem:[#allocation137_spill] sm:$0xff] %v4050_v25 }
 0x1b1   :  { %6726 = vst [vmem:[#allocation138_spill] sm:$0xff] %v4054_v34  ;;  %v4121_v16 = vpop.f32.mrf.mxu0  ;;  %v6237_v34 = vmax.f32 %v4090_v10, 0.0  ;;  %1600 = vmatpush.xpose.msrb.mxu0 %v6741_v5  ;;  %1620 = vmatpush.xpose.msrb.mxu1 %v6235_v20  ;;  %v2508_v5 = vld [vmem:[%s6058_s1 + $0x20] sm:$0xff]  ;;  %v4149_v20 = vadd.f32 %v3606_v63, %v3454_v13  ;;  %v6747_v63 = vmax.f32 %v4102_v59, 0.0 }
 0x1b2   :  { %6728 = vst [vmem:[#allocation139_spill] sm:$0xff] %v4059_v6  ;;  %1640 = vmatpush.xpose.msrb.mxu2 %v6236_v9  ;;  %v4153_v9 = vadd.f32 %v3654_v60, %v3454_v13  ;;  %v4173_v60 = vadd.f32 %v3519_v7, %v3492_v8 }
 0x1b3   :  { %6729 = vst [vmem:[#allocation140_spill] sm:$0xff] %v4067_v52  ;;  %1660 = vmatpush.xpose.msrb.mxu3 %v6237_v34  ;;  %2438 = vmatmul.msk.f32.gmra.mxu0 %vm152_vm0, %v2508_v5  ;;  %v4161_v34 = vadd.f32 %v3666_v30, %v3454_v13 }
 0x1b4   :  { %6730 = vst [vmem:[#allocation141_spill] sm:$0xff] %v4078_v62  ;;  %2454 = vmatmul.msk.f32.gmra.mxu1 %vm152_vm0, %v2508_v5  ;;  %2470 = vmatmul.msk.f32.gmra.mxu2 %vm152_vm0, %v2508_v5  ;;  %v6248_v7 = vmax.f32 %v4153_v9, 0.0 }
 0x1b5   :  { %6731 = vst [vmem:[#allocation142_spill] sm:$0xff] %v4082_v29  ;;  %2486 = vmatmul.msk.f32.gmra.mxu3 %vm152_vm0, %v2508_v5  ;;  %1601 = vmatpush.xpose.msrb.mxu0 %v6747_v63  ;;  %v4182_v5 = vadd.f32 %v3528_v26, %v3492_v8  ;;  %v4186_v63 = vadd.f32 %v3581_v2, %v3492_v8  ;;  %v6754_v26 = vmax.f32 %v4138_v56, 0.0  ;;  %v6755_v2 = vld [vmem:[#allocation87_spill] sm:$0xff] }
 0x1b6   :  { %6732 = vst [vmem:[#allocation143_spill] sm:$0xff] %v4090_v10  ;;  %v6242_v10 = vmax.f32 %v4125_v45, 0.0  ;;  %1621 = vmatpush.xpose.msrb.mxu1 %v6241_v4  ;;  %1641 = vmatpush.xpose.msrb.mxu2 %v6240_v51  ;;  %v4178_v29 = vpop.f32.mrf.mxu2  ;;  %v6246_v51 = vmax.f32 %v4149_v20, 0.0  ;;  %v4190_v4 = vpop.f32.mrf.mxu3 }
 0x1b7   :  { %6734 = vst [vmem:[#allocation144_spill] sm:$0xff] %v4102_v59  ;;  %v6765_v59 = vld [vmem:[#allocation75_spill] sm:$0xff] }
 0x1b8   :  { %6735 = vst [vmem:[#allocation145_spill] sm:$0xff] %v4107_v12  ;;  %1661 = vmatpush.xpose.msrb.mxu3 %v6242_v10  ;;  %v4196_v10 = vadd.f32 %v3593_v11, %v3492_v8  ;;  %v6258_v11 = vmax.f32 %v4186_v63, 0.0 }
 0x1b9   :  { %6736 = vst [vmem:[#allocation146_spill] sm:$0xff] %v4111_v22  ;;  %v4192_v30 = vpop.f32.mrf.mxu0  ;;  %1602 = vmatpush.xpose.msrb.mxu0 %v6754_v26  ;;  %v4209_v22 = vadd.f32 %v6755_v2, %v3530_v3  ;;  %v2509_v26 = vld [vmem:[%s6058_s1 + $0x28] sm:$0xff]  ;;  %v6256_v2 = vmax.f32 %v4182_v5, 0.0 }
 0x1ba   :  { %6737 = vst [vmem:[#allocation147_spill] sm:$0xff] %v4115_v47  ;;  %v4201_v47 = vpop.f32.mrf.mxu1  ;;  %1622 = vmatpush.xpose.msrb.mxu1 %v6246_v51  ;;  %1642 = vmatpush.xpose.msrb.mxu2 %v6248_v7  ;;  %v6757_v51 = vld [vmem:[#allocation89_spill] sm:$0xff]  ;;  %v6759_v7 = vld [vmem:[#allocation95_spill] sm:$0xff] }
 0x1bb   :  { %6738 = vst [vmem:[#allocation148_spill] sm:$0xff] %v4119_v31  ;;  %2439 = vmatmul.msk.f32.gmra.mxu0 %vm152_vm0, %v2509_v26  ;;  %v2519_v31 = vld [vmem:[%s6058_s1 + $0x78] sm:$0xff] }
 0x1bc   :  { %6739 = vst [vmem:[#allocation149_spill] sm:$0xff] %v4121_v16  ;;  %2455 = vmatmul.msk.f32.gmra.mxu1 %vm152_vm0, %v2509_v26  ;;  %2471 = vmatmul.msk.f32.gmra.mxu2 %vm152_vm0, %v2509_v26 }
 0x1bd   :  { %6740 = vst [vmem:[#allocation150_spill] sm:$0xff] %v4125_v45  ;;  %v6250_v45 = vmax.f32 %v4161_v34, 0.0  ;;  %2487 = vmatmul.msk.f32.gmra.mxu3 %vm152_vm0, %v2509_v26  ;;  %v6767_v26 = vld [vmem:[#allocation77_spill] sm:$0xff] }
 0x1be   :  { %6742 = vst [vmem:[#allocation151_spill] sm:$0xff] %v4130_v61  ;;  %1623 = vmatpush.xpose.msrb.mxu1 %v6256_v2  ;;  %1643 = vmatpush.xpose.msrb.mxu2 %v6258_v11  ;;  %v4249_v52 = vpop.f32.mrf.mxu2  ;;  %v6769_v2 = vld [vmem:[#allocation83_spill] sm:$0xff] }
 0x1bf   :  { %6743 = vst [vmem:[#allocation152_spill] sm:$0xff] %v4138_v56  ;;  %1662 = vmatpush.xpose.msrb.mxu3 %v6250_v45  ;;  %v6761_v45 = vld [vmem:[#allocation98_spill] sm:$0xff]  ;;  %v6260_v56 = vmax.f32 %v4196_v10, 0.0 }
 0x1c0   :  { %6744 = vst [vmem:[#allocation153_spill] sm:$0xff] %v4149_v20  ;;  %v4220_v20 = vadd.f32 %v6757_v51, %v3530_v3  ;;  %v6763_v51 = vmax.f32 %v4173_v60, 0.0 }
 0x1c1   :  { %6745 = vst [vmem:[#allocation154_spill] sm:$0xff] %v4153_v9  ;;  %v4224_v9 = vadd.f32 %v6759_v7, %v3530_v3  ;;  %v6764_v7 = vld [vmem:[#allocation104_spill] sm:$0xff] }
 0x1c2   :  { %6746 = vst [vmem:[#allocation155_spill] sm:$0xff] %v4161_v34  ;;  %v4232_v34 = vadd.f32 %v6761_v45, %v3530_v3  ;;  %1603 = vmatpush.xpose.msrb.mxu0 %v6763_v51  ;;  %v4244_v62 = vadd.f32 %v6765_v59, %v6764_v7  ;;  %v4253_v51 = vadd.f32 %v6767_v26, %v6764_v7  ;;  %v6266_v11 = vmax.f32 %v4220_v20, 0.0  ;;  %v4263_v45 = vpop.f32.mrf.mxu0  ;;  %v4272_v43 = vpop.f32.mrf.mxu1 }
 0x1c3   :  { %6748 = vst [vmem:[#allocation156_spill] sm:$0xff] %v4173_v60  ;;  %1663 = vmatpush.xpose.msrb.mxu3 %v6260_v56  ;;  %v6268_v59 = vmax.f32 %v4224_v9, 0.0  ;;  %v6772_v56 = vld [vmem:[#allocation86_spill] sm:$0xff]  ;;  %v6774_v26 = vmax.f32 %v4209_v22, 0.0 }
 0x1c4   :  { %6749 = vst [vmem:[#allocation157_spill] sm:$0xff] %v4178_v29  ;;  %v6270_v60 = vmax.f32 %v4232_v34, 0.0  ;;  %1624 = vmatpush.xpose.msrb.mxu1 %v6266_v11  ;;  %v6778_v11 = vld [vmem:[#allocation65_spill] sm:$0xff] }
 0x1c5   :  { %6750 = vst [vmem:[#allocation158_spill] sm:$0xff] %v4182_v5  ;;  %v4257_v5 = vadd.f32 %v6769_v2, %v6764_v7  ;;  %1644 = vmatpush.xpose.msrb.mxu2 %v6268_v59  ;;  %v6775_v2 = vld [vmem:[#allocation105_spill] sm:$0xff]  ;;  %v6780_v59 = vld [vmem:[#allocation71_spill] sm:$0xff] }
 0x1c6   :  { %6751 = vst [vmem:[#allocation159_spill] sm:$0xff] %v4186_v63  ;;  %v4261_v63 = vpop.f32.mrf.mxu3  ;;  %1604 = vmatpush.xpose.msrb.mxu0 %v6774_v26  ;;  %v4280_v58 = vadd.f32 %v6776_v42, %v6775_v2  ;;  %v2510_v26 = vld [vmem:[%s6058_s1 + $0x30] sm:$0xff]  ;;  %v6276_v42 = vmax.f32 %v4253_v51, 0.0  ;;  %v4320_v57 = vpop.f32.mrf.mxu2  ;;  %v1497_v29 = vld [vmem:[%s6060_s3] sm:$0xff] }
 0x1c7   :  { %6752 = vst [vmem:[#allocation160_spill] sm:$0xff] %v4190_v4  ;;  %1664 = vmatpush.xpose.msrb.mxu3 %v6270_v60  ;;  %2440 = vmatmul.msk.f32.gmra.mxu0 %vm152_vm0, %v2510_v26  ;;  %v6782_v60 = vld [vmem:[#allocation74_spill] sm:$0xff] }
 0x1c8   :  { %6753 = vst [vmem:[#allocation161_spill] sm:$0xff] %v4196_v10  ;;  %v4267_v10 = vadd.f32 %v6772_v56, %v6764_v7  ;;  %v6278_v56 = vmax.f32 %v4257_v5, 0.0  ;;  %2456 = vmatmul.msk.f32.gmra.mxu1 %vm152_vm0, %v2510_v26  ;;  %2472 = vmatmul.msk.f32.gmra.mxu2 %vm152_vm0, %v2510_v26 }
 0x1c9   :  { %6756 = vst [vmem:[#allocation87_spill] sm:$0xff] %v4209_v22  ;;  %2488 = vmatmul.msk.f32.gmra.mxu3 %vm152_vm0, %v2510_v26  ;;  %1625 = vmatpush.xpose.msrb.mxu1 %v6276_v42  ;;  %v6788_v26 = vld [vmem:[#allocation53_spill] sm:$0xff]  ;;  %v6790_v42 = vld [vmem:[#allocation59_spill] sm:$0xff] }
 0x1ca   :  { %6758 = vst [vmem:[#allocation89_spill] sm:$0xff] %v4220_v20  ;;  %v4291_v20 = vadd.f32 %v6778_v11, %v6775_v2  ;;  %v6280_v22 = vmax.f32 %v4267_v10, 0.0  ;;  %v6784_v11 = vmax.f32 %v4244_v62, 0.0  ;;  %1645 = vmatpush.xpose.msrb.mxu2 %v6278_v56  ;;  %v4343_v17 = vpop.f32.mrf.mxu1 }
 0x1cb   :  { %6760 = vst [vmem:[#allocation95_spill] sm:$0xff] %v4224_v9  ;;  %v4295_v9 = vadd.f32 %v6780_v59, %v6775_v2  ;;  %v6785_v59 = vld [vmem:[#allocation27_spill] sm:$0xff] }
 0x1cc   :  { %6762 = vst [vmem:[#allocation98_spill] sm:$0xff] %v4232_v34  ;;  %v4303_v34 = vadd.f32 %v6782_v60, %v6775_v2  ;;  %1605 = vmatpush.xpose.msrb.mxu0 %v6784_v11  ;;  %v4315_v35 = vadd.f32 %v6786_v15, %v6785_v59  ;;  %1665 = vmatpush.xpose.msrb.mxu3 %v6280_v22  ;;  %v6286_v56 = vmax.f32 %v4291_v20, 0.0  ;;  %v4334_v60 = vpop.f32.mrf.mxu0  ;;  %v6792_v22 = vld [vmem:[#allocation62_spill] sm:$0xff] }
 0x1cd   :  { %6766 = vst [vmem:[#allocation75_spill] sm:$0xff] %v4244_v62  ;;  %v4324_v11 = vadd.f32 %v6788_v26, %v6785_v59  ;;  %v6288_v15 = vmax.f32 %v4295_v9, 0.0  ;;  %v6794_v26 = vmax.f32 %v4280_v58, 0.0 }
 0x1ce   :  { %6768 = vst [vmem:[#allocation77_spill] sm:$0xff] %v4253_v51  ;;  %v4328_v51 = vadd.f32 %v6790_v42, %v6785_v59  ;;  %v6290_v62 = vmax.f32 %v4303_v34, 0.0  ;;  %1626 = vmatpush.xpose.msrb.mxu1 %v6286_v56  ;;  %v6795_v42 = vld [vmem:[#allocation106_spill] sm:$0xff]  ;;  %v6798_v56 = vld [vmem:[#allocation41_spill] sm:$0xff] }
 0x1cf   :  { %6770 = vst [vmem:[#allocation83_spill] sm:$0xff] %v4257_v5  ;;  %v4332_v5 = vpop.f32.mrf.mxu3  ;;  %1646 = vmatpush.xpose.msrb.mxu2 %v6288_v15  ;;  %v4351_v21 = vadd.f32 %v6796_v32, %v6795_v42  ;;  %v6800_v15 = vld [vmem:[#allocation47_spill] sm:$0xff]  ;;  %v6295_v32 = vmax.f32 %v4324_v11, 0.0 }
 0x1d0   :  { %6771 = vst [vmem:[#allocation162_spill] sm:$0xff] %v4261_v63  ;;  %1606 = vmatpush.xpose.msrb.mxu0 %v6794_v26  ;;  %1666 = vmatpush.xpose.msrb.mxu3 %v6290_v62  ;;  %v2511_v26 = vld [vmem:[%s6058_s1 + $0x38] sm:$0xff]  ;;  %v6802_v62 = vld [vmem:[#allocation50_spill] sm:$0xff] }
 0x1d1   :  { %6773 = vst [vmem:[#allocation86_spill] sm:$0xff] %v4267_v10  ;;  %v4338_v10 = vadd.f32 %v6792_v22, %v6785_v59  ;;  %2441 = vmatmul.msk.f32.gmra.mxu0 %vm152_vm0, %v2511_v26  ;;  %v6296_v22 = vmax.f32 %v4328_v51, 0.0  ;;  %2457 = vmatmul.msk.f32.gmra.mxu1 %vm152_vm0, %v2511_v26 }
 0x1d2   :  { %6777 = vst [vmem:[#allocation63_spill] sm:$0xff] %v4280_v58  ;;  %2473 = vmatmul.msk.f32.gmra.mxu2 %vm152_vm0, %v2511_v26  ;;  %2489 = vmatmul.msk.f32.gmra.mxu3 %vm152_vm0, %v2511_v26 }
 0x1d3   :  { %6779 = vst [vmem:[#allocation65_spill] sm:$0xff] %v4291_v20  ;;  %v4362_v20 = vadd.f32 %v6798_v56, %v6795_v42  ;;  %v6297_v58 = vmax.f32 %v4338_v10, 0.0  ;;  %v6804_v56 = vmax.f32 %v4315_v35, 0.0  ;;  %1627 = vmatpush.xpose.msrb.mxu1 %v6295_v32  ;;  %1647 = vmatpush.xpose.msrb.mxu2 %v6296_v22  ;;  %v4398_v22 = vpop.f32.mrf.mxu1 }
 0x1d4   :  { %6781 = vst [vmem:[#allocation71_spill] sm:$0xff] %v4295_v9  ;;  %v4366_v9 = vadd.f32 %v6800_v15, %v6795_v42  ;;  %v6298_v15 = vmax.f32 %v4351_v21, 0.0 }
 0x1d5   :  { %6783 = vst [vmem:[#allocation74_spill] sm:$0xff] %v4303_v34  ;;  %v4374_v34 = vadd.f32 %v6802_v62, %v6795_v42  ;;  %1607 = vmatpush.xpose.msrb.mxu0 %v6804_v56  ;;  %1667 = vmatpush.xpose.msrb.mxu3 %v6297_v58  ;;  %v4387_v62 = vpop.f32.mrf.mxu2  ;;  %v6299_v49 = vmax.f32 %v4362_v20, 0.0  ;;  %v4393_v56 = vpop.f32.mrf.mxu0  ;;  %v2512_v58 = vld [vmem:[%s6058_s1 + $0x40] sm:$0xff] }
 0x1d6   :  { %6787 = vst [vmem:[#allocation51_spill] sm:$0xff] %v4315_v35  ;;  %v6300_v26 = vmax.f32 %v4366_v9, 0.0 }
 0x1d7   :  { %6789 = vst [vmem:[#allocation53_spill] sm:$0xff] %v4324_v11  ;;  %v4391_v38 = vpop.f32.mrf.mxu3  ;;  %v6302_v32 = vmax.f32 %v4374_v34, 0.0  ;;  %1628 = vmatpush.xpose.msrb.mxu1 %v6299_v49 }
 0x1d8   :  { %6791 = vst [vmem:[#allocation59_spill] sm:$0xff] %v4328_v51  ;;  %1648 = vmatpush.xpose.msrb.mxu2 %v6300_v26 }
 0x1d9   :  { %6793 = vst [vmem:[#allocation62_spill] sm:$0xff] %v4338_v10  ;;  %1608 = vmatpush.xpose.msrb.mxu0 %v6298_v15  ;;  %1668 = vmatpush.xpose.msrb.mxu3 %v6302_v32  ;;  %v2513_v32 = vld [vmem:[%s6058_s1 + $0x48] sm:$0xff] }
 0x1da   :  { %6797 = vst [vmem:[#allocation39_spill] sm:$0xff] %v4351_v21  ;;  %2442 = vmatmul.msk.f32.gmra.mxu0 %vm152_vm0, %v2512_v58  ;;  %2458 = vmatmul.msk.f32.gmra.mxu1 %vm152_vm0, %v2512_v58 }
 0x1db   :  { %6799 = vst [vmem:[#allocation41_spill] sm:$0xff] %v4362_v20  ;;  %2474 = vmatmul.msk.f32.gmra.mxu2 %vm152_vm0, %v2512_v58  ;;  %2490 = vmatmul.msk.f32.gmra.mxu3 %vm152_vm0, %v2512_v58  ;;  %v2514_v20 = vld [vmem:[%s6058_s1 + $0x50] sm:$0xff] }
 0x1dc   :  { %6801 = vst [vmem:[#allocation47_spill] sm:$0xff] %v4366_v9 }
 0x1dd   :  { %6803 = vst [vmem:[#allocation50_spill] sm:$0xff] %v4374_v34  ;;  %v4413_v15 = vpop.f32.mrf.mxu2  ;;  %v4417_v26 = vpop.f32.mrf.mxu0 }
 0x1de   :  { %v4419_v34 = vpop.f32.mrf.mxu1 }
 0x1df   :  { %v4415_v49 = vpop.f32.mrf.mxu3 }
 0x1e2   :  { %2443 = vmatmul.msk.f32.gmra.mxu0 %vm152_vm0, %v2513_v32  ;;  %2459 = vmatmul.msk.f32.gmra.mxu1 %vm152_vm0, %v2513_v32 }
 0x1e3   :  { %2475 = vmatmul.msk.f32.gmra.mxu2 %vm152_vm0, %v2513_v32  ;;  %2491 = vmatmul.msk.f32.gmra.mxu3 %vm152_vm0, %v2513_v32 }
 0x1e5   :  { %v4428_v58 = vpop.f32.mrf.mxu2  ;;  %v4432_v10 = vpop.f32.mrf.mxu0 }
 0x1e6   :  { %v4434_v51 = vpop.f32.mrf.mxu1 }
 0x1e7   :  { %v4430_v9 = vpop.f32.mrf.mxu3 }
 0x1ea   :  { %2444 = vmatmul.msk.f32.gmra.mxu0 %vm152_vm0, %v2514_v20  ;;  %2460 = vmatmul.msk.f32.gmra.mxu1 %vm152_vm0, %v2514_v20 }
 0x1eb   :  { %2476 = vmatmul.msk.f32.gmra.mxu2 %vm152_vm0, %v2514_v20  ;;  %2492 = vmatmul.msk.f32.gmra.mxu3 %vm152_vm0, %v2514_v20 }
 0x1ed   :  { %v4443_v32 = vpop.f32.mrf.mxu2  ;;  %v4447_v11 = vpop.f32.mrf.mxu0 }
 0x1ee   :  { %v4449_v35 = vpop.f32.mrf.mxu1 }
 0x1ef   :  { %v4445_v21 = vpop.f32.mrf.mxu3 }
 0x1f2   :  { %2445 = vmatmul.msk.f32.gmra.mxu0 %vm152_vm0, %v2515_v48  ;;  %2461 = vmatmul.msk.f32.gmra.mxu1 %vm152_vm0, %v2515_v48 }
 0x1f3   :  { %2477 = vmatmul.msk.f32.gmra.mxu2 %vm152_vm0, %v2515_v48  ;;  %2493 = vmatmul.msk.f32.gmra.mxu3 %vm152_vm0, %v2515_v48 }
 0x1f5   :  { %v4458_v20 = vpop.f32.mrf.mxu2  ;;  %v4462_v18 = vpop.f32.mrf.mxu0 }
 0x1f6   :  { %v4464_v27 = vpop.f32.mrf.mxu1 }
 0x1f7   :  { %v4460_v14 = vpop.f32.mrf.mxu3 }
 0x1fa   :  { %2446 = vmatmul.msk.f32.gmra.mxu0 %vm152_vm0, %v2516_v41  ;;  %2462 = vmatmul.msk.f32.gmra.mxu1 %vm152_vm0, %v2516_v41 }
 0x1fb   :  { %2478 = vmatmul.msk.f32.gmra.mxu2 %vm152_vm0, %v2516_v41  ;;  %2494 = vmatmul.msk.f32.gmra.mxu3 %vm152_vm0, %v2516_v41 }
 0x1fd   :  { %v4473_v48 = vpop.f32.mrf.mxu2  ;;  %v777_v39 = vpop.f32.mrf.mxu0 }
 0x1fe   :  { %v842_v24 = vpop.f32.mrf.mxu1 }
 0x1ff   :  { %v4475_v42 = vpop.f32.mrf.mxu3 }
 0x202   :  { %2447 = vmatmul.msk.f32.gmra.mxu0 %vm152_vm0, %v2517_v44  ;;  %2463 = vmatmul.msk.f32.gmra.mxu1 %vm152_vm0, %v2517_v44 }
 0x203   :  { %2479 = vmatmul.msk.f32.gmra.mxu2 %vm152_vm0, %v2517_v44  ;;  %2495 = vmatmul.msk.f32.gmra.mxu3 %vm152_vm0, %v2517_v44 }
 0x205   :  { %v907_v36 = vpop.f32.mrf.mxu2  ;;  %v780_v59 = vpop.f32.mrf.mxu0 }
 0x206   :  { %v845_v54 = vpop.f32.mrf.mxu1  ;;  %v4528_v16 = vadd.f32 %v780_v59, %v3167_v40  ;;  %v4560_v59 = vadd.f32 %v907_v36, %v3154_v50  ;;  %v4582_v36 = vadd.f32 %v4462_v18, %v3228_v33  ;;  %v4599_v18 = vadd.f32 %v4475_v42, %v3228_v33 }
 0x207   :  { %v972_v41 = vpop.f32.mrf.mxu3 }
 0x208   :  { %6811 = vst [vmem:[#allocation169_spill] sm:$0xff] %v4528_v16 }
 0x209   :  { %6819 = vst [vmem:[#allocation176_spill] sm:$0xff] %v4560_v59 }
 0x20a   :  { %2448 = vmatmul.msk.f32.gmra.mxu0 %vm152_vm0, %v2518_v55  ;;  %2464 = vmatmul.msk.f32.gmra.mxu1 %vm152_vm0, %v2518_v55  ;;  %6824 = vst [vmem:[#allocation181_spill] sm:$0xff] %v4582_v36 }
 0x20b   :  { %2480 = vmatmul.msk.f32.gmra.mxu2 %vm152_vm0, %v2518_v55  ;;  %2496 = vmatmul.msk.f32.gmra.mxu3 %vm152_vm0, %v2518_v55  ;;  %6827 = vst [vmem:[#allocation184_spill] sm:$0xff] %v4599_v18 }
 0x20d   :  { %v910_v53 = vpop.f32.mrf.mxu2  ;;  %v783_v2 = vpop.f32.mrf.mxu0 }
 0x20e   :  { %v848_v44 = vpop.f32.mrf.mxu1  ;;  %v4499_v12 = vadd.f32 %v783_v2, %v3138_v37  ;;  %v1498_v2 = vld [vmem:[%s6060_s3 + $0x8] sm:$0xff]  ;;  %v4536_v3 = vadd.f32 %v910_v53, %v3167_v40  ;;  %v4549_v53 = vadd.f32 %v777_v39, %v3154_v50 }
 0x20f   :  { %v975_v0 = vpop.f32.mrf.mxu3  ;;  %v4502_v6 = vadd.f32 %v848_v44, %v3138_v37  ;;  %v1499_v44 = vld [vmem:[%s6060_s3 + $0x10] sm:$0xff] }
 0x210   :  { %6805 = vst [vmem:[#allocation163_spill] sm:$0xff] %v4499_v12  ;;  %v4540_v63 = vadd.f32 %v975_v0, %v3167_v40 }
 0x211   :  { %6806 = vst [vmem:[#allocation164_spill] sm:$0xff] %v4502_v6 }
 0x212   :  { %2449 = vmatmul.msk.f32.gmra.mxu0 %vm152_vm0, %v2519_v31  ;;  %2465 = vmatmul.msk.f32.gmra.mxu1 %vm152_vm0, %v2519_v31  ;;  %6813 = vst [vmem:[#allocation171_spill] sm:$0xff] %v4536_v3 }
 0x213   :  { %2481 = vmatmul.msk.f32.gmra.mxu2 %vm152_vm0, %v2519_v31  ;;  %2497 = vmatmul.msk.f32.gmra.mxu3 %vm152_vm0, %v2519_v31  ;;  %6814 = vst [vmem:[#allocation172_spill] sm:$0xff] %v4540_v63 }
 0x214   :  { %6816 = vst [vmem:[#allocation173_spill] sm:$0xff] %v4549_v53 }
 0x215   :  { %v913_v55 = vpop.f32.mrf.mxu2  ;;  %v4507_v4 = vpop.f32.mrf.mxu0 }
 0x216   :  { %v4505_v25 = vadd.f32 %v913_v55, %v3138_v37  ;;  %6808 = vst [vmem:[#allocation166_spill] sm:$0xff] %v4507_v4  ;;  %v4515_v31 = vpop.f32.mrf.mxu1  ;;  %v1500_v4 = vld [vmem:[%s6060_s3 + $0x18] sm:$0xff]  ;;  %v6321_v55 = vmax.f32 %v4502_v6, 0.0 }
 0x217   :  { %v978_v7 = vpop.f32.mrf.mxu3  ;;  %6810 = vst [vmem:[#allocation168_spill] sm:$0xff] %v4515_v31 }
 0x218   :  { %6807 = vst [vmem:[#allocation165_spill] sm:$0xff] %v4505_v25  ;;  %v4513_v61 = vadd.f32 %v978_v7, %v3138_v37  ;;  %v6324_v7 = vmax.f32 %v4499_v12, 0.0  ;;  %v4533_v37 = vadd.f32 %v845_v54, %v3167_v40  ;;  %v6815_v54 = vmax.f32 %v4505_v25, 0.0 }
 0x21a   :  { %6809 = vst [vmem:[#allocation167_spill] sm:$0xff] %v4513_v61  ;;  %v6322_v31 = vmax.f32 %v4513_v61, 0.0  ;;  %1529 = vmatmul.f32.vlgmr.msra.gmra.mxu0 %v1497_v29  ;;  %1549 = vmatmul.f32.vlgmr.msra.gmra.mxu1 %v1498_v2  ;;  %v6323_v29 = vmax.f32 %v4528_v16, 0.0  ;;  %v6325_v2 = vmax.f32 %v4533_v37, 0.0 }
 0x21b   :  { %6812 = vst [vmem:[#allocation170_spill] sm:$0xff] %v4533_v37  ;;  %1569 = vmatmul.f32.vlgmr.msra.gmra.mxu2 %v1499_v44  ;;  %1589 = vmatmul.f32.vlgmr.msra.gmra.mxu3 %v1500_v4  ;;  %v4557_v4 = vadd.f32 %v842_v24, %v3154_v50  ;;  %v6326_v44 = vmax.f32 %v4536_v3, 0.0  ;;  %v4657_v3 = vadd.f32 %v4443_v32, %v3302_v1 }
 0x21c   :  { %1673 = vmatpush.xpose.msra.mxu0 %v6324_v7  ;;  %1693 = vmatpush.xpose.msra.mxu1 %v6321_v55  ;;  %v4569_v55 = vadd.f32 %v972_v41, %v3154_v50  ;;  %v4593_v7 = vadd.f32 %v4473_v48, %v3228_v33 }
 0x21d   :  { %1713 = vmatpush.xpose.msra.mxu2 %v6815_v54  ;;  %1733 = vmatpush.xpose.msra.mxu3 %v6322_v31  ;;  %v4554_v0 = vpop.f32.mrf.mxu2  ;;  %6818 = vst [vmem:[#allocation175_spill] sm:$0xff] %v4557_v4  ;;  %v4566_v39 = vpop.f32.mrf.mxu0  ;;  %v6327_v31 = vmax.f32 %v4540_v63, 0.0 }
 0x21e   :  { %6817 = vst [vmem:[#allocation174_spill] sm:$0xff] %v4554_v0  ;;  %v4574_v24 = vpop.f32.mrf.mxu1  ;;  %v6331_v41 = vmax.f32 %v4569_v55, 0.0 }
 0x21f   :  { %v4564_v54 = vpop.f32.mrf.mxu3  ;;  %6821 = vst [vmem:[#allocation178_spill] sm:$0xff] %v4566_v39 }
 0x220   :  { %6820 = vst [vmem:[#allocation177_spill] sm:$0xff] %v4564_v54  ;;  %1674 = vmatpush.xpose.msra.mxu0 %v6323_v29  ;;  %1694 = vmatpush.xpose.msra.mxu1 %v6325_v2  ;;  %v4589_v29 = vadd.f32 %v4464_v27, %v3228_v33  ;;  %v6328_v2 = vmax.f32 %v4557_v4, 0.0  ;;  %v4610_v27 = vadd.f32 %v4447_v11, %v3198_v46  ;;  %v6336_v11 = vmax.f32 %v4593_v7, 0.0  ;;  %v6925_v4 = vld [vmem:[#allocation109_spill] sm:$0xff] }
 0x221   :  { %6822 = vst [vmem:[#allocation179_spill] sm:$0xff] %v4569_v55  ;;  %1714 = vmatpush.xpose.msra.mxu2 %v6326_v44  ;;  %1734 = vmatpush.xpose.msra.mxu3 %v6327_v31  ;;  %v6329_v44 = vmax.f32 %v4560_v59, 0.0  ;;  %v6828_v31 = vmax.f32 %v4549_v53, 0.0  ;;  %v6337_v55 = vmax.f32 %v4599_v18, 0.0 }
 0x222   :  { %6823 = vst [vmem:[#allocation180_spill] sm:$0xff] %v4574_v24 }
 0x223   :  { %6825 = vst [vmem:[#allocation182_spill] sm:$0xff] %v4589_v29 }
 0x224   :  { %6826 = vst [vmem:[#allocation183_spill] sm:$0xff] %v4593_v7  ;;  %1675 = vmatpush.xpose.msra.mxu0 %v6828_v31  ;;  %1695 = vmatpush.xpose.msra.mxu1 %v6328_v2  ;;  %v4619_v31 = vadd.f32 %v4449_v35, %v3198_v46  ;;  %v4623_v2 = vadd.f32 %v4458_v20, %v3198_v46  ;;  %v6836_v35 = vmax.f32 %v4582_v36, 0.0 }
 0x225   :  { %1715 = vmatpush.xpose.msra.mxu2 %v6329_v44  ;;  %6829 = vst [vmem:[#allocation185_spill] sm:$0xff] %v4610_v27  ;;  %1735 = vmatpush.xpose.msra.mxu3 %v6331_v41  ;;  %v4615_v42 = vpop.f32.mrf.mxu2  ;;  %v6335_v44 = vmax.f32 %v4589_v29, 0.0  ;;  %v4629_v48 = vpop.f32.mrf.mxu0  ;;  %v4633_v41 = vadd.f32 %v4460_v14, %v3198_v46  ;;  %v4646_v20 = vadd.f32 %v4432_v10, %v3302_v1  ;;  %v6921_v29 = vld [vmem:[#allocation12_spill] sm:$0xff] }
 0x226   :  { %6830 = vst [vmem:[#allocation186_spill] sm:$0xff] %v4615_v42  ;;  %v4638_v63 = vpop.f32.mrf.mxu1  ;;  %v4663_v10 = vadd.f32 %v4445_v21, %v3302_v1  ;;  %v4721_v7 = vadd.f32 %v4413_v15, %v3378_v23 }
 0x227   :  { %6831 = vst [vmem:[#allocation187_spill] sm:$0xff] %v4619_v31  ;;  %v4627_v59 = vpop.f32.mrf.mxu3  ;;  %v6341_v14 = vmax.f32 %v4633_v41, 0.0 }
 0x228   :  { %6832 = vst [vmem:[#allocation188_spill] sm:$0xff] %v4623_v2  ;;  %1676 = vmatpush.xpose.msra.mxu0 %v6836_v35  ;;  %1696 = vmatpush.xpose.msra.mxu1 %v6335_v44  ;;  %v4653_v35 = vadd.f32 %v4434_v51, %v3302_v1  ;;  %v6338_v44 = vmax.f32 %v4619_v31, 0.0  ;;  %v4674_v51 = vadd.f32 %v4417_v26, %v3340_v28  ;;  %v6346_v26 = vmax.f32 %v4657_v3, 0.0  ;;  %v1502_v31 = vld [vmem:[%s6060_s3 + $0x28] sm:$0xff] }
 0x229   :  { %6833 = vst [vmem:[#allocation189_spill] sm:$0xff] %v4627_v59  ;;  %1716 = vmatpush.xpose.msra.mxu2 %v6336_v11  ;;  %1736 = vmatpush.xpose.msra.mxu3 %v6337_v55  ;;  %v6339_v11 = vmax.f32 %v4623_v2, 0.0  ;;  %v6842_v55 = vmax.f32 %v4610_v27, 0.0 }
 0x22a   :  { %6834 = vst [vmem:[#allocation190_spill] sm:$0xff] %v4629_v48  ;;  %1629 = vmatmul.f32.vlgmr.msrb.gmra.mxu1 %v1502_v31 }
 0x22b   :  { %6835 = vst [vmem:[#allocation191_spill] sm:$0xff] %v4633_v41  ;;  %v6347_v41 = vmax.f32 %v4663_v10, 0.0 }
 0x22c   :  { %6837 = vst [vmem:[#allocation192_spill] sm:$0xff] %v4638_v63  ;;  %1677 = vmatpush.xpose.msra.mxu0 %v6842_v55  ;;  %1697 = vmatpush.xpose.msra.mxu1 %v6338_v44  ;;  %v4683_v55 = vadd.f32 %v4419_v34, %v3340_v28  ;;  %v4687_v44 = vadd.f32 %v4428_v58, %v3340_v28  ;;  %v6850_v34 = vmax.f32 %v4646_v20, 0.0 }
 0x22d   :  { %6838 = vst [vmem:[#allocation193_spill] sm:$0xff] %v4646_v20  ;;  %1717 = vmatpush.xpose.msra.mxu2 %v6339_v11  ;;  %1737 = vmatpush.xpose.msra.mxu3 %v6341_v14  ;;  %v4679_v21 = vpop.f32.mrf.mxu2  ;;  %v6345_v11 = vmax.f32 %v4653_v35, 0.0  ;;  %v4693_v32 = vpop.f32.mrf.mxu0  ;;  %v4697_v14 = vadd.f32 %v4430_v9, %v3340_v28  ;;  %v4710_v58 = vadd.f32 %v4393_v56, %v3378_v23 }
 0x22e   :  { %6839 = vst [vmem:[#allocation194_spill] sm:$0xff] %v4653_v35  ;;  %v4702_v18 = vpop.f32.mrf.mxu1  ;;  %v4727_v56 = vadd.f32 %v4415_v49, %v3378_v23  ;;  %v6900_v35 = vld [vmem:[#allocation125_spill] sm:$0xff] }
 0x22f   :  { %6840 = vst [vmem:[#allocation195_spill] sm:$0xff] %v4657_v3  ;;  %v4691_v2 = vpop.f32.mrf.mxu3  ;;  %v6351_v9 = vmax.f32 %v4697_v14, 0.0  ;;  %v4785_v3 = vadd.f32 %v4320_v57, %v3454_v13  ;;  %v4802_v57 = vadd.f32 %v4192_v30, %v3492_v8 }
 0x230   :  { %6841 = vst [vmem:[#allocation196_spill] sm:$0xff] %v4663_v10  ;;  %1678 = vmatpush.xpose.msra.mxu0 %v6850_v34  ;;  %1698 = vmatpush.xpose.msra.mxu1 %v6345_v11  ;;  %v4717_v34 = vadd.f32 %v4398_v22, %v3378_v23  ;;  %v6348_v11 = vmax.f32 %v4683_v55, 0.0  ;;  %v4738_v22 = vadd.f32 %v4334_v60, %v3416_v19  ;;  %v6356_v60 = vmax.f32 %v4721_v7, 0.0 }
 0x231   :  { %6843 = vst [vmem:[#allocation197_spill] sm:$0xff] %v4674_v51  ;;  %1718 = vmatpush.xpose.msra.mxu2 %v6346_v26  ;;  %1738 = vmatpush.xpose.msra.mxu3 %v6347_v41  ;;  %v6349_v26 = vmax.f32 %v4687_v44, 0.0  ;;  %v6856_v41 = vmax.f32 %v4674_v51, 0.0  ;;  %v6371_v30 = vmax.f32 %v4785_v3, 0.0 }
 0x232   :  { %6844 = vst [vmem:[#allocation198_spill] sm:$0xff] %v4679_v21 }
 0x233   :  { %6845 = vst [vmem:[#allocation199_spill] sm:$0xff] %v4683_v55 }
 0x234   :  { %6846 = vst [vmem:[#allocation200_spill] sm:$0xff] %v4687_v44  ;;  %1679 = vmatpush.xpose.msra.mxu0 %v6856_v41  ;;  %1699 = vmatpush.xpose.msra.mxu1 %v6348_v11  ;;  %v4747_v41 = vadd.f32 %v4343_v17, %v3416_v19  ;;  %v4751_v11 = vadd.f32 %v4387_v62, %v3416_v19  ;;  %v6863_v17 = vmax.f32 %v4710_v58, 0.0 }
 0x235   :  { %6847 = vst [vmem:[#allocation201_spill] sm:$0xff] %v4691_v2  ;;  %1719 = vmatpush.xpose.msra.mxu2 %v6349_v26  ;;  %1739 = vmatpush.xpose.msra.mxu3 %v6351_v9  ;;  %v4743_v49 = vpop.f32.mrf.mxu2  ;;  %v6355_v26 = vmax.f32 %v4717_v34, 0.0  ;;  %v4757_v15 = vpop.f32.mrf.mxu0  ;;  %v4761_v9 = vadd.f32 %v4391_v38, %v3416_v19  ;;  %v4774_v62 = vadd.f32 %v4263_v45, %v3454_v13 }
 0x236   :  { %6848 = vst [vmem:[#allocation202_spill] sm:$0xff] %v4693_v32  ;;  %v4766_v10 = vpop.f32.mrf.mxu1  ;;  %v4791_v45 = vadd.f32 %v4332_v5, %v3454_v13 }
 0x237   :  { %6849 = vst [vmem:[#allocation203_spill] sm:$0xff] %v4697_v14  ;;  %v4755_v44 = vpop.f32.mrf.mxu3  ;;  %v6357_v14 = vmax.f32 %v4727_v56, 0.0  ;;  %v6361_v38 = vmax.f32 %v4761_v9, 0.0 }
 0x238   :  { %6851 = vst [vmem:[#allocation204_spill] sm:$0xff] %v4702_v18  ;;  %1680 = vmatpush.xpose.msra.mxu0 %v6863_v17  ;;  %1700 = vmatpush.xpose.msra.mxu1 %v6355_v26  ;;  %v4781_v17 = vadd.f32 %v4272_v43, %v3454_v13  ;;  %v6358_v26 = vmax.f32 %v4747_v41, 0.0 }
 0x239   :  { %6852 = vst [vmem:[#allocation205_spill] sm:$0xff] %v4710_v58  ;;  %1720 = vmatpush.xpose.msra.mxu2 %v6356_v60  ;;  %1740 = vmatpush.xpose.msra.mxu3 %v6357_v14  ;;  %v6359_v60 = vmax.f32 %v4751_v11, 0.0  ;;  %v6868_v14 = vmax.f32 %v4738_v22, 0.0 }
 0x23a   :  { %6853 = vst [vmem:[#allocation206_spill] sm:$0xff] %v4717_v34  ;;  %v6882_v34 = vld [vmem:[#allocation157_spill] sm:$0xff] }
 0x23b   :  { %6854 = vst [vmem:[#allocation207_spill] sm:$0xff] %v4721_v7 }
 0x23c   :  { %6855 = vst [vmem:[#allocation208_spill] sm:$0xff] %v4727_v56  ;;  %1681 = vmatpush.xpose.msra.mxu0 %v6868_v14  ;;  %1701 = vmatpush.xpose.msra.mxu1 %v6358_v26  ;;  %v4811_v14 = vadd.f32 %v4201_v47, %v3492_v8  ;;  %v4815_v26 = vadd.f32 %v4249_v52, %v3492_v8  ;;  %v6373_v56 = vmax.f32 %v4791_v45, 0.0  ;;  %v6876_v47 = vmax.f32 %v4774_v62, 0.0  ;;  %v6877_v52 = vld [vmem:[#allocation100_spill] sm:$0xff] }
 0x23d   :  { %6857 = vst [vmem:[#allocation209_spill] sm:$0xff] %v4738_v22  ;;  %1721 = vmatpush.xpose.msra.mxu2 %v6359_v60  ;;  %1741 = vmatpush.xpose.msra.mxu3 %v6361_v38  ;;  %v4807_v5 = vpop.f32.mrf.mxu2  ;;  %v6370_v60 = vmax.f32 %v4781_v17, 0.0  ;;  %v4821_v43 = vpop.f32.mrf.mxu0  ;;  %v6874_v38 = vld [vmem:[#allocation162_spill] sm:$0xff] }
 0x23e   :  { %6858 = vst [vmem:[#allocation210_spill] sm:$0xff] %v4743_v49  ;;  %v4830_v7 = vpop.f32.mrf.mxu1 }
 0x23f   :  { %6859 = vst [vmem:[#allocation211_spill] sm:$0xff] %v4747_v41  ;;  %v6878_v41 = vld [vmem:[#allocation149_spill] sm:$0xff] }
 0x240   :  { %6860 = vst [vmem:[#allocation212_spill] sm:$0xff] %v4751_v11  ;;  %v4819_v11 = vpop.f32.mrf.mxu3  ;;  %1682 = vmatpush.xpose.msra.mxu0 %v6876_v47  ;;  %1702 = vmatpush.xpose.msra.mxu1 %v6370_v60  ;;  %v4838_v22 = vadd.f32 %v6878_v41, %v6877_v52  ;;  %v6377_v60 = vmax.f32 %v4811_v14, 0.0  ;;  %v1503_v41 = vld [vmem:[%s6060_s3 + $0x30] sm:$0xff] }
 0x241   :  { %6861 = vst [vmem:[#allocation213_spill] sm:$0xff] %v4755_v44  ;;  %1722 = vmatpush.xpose.msra.mxu2 %v6371_v30  ;;  %1742 = vmatpush.xpose.msra.mxu3 %v6373_v56  ;;  %v6379_v30 = vmax.f32 %v4815_v26, 0.0 }
 0x242   :  { %6862 = vst [vmem:[#allocation214_spill] sm:$0xff] %v4761_v9  ;;  %v4825_v9 = vadd.f32 %v6874_v38, %v3492_v8  ;;  %v6884_v38 = vld [vmem:[#allocation160_spill] sm:$0xff]  ;;  %1649 = vmatmul.f32.vlgmr.msrb.gmra.mxu2 %v1503_v41 }
 0x243   :  { %6864 = vst [vmem:[#allocation215_spill] sm:$0xff] %v4774_v62  ;;  %v6880_v62 = vld [vmem:[#allocation151_spill] sm:$0xff] }
 0x244   :  { %6865 = vst [vmem:[#allocation216_spill] sm:$0xff] %v4781_v17  ;;  %v4845_v47 = vadd.f32 %v6880_v62, %v6877_v52  ;;  %v4849_v17 = vadd.f32 %v6882_v34, %v6877_v52  ;;  %v6381_v56 = vmax.f32 %v4825_v9, 0.0  ;;  %v6886_v62 = vmax.f32 %v4802_v57, 0.0  ;;  %1703 = vmatpush.xpose.msra.mxu1 %v6377_v60  ;;  %v6887_v34 = vld [vmem:[#allocation104_spill] sm:$0xff]  ;;  %v6892_v60 = vld [vmem:[#allocation145_spill] sm:$0xff] }
 0x245   :  { %6866 = vst [vmem:[#allocation217_spill] sm:$0xff] %v4785_v3  ;;  %1723 = vmatpush.xpose.msra.mxu2 %v6379_v30  ;;  %v6888_v3 = vld [vmem:[#allocation137_spill] sm:$0xff]  ;;  %v4888_v55 = vpop.f32.mrf.mxu0 }
 0x246   :  { %6867 = vst [vmem:[#allocation218_spill] sm:$0xff] %v4791_v45  ;;  %v4858_v45 = vadd.f32 %v6884_v38, %v6877_v52  ;;  %1683 = vmatpush.xpose.msra.mxu0 %v6886_v62  ;;  %v4869_v58 = vadd.f32 %v6888_v3, %v6887_v34  ;;  %1743 = vmatpush.xpose.msra.mxu3 %v6381_v56  ;;  %v4874_v38 = vpop.f32.mrf.mxu2  ;;  %v6890_v62 = vld [vmem:[#allocation139_spill] sm:$0xff]  ;;  %v6390_v30 = vmax.f32 %v4845_v47, 0.0  ;;  %v6895_v56 = vld [vmem:[#allocation148_spill] sm:$0xff]  ;;  %v4897_v51 = vpop.f32.mrf.mxu1 }
 0x247   :  { %6869 = vst [vmem:[#allocation219_spill] sm:$0xff] %v4802_v57  ;;  %v4878_v41 = vadd.f32 %v6890_v62, %v6887_v34  ;;  %v6897_v62 = vmax.f32 %v4838_v22, 0.0  ;;  %v1504_v3 = vld [vmem:[%s6060_s3 + $0x38] sm:$0xff]  ;;  %v6899_v57 = vld [vmem:[#allocation105_spill] sm:$0xff] }
 0x248   :  { %6870 = vst [vmem:[#allocation220_spill] sm:$0xff] %v4807_v5  ;;  %1704 = vmatpush.xpose.msra.mxu1 %v6390_v30  ;;  %v6902_v20 = vmax.f32 %v4858_v45, 0.0  ;;  %1669 = vmatmul.f32.vlgmr.msrb.gmra.mxu3 %v1504_v3  ;;  %v6909_v27 = vmax.f32 %v4869_v58, 0.0 }
 0x249   :  { %6871 = vst [vmem:[#allocation221_spill] sm:$0xff] %v4811_v14  ;;  %v4882_v14 = vadd.f32 %v6892_v60, %v6887_v34  ;;  %v1501_v60 = vld [vmem:[%s6060_s3 + $0x20] sm:$0xff] }
 0x24a   :  { %6872 = vst [vmem:[#allocation222_spill] sm:$0xff] %v4815_v26  ;;  %v4886_v26 = vpop.f32.mrf.mxu3  ;;  %1684 = vmatpush.xpose.msra.mxu0 %v6897_v62  ;;  %1744 = vmatpush.xpose.msra.mxu3 %v6902_v20  ;;  %v6907_v20 = vld [vmem:[#allocation136_spill] sm:$0xff] }
 0x24b   :  { %6873 = vst [vmem:[#allocation223_spill] sm:$0xff] %v4819_v11  ;;  %1609 = vmatmul.f32.vlgmr.msrb.gmra.mxu0 %v1501_v60  ;;  %v6397_v62 = vmax.f32 %v4882_v14, 0.0  ;;  %v4931_v60 = vadd.f32 %v6907_v20, %v6899_v57  ;;  %v6913_v20 = vld [vmem:[#allocation115_spill] sm:$0xff] }
 0x24c   :  { %6875 = vst [vmem:[#allocation162_spill] sm:$0xff] %v4825_v9  ;;  %v4892_v9 = vadd.f32 %v6895_v56, %v6887_v34  ;;  %v6898_v56 = vmax.f32 %v4849_v17, 0.0 }
 0x24d   :  { %6879 = vst [vmem:[#allocation100_spill] sm:$0xff] %v4838_v22  ;;  %v4911_v22 = vadd.f32 %v6900_v35, %v6899_v57  ;;  %v6395_v35 = vmax.f32 %v4878_v41, 0.0 }
 0x24e   :  { %6881 = vst [vmem:[#allocation149_spill] sm:$0xff] %v4845_v47  ;;  %1724 = vmatpush.xpose.msra.mxu2 %v6898_v56  ;;  %v6903_v47 = vld [vmem:[#allocation127_spill] sm:$0xff]  ;;  %v6905_v56 = vld [vmem:[#allocation133_spill] sm:$0xff]  ;;  %1685 = vmatpush.xpose.msra.mxu0 %v6909_v27  ;;  %v4947_v3 = vpop.f32.mrf.mxu2  ;;  %v4961_v31 = vpop.f32.mrf.mxu0 }
 0x24f   :  { %6883 = vst [vmem:[#allocation151_spill] sm:$0xff] %v4849_v17  ;;  %v4921_v30 = vadd.f32 %v6903_v47, %v6899_v57  ;;  %v4925_v17 = vadd.f32 %v6905_v56, %v6899_v57  ;;  %1705 = vmatpush.xpose.msra.mxu1 %v6395_v35  ;;  %v6910_v47 = vld [vmem:[#allocation27_spill] sm:$0xff]  ;;  %v6911_v56 = vld [vmem:[#allocation113_spill] sm:$0xff]  ;;  %v4970_v25 = vpop.f32.mrf.mxu1 }
 0x250   :  { %6885 = vst [vmem:[#allocation157_spill] sm:$0xff] %v4858_v45  ;;  %v6399_v45 = vmax.f32 %v4892_v9, 0.0  ;;  %v4942_v61 = vadd.f32 %v6911_v56, %v6910_v47  ;;  %v4951_v27 = vadd.f32 %v6913_v20, %v6910_v47  ;;  %v6915_v35 = vld [vmem:[#allocation121_spill] sm:$0xff]  ;;  %v6919_v20 = vmax.f32 %v4911_v22, 0.0 }
 0x251   :  { %6889 = vst [vmem:[#allocation160_spill] sm:$0xff] %v4869_v58  ;;  %v6409_v56 = vmax.f32 %v4925_v17, 0.0  ;;  %v6411_v58 = vmax.f32 %v4931_v60, 0.0 }
 0x252   :  { %6891 = vst [vmem:[#allocation137_spill] sm:$0xff] %v4878_v41  ;;  %1725 = vmatpush.xpose.msra.mxu2 %v6397_v62  ;;  %1745 = vmatpush.xpose.msra.mxu3 %v6399_v45  ;;  %v4955_v41 = vadd.f32 %v6915_v35, %v6910_v47  ;;  %v6408_v62 = vmax.f32 %v4921_v30, 0.0  ;;  %v6917_v45 = vld [vmem:[#allocation124_spill] sm:$0xff]  ;;  %v6920_v35 = vld [vmem:[#allocation106_spill] sm:$0xff] }
 0x253   :  { %6893 = vst [vmem:[#allocation139_spill] sm:$0xff] %v4882_v14  ;;  %v4959_v14 = vpop.f32.mrf.mxu3  ;;  %1686 = vmatpush.xpose.msra.mxu0 %v6919_v20  ;;  %v4978_v36 = vadd.f32 %v6921_v29, %v6920_v35  ;;  %v6927_v29 = vld [vmem:[#allocation112_spill] sm:$0xff] }
 0x254   :  { %6894 = vst [vmem:[#allocation145_spill] sm:$0xff] %v4886_v26  ;;  %1706 = vmatpush.xpose.msra.mxu1 %v6408_v62  ;;  %v6414_v62 = vmax.f32 %v4951_v27, 0.0 }
 0x255   :  { %6896 = vst [vmem:[#allocation148_spill] sm:$0xff] %v4892_v9  ;;  %v4965_v9 = vadd.f32 %v6917_v45, %v6910_v47  ;;  %v6930_v47 = vld [vmem:[#allocation35_spill] sm:$0xff] }
 0x256   :  { %6901 = vst [vmem:[#allocation125_spill] sm:$0xff] %v4911_v22  ;;  %1726 = vmatpush.xpose.msra.mxu2 %v6409_v56  ;;  %1746 = vmatpush.xpose.msra.mxu3 %v6411_v58  ;;  %v6923_v22 = vld [vmem:[#allocation14_spill] sm:$0xff]  ;;  %v6415_v56 = vmax.f32 %v4955_v41, 0.0  ;;  %v6929_v58 = vmax.f32 %v4942_v61, 0.0 }
 0x257   :  { %6904 = vst [vmem:[#allocation127_spill] sm:$0xff] %v4921_v30  ;;  %v4985_v20 = vadd.f32 %v6923_v22, %v6920_v35  ;;  %v4989_v30 = vadd.f32 %v6925_v4, %v6920_v35  ;;  %v6416_v45 = vmax.f32 %v4965_v9, 0.0  ;;  %v6418_v4 = vmax.f32 %v4978_v36, 0.0  ;;  %v5007_v22 = vpop.f32.mrf.mxu2 }
 0x258   :  { %6906 = vst [vmem:[#allocation133_spill] sm:$0xff] %v4925_v17  ;;  %v4995_v17 = vadd.f32 %v6927_v29, %v6920_v35  ;;  %1687 = vmatpush.xpose.msra.mxu0 %v6929_v58  ;;  %1707 = vmatpush.xpose.msra.mxu1 %v6414_v62  ;;  %v5013_v58 = vpop.f32.mrf.mxu0 }
 0x259   :  { %6908 = vst [vmem:[#allocation136_spill] sm:$0xff] %v4931_v60  ;;  %v6421_v29 = vmax.f32 %v4985_v20, 0.0  ;;  %v6420_v60 = vmax.f32 %v4989_v30, 0.0 }
 0x25a   :  { %6912 = vst [vmem:[#allocation113_spill] sm:$0xff] %v4942_v61  ;;  %1727 = vmatpush.xpose.msra.mxu2 %v6415_v56  ;;  %1747 = vmatpush.xpose.msra.mxu3 %v6416_v45  ;;  %v6426_v62 = vmax.f32 %v4995_v17, 0.0  ;;  %v5018_v56 = vpop.f32.mrf.mxu1  ;;  %v1505_v45 = vld [vmem:[%s6060_s3 + $0x40] sm:$0xff] }
 0x25b   :  { %6914 = vst [vmem:[#allocation115_spill] sm:$0xff] %v4951_v27  ;;  %v5011_v53 = vpop.f32.mrf.mxu3 }
 0x25c   :  { %6916 = vst [vmem:[#allocation121_spill] sm:$0xff] %v4955_v41  ;;  %1688 = vmatpush.xpose.msra.mxu0 %v6418_v4  ;;  %1708 = vmatpush.xpose.msra.mxu1 %v6421_v29  ;;  %v1506_v4 = vld [vmem:[%s6060_s3 + $0x48] sm:$0xff]  ;;  %v1508_v41 = vld [vmem:[%s6060_s3 + $0x58] sm:$0xff] }
 0x25d   :  { %6918 = vst [vmem:[#allocation124_spill] sm:$0xff] %v4965_v9  ;;  %v1507_v9 = vld [vmem:[%s6060_s3 + $0x50] sm:$0xff] }
 0x25e   :  { %6922 = vst [vmem:[#allocation12_spill] sm:$0xff] %v4978_v36  ;;  %1728 = vmatpush.xpose.msra.mxu2 %v6420_v60  ;;  %1748 = vmatpush.xpose.msra.mxu3 %v6426_v62 }
 0x25f   :  { %6924 = vst [vmem:[#allocation14_spill] sm:$0xff] %v4985_v20  ;;  %1689 = vmatmul.f32.vlgmr.msra.gmra.mxu0 %v1505_v45  ;;  %1709 = vmatmul.f32.vlgmr.msra.gmra.mxu1 %v1506_v4  ;;  %v5038_v60 = vpop.f32.mrf.mxu2 }
 0x260   :  { %6926 = vst [vmem:[#allocation109_spill] sm:$0xff] %v4989_v30  ;;  %v5042_v30 = vpop.f32.mrf.mxu0 }
 0x261   :  { %6928 = vst [vmem:[#allocation112_spill] sm:$0xff] %v4995_v17  ;;  %1729 = vmatmul.f32.vlgmr.msra.gmra.mxu2 %v1507_v9  ;;  %1749 = vmatmul.f32.vlgmr.msra.gmra.mxu3 %v1508_v41 }
 0x262   :  { %v5044_v20 = vpop.f32.mrf.mxu1 }
 0x263   :  { %v5040_v29 = vpop.f32.mrf.mxu3 }
 0x267   :  { %v5046_v36 = vpop.f32.mrf.mxu2 }
 0x268   :  { %v5050_v62 = vpop.f32.mrf.mxu0 }
 0x26a   :  { %v5052_v27 = vpop.f32.mrf.mxu1 }
 0x26b   :  { %v5048_v17 = vpop.f32.mrf.mxu3 }
 0x26f   :  { %v5054_v45 = vpop.f32.mrf.mxu2 }
 0x270   :  { %v1031_v41 = vpop.f32.mrf.mxu0 }
 0x272   :  { %v1096_v4 = vpop.f32.mrf.mxu1 }
 0x273   :  { %v5056_v9 = vpop.f32.mrf.mxu3 }
 0x277   :  { %v5058_v61 = vpop.f32.mrf.mxu2 }
 0x278   :  { %v1034_v16 = vpop.f32.mrf.mxu0 }
 0x27a   :  { %v1099_v6 = vpop.f32.mrf.mxu1 }
 0x27b   :  { %v5060_v37 = vpop.f32.mrf.mxu3 }
 0x27f   :  { %v1164_v12 = vpop.f32.mrf.mxu2 }
 0x280   :  { %v1037_v0 = vpop.f32.mrf.mxu0 }
 0x282   :  { %v1102_v59 = vpop.f32.mrf.mxu1 }
 0x283   :  { %v1229_v54 = vpop.f32.mrf.mxu3  ;;  %v5085_v26 = vadd.f32 %v1102_v59, %v3154_v50  ;;  %v5103_v59 = vadd.f32 %v1034_v16, %v3228_v33 }
 0x287   :  { %v1167_v42 = vpop.f32.mrf.mxu2 }
 0x288   :  { %v1040_v35 = vpop.f32.mrf.mxu0  ;;  %v5121_v16 = vadd.f32 %v1167_v42, %v3154_v50 }
 0x289   :  { %v5069_v48 = vadd.f32 %v1040_v35, %v3167_v40 }
 0x28a   :  { %v1105_v21 = vpop.f32.mrf.mxu1 }
 0x28b   :  { %v1232_v2 = vpop.f32.mrf.mxu3  ;;  %v5073_v5 = vadd.f32 %v1105_v21, %v3167_v40 }
 0x28d   :  { %v6480_v21 = vmax.f32 %v5073_v5, 0.0 }
 0x28f   :  { %v1170_v24 = vpop.f32.mrf.mxu2 }
 0x290   :  { %v1043_v39 = vpop.f32.mrf.mxu0 }
 0x291   :  { %v5063_v49 = vadd.f32 %v1043_v39, %v6930_v47  ;;  %v5081_v39 = vadd.f32 %v1037_v0, %v3154_v50  ;;  %v5097_v0 = vadd.f32 %v1170_v24, %v3167_v40  ;;  %v6478_v24 = vmax.f32 %v5085_v26, 0.0 }
 0x292   :  { %v1108_v63 = vpop.f32.mrf.mxu1 }
 0x293   :  { %v1235_v44 = vpop.f32.mrf.mxu3  ;;  %v5066_v11 = vadd.f32 %v1108_v63, %v6930_v47  ;;  %v6437_v57 = vmax.f32 %v5063_v49, 0.0  ;;  %v6483_v63 = vmax.f32 %v5069_v48, 0.0 }
 0x295   :  { %6931 = vst [vmem:[#allocation35_spill] sm:$0xff] %v5066_v11  ;;  %v6438_v18 = vmax.f32 %v5066_v11, 0.0  ;;  %1753 = vmatpush.xpose.msrb.mxu0 %v6437_v57  ;;  %v5107_v11 = vadd.f32 %v1235_v44, %v3167_v40  ;;  %v6443_v40 = vmax.f32 %v5097_v0, 0.0  ;;  %v6445_v44 = vmax.f32 %v5103_v59, 0.0 }
 0x297   :  { %1773 = vmatpush.xpose.msrb.mxu1 %v6438_v18  ;;  %v1173_v35 = vpop.f32.mrf.mxu2 }
 0x298   :  { %v5089_v32 = vadd.f32 %v1173_v35, %v6930_v47  ;;  %v6442_v35 = vmax.f32 %v5081_v39, 0.0 }
 0x299   :  { %1754 = vmatpush.xpose.msrb.mxu0 %v6483_v63 }
 0x29a   :  { %v6440_v18 = vmax.f32 %v5089_v32, 0.0 }
 0x29b   :  { %v1238_v34 = vpop.f32.mrf.mxu3  ;;  %1774 = vmatpush.xpose.msrb.mxu1 %v6480_v21 }
 0x29c   :  { %v5092_v57 = vadd.f32 %v1238_v34, %v6930_v47  ;;  %v5111_v47 = vadd.f32 %v1099_v6, %v3228_v33  ;;  %1793 = vmatpush.xpose.msrb.mxu2 %v6440_v18  ;;  %v5127_v6 = vadd.f32 %v1031_v41, %v3198_v46  ;;  %v5131_v18 = vadd.f32 %v1232_v2, %v3154_v50 }
 0x29d   :  { %1755 = vmatpush.xpose.msrb.mxu0 %v6442_v35  ;;  %v5135_v35 = vadd.f32 %v1096_v4, %v3198_v46  ;;  %v5145_v41 = vadd.f32 %v1164_v12, %v3228_v33  ;;  %v6447_v50 = vmax.f32 %v5121_v16, 0.0  ;;  %v5152_v2 = vadd.f32 %v5050_v62, %v3302_v1 }
 0x29e   :  { %v6441_v34 = vmax.f32 %v5092_v57, 0.0  ;;  %v6477_v42 = vmax.f32 %v5111_v47, 0.0  ;;  %v6448_v4 = vmax.f32 %v5127_v6, 0.0  ;;  %v5161_v12 = vadd.f32 %v5052_v27, %v3302_v1 }
 0x29f   :  { %1775 = vmatpush.xpose.msrb.mxu1 %v6478_v24  ;;  %v5179_v62 = vadd.f32 %v5042_v30, %v3340_v28  ;;  %v6451_v27 = vmax.f32 %v5152_v2, 0.0  ;;  %v5207_v30 = vadd.f32 %v5013_v58, %v3378_v23 }
 0x2a0   :  { %1813 = vmatpush.xpose.msrb.mxu3 %v6441_v34  ;;  %v6444_v34 = vmax.f32 %v5107_v11, 0.0  ;;  %1794 = vmatpush.xpose.msrb.mxu2 %v6443_v40  ;;  %v5156_v40 = vadd.f32 %v1229_v54, %v3228_v33  ;;  %v5172_v33 = vadd.f32 %v5058_v61, %v3198_v46  ;;  %v6450_v54 = vmax.f32 %v5145_v41, 0.0 }
 0x2a1   :  { %1756 = vmatpush.xpose.msrb.mxu0 %v6445_v44  ;;  %v6475_v44 = vmax.f32 %v5135_v35, 0.0  ;;  %v5189_v61 = vadd.f32 %v5044_v20, %v3340_v28  ;;  %v6454_v20 = vmax.f32 %v5179_v62, 0.0 }
 0x2a3   :  { %1776 = vmatpush.xpose.msrb.mxu1 %v6477_v42 }
 0x2a4   :  { %1814 = vmatpush.xpose.msrb.mxu3 %v6444_v34  ;;  %v6446_v34 = vmax.f32 %v5131_v18, 0.0  ;;  %1795 = vmatpush.xpose.msrb.mxu2 %v6447_v50  ;;  %v6449_v50 = vmax.f32 %v5156_v40, 0.0 }
 0x2a5   :  { %1757 = vmatpush.xpose.msrb.mxu0 %v6448_v4  ;;  %v6472_v4 = vmax.f32 %v5161_v12, 0.0 }
 0x2a7   :  { %1777 = vmatpush.xpose.msrb.mxu1 %v6475_v44 }
 0x2a8   :  { %1815 = vmatpush.xpose.msrb.mxu3 %v6446_v34  ;;  %v5184_v34 = vadd.f32 %v5060_v37, %v3198_v46  ;;  %1796 = vmatpush.xpose.msrb.mxu2 %v6450_v54  ;;  %v5200_v37 = vadd.f32 %v5054_v45, %v3302_v1  ;;  %v6453_v46 = vmax.f32 %v5172_v33, 0.0  ;;  %v5217_v45 = vadd.f32 %v5018_v56, %v3378_v23 }
 0x2a9   :  { %1758 = vmatpush.xpose.msrb.mxu0 %v6451_v27  ;;  %v6470_v27 = vmax.f32 %v5189_v61, 0.0  ;;  %v5235_v56 = vadd.f32 %v4961_v31, %v3416_v19 }
 0x2aa   :  { %v6452_v54 = vmax.f32 %v5184_v34, 0.0  ;;  %v6456_v58 = vmax.f32 %v5200_v37, 0.0 }
 0x2ab   :  { %1778 = vmatpush.xpose.msrb.mxu1 %v6472_v4  ;;  %v6460_v31 = vmax.f32 %v5235_v56, 0.0 }
 0x2ac   :  { %1816 = vmatpush.xpose.msrb.mxu3 %v6449_v50  ;;  %v5212_v50 = vadd.f32 %v5056_v9, %v3302_v1  ;;  %1797 = vmatpush.xpose.msrb.mxu2 %v6453_v46  ;;  %v5228_v1 = vadd.f32 %v5046_v36, %v3340_v28  ;;  %v6457_v9 = vmax.f32 %v5207_v30, 0.0  ;;  %v5245_v36 = vadd.f32 %v4970_v25, %v3416_v19 }
 0x2ad   :  { %1759 = vmatpush.xpose.msrb.mxu0 %v6454_v20  ;;  %v6469_v20 = vmax.f32 %v5217_v45, 0.0  ;;  %v5263_v25 = vadd.f32 %v4888_v55, %v3454_v13 }
 0x2ae   :  { %v6455_v46 = vmax.f32 %v5212_v50, 0.0 }
 0x2af   :  { %1779 = vmatpush.xpose.msrb.mxu1 %v6470_v27 }
 0x2b0   :  { %1817 = vmatpush.xpose.msrb.mxu3 %v6452_v54  ;;  %v5240_v54 = vadd.f32 %v5048_v17, %v3340_v28  ;;  %1798 = vmatpush.xpose.msrb.mxu2 %v6456_v58  ;;  %v5256_v28 = vadd.f32 %v5038_v60, %v3378_v23  ;;  %v6459_v17 = vmax.f32 %v5228_v1, 0.0  ;;  %v5273_v60 = vadd.f32 %v4897_v51, %v3454_v13 }
 0x2b1   :  { %1760 = vmatpush.xpose.msrb.mxu0 %v6457_v9  ;;  %v6467_v9 = vmax.f32 %v5245_v36, 0.0  ;;  %v5291_v51 = vadd.f32 %v4821_v43, %v3492_v8 }
 0x2b2   :  { %v6458_v58 = vmax.f32 %v5240_v54, 0.0  ;;  %v6462_v55 = vmax.f32 %v5256_v28, 0.0 }
 0x2b3   :  { %1780 = vmatpush.xpose.msrb.mxu1 %v6469_v20  ;;  %v6468_v43 = vmax.f32 %v5291_v51, 0.0 }
 0x2b4   :  { %1818 = vmatpush.xpose.msrb.mxu3 %v6455_v46  ;;  %v5268_v46 = vadd.f32 %v5040_v29, %v3378_v23  ;;  %1799 = vmatpush.xpose.msrb.mxu2 %v6459_v17  ;;  %v5284_v23 = vadd.f32 %v5007_v22, %v3416_v19  ;;  %v6463_v29 = vmax.f32 %v5263_v25, 0.0  ;;  %v5301_v22 = vadd.f32 %v4830_v7, %v3492_v8 }
 0x2b5   :  { %1761 = vmatpush.xpose.msrb.mxu0 %v6460_v31  ;;  %v6464_v31 = vmax.f32 %v5273_v60, 0.0  ;;  %v5319_v7 = vadd.f32 %v4757_v15, %v6877_v52 }
 0x2b6   :  { %v6461_v17 = vmax.f32 %v5268_v46, 0.0 }
 0x2b7   :  { %1781 = vmatpush.xpose.msrb.mxu1 %v6467_v9 }
 0x2b8   :  { %1819 = vmatpush.xpose.msrb.mxu3 %v6458_v58  ;;  %v5296_v58 = vadd.f32 %v5011_v53, %v3416_v19  ;;  %1800 = vmatpush.xpose.msrb.mxu2 %v6462_v55  ;;  %v5312_v19 = vadd.f32 %v4947_v3, %v3454_v13  ;;  %v6465_v53 = vmax.f32 %v5284_v23, 0.0  ;;  %v5329_v3 = vadd.f32 %v4766_v10, %v6877_v52  ;;  %v6934_v10 = vld [vmem:[#allocation104_spill] sm:$0xff] }
 0x2b9   :  { %1762 = vmatpush.xpose.msrb.mxu0 %v6463_v29  ;;  %v6471_v29 = vmax.f32 %v5301_v22, 0.0 }
 0x2ba   :  { %v6466_v55 = vmax.f32 %v5296_v58, 0.0  ;;  %v6473_v15 = vmax.f32 %v5312_v19, 0.0  ;;  %v6479_v27 = vmax.f32 %v5329_v3, 0.0 }
 0x2bb   :  { %1782 = vmatpush.xpose.msrb.mxu1 %v6464_v31 }
 0x2bc   :  { %1820 = vmatpush.xpose.msrb.mxu3 %v6461_v17  ;;  %v5324_v17 = vadd.f32 %v4959_v14, %v3454_v13  ;;  %1801 = vmatpush.xpose.msrb.mxu2 %v6465_v53  ;;  %v5340_v13 = vadd.f32 %v4874_v38, %v3492_v8  ;;  %v6935_v14 = vld [vmem:[#allocation202_spill] sm:$0xff]  ;;  %v6476_v53 = vmax.f32 %v5319_v7, 0.0  ;;  %v6938_v38 = vld [vmem:[#allocation204_spill] sm:$0xff] }
 0x2bd   :  { %1763 = vmatpush.xpose.msrb.mxu0 %v6468_v43  ;;  %v5347_v31 = vadd.f32 %v6935_v14, %v6934_v10  ;;  %v5357_v20 = vadd.f32 %v6938_v38, %v6934_v10  ;;  %v6941_v38 = vld [vmem:[#allocation105_spill] sm:$0xff] }
 0x2be   :  { %6932 = vst [vmem:[#allocation224_spill] sm:$0xff] %v5324_v17  ;;  %v6474_v43 = vmax.f32 %v5324_v17, 0.0  ;;  %v6481_v14 = vmax.f32 %v5340_v13, 0.0 }
 0x2bf   :  { %6933 = vst [vmem:[#allocation225_spill] sm:$0xff] %v5340_v13  ;;  %1783 = vmatpush.xpose.msrb.mxu1 %v6471_v29  ;;  %v6942_v29 = vld [vmem:[#allocation190_spill] sm:$0xff]  ;;  %v6486_v24 = vmax.f32 %v5357_v20, 0.0 }
 0x2c0   :  { %1821 = vmatpush.xpose.msrb.mxu3 %v6466_v55  ;;  %v6936_v55 = vld [vmem:[#allocation145_spill] sm:$0xff]  ;;  %1802 = vmatpush.xpose.msrb.mxu2 %v6473_v15  ;;  %v5375_v4 = vadd.f32 %v6942_v29, %v6941_v38  ;;  %v6484_v15 = vmax.f32 %v5347_v31, 0.0  ;;  %v6959_v13 = vld [vmem:[#allocation166_spill] sm:$0xff] }
 0x2c1   :  { %v5352_v9 = vadd.f32 %v6936_v55, %v3492_v8  ;;  %1764 = vmatpush.xpose.msrb.mxu0 %v6476_v53  ;;  %v6939_v8 = vld [vmem:[#allocation220_spill] sm:$0xff] }
 0x2c2   :  { %v5368_v55 = vadd.f32 %v6939_v8, %v6877_v52  ;;  %v6945_v8 = vld [vmem:[#allocation192_spill] sm:$0xff] }
 0x2c3   :  { %6937 = vst [vmem:[#allocation104_spill] sm:$0xff] %v5352_v9  ;;  %1784 = vmatpush.xpose.msrb.mxu1 %v6479_v27  ;;  %v6482_v53 = vmax.f32 %v5352_v9, 0.0  ;;  %v5385_v42 = vadd.f32 %v6945_v8, %v6941_v38  ;;  %v6948_v8 = vld [vmem:[#allocation27_spill] sm:$0xff]  ;;  %v6949_v27 = vld [vmem:[#allocation178_spill] sm:$0xff] }
 0x2c4   :  { %1822 = vmatpush.xpose.msrb.mxu3 %v6474_v43  ;;  %6940 = vst [vmem:[#allocation202_spill] sm:$0xff] %v5368_v55  ;;  %v6943_v43 = vld [vmem:[#allocation223_spill] sm:$0xff]  ;;  %1803 = vmatpush.xpose.msrb.mxu2 %v6481_v14  ;;  %v5403_v21 = vadd.f32 %v6949_v27, %v6948_v8  ;;  %v6491_v14 = vmax.f32 %v5375_v4, 0.0  ;;  %v6956_v27 = vld [vmem:[#allocation198_spill] sm:$0xff] }
 0x2c5   :  { %v5380_v44 = vadd.f32 %v6943_v43, %v6877_v52  ;;  %1765 = vmatpush.xpose.msrb.mxu0 %v6484_v15  ;;  %v6946_v52 = vld [vmem:[#allocation210_spill] sm:$0xff]  ;;  %v6493_v43 = vmax.f32 %v5385_v42, 0.0 }
 0x2c6   :  { %v5396_v29 = vadd.f32 %v6946_v52, %v6934_v10  ;;  %6950 = vst [vmem:[#allocation220_spill] sm:$0xff] %v5403_v21  ;;  %v6953_v52 = vld [vmem:[#allocation180_spill] sm:$0xff] }
 0x2c7   :  { %6944 = vst [vmem:[#allocation145_spill] sm:$0xff] %v5380_v44  ;;  %1785 = vmatpush.xpose.msrb.mxu1 %v6486_v24  ;;  %v6489_v15 = vmax.f32 %v5380_v44, 0.0  ;;  %v5413_v9 = vadd.f32 %v6953_v52, %v6948_v8  ;;  %v6955_v24 = vmax.f32 %v5368_v55, 0.0  ;;  %v6958_v52 = vld [vmem:[#allocation106_spill] sm:$0xff] }
 0x2c8   :  { %1823 = vmatpush.xpose.msrb.mxu3 %v6482_v53  ;;  %6947 = vst [vmem:[#allocation204_spill] sm:$0xff] %v5396_v29  ;;  %v6951_v53 = vld [vmem:[#allocation213_spill] sm:$0xff]  ;;  %v5431_v17 = vadd.f32 %v6959_v13, %v6958_v52  ;;  %v6966_v13 = vld [vmem:[#allocation186_spill] sm:$0xff] }
 0x2c9   :  { %v5408_v63 = vadd.f32 %v6951_v53, %v6934_v10  ;;  %6954 = vst [vmem:[#allocation190_spill] sm:$0xff] %v5413_v9  ;;  %1804 = vmatpush.xpose.msrb.mxu2 %v6955_v24  ;;  %1766 = vmatpush.xpose.msrb.mxu0 %v6491_v14  ;;  %v5424_v53 = vadd.f32 %v6956_v27, %v6941_v38  ;;  %v6499_v24 = vmax.f32 %v5403_v21, 0.0  ;;  %v6963_v27 = vld [vmem:[#allocation168_spill] sm:$0xff]  ;;  %v6497_v10 = vmax.f32 %v5413_v9, 0.0  ;;  %v7308_v9 = vld [vmem:[#allocation149_spill] sm:$0xff] }
 0x2ca   :  { %6960 = vst [vmem:[#allocation192_spill] sm:$0xff] %v5431_v17  ;;  %v5441_v55 = vadd.f32 %v6963_v27, %v6958_v52  ;;  %v6502_v27 = vmax.f32 %v5431_v17, 0.0  ;;  %v7316_v21 = vld [vmem:[#allocation137_spill] sm:$0xff] }
 0x2cb   :  { %6952 = vst [vmem:[#allocation105_spill] sm:$0xff] %v5408_v63  ;;  %1786 = vmatpush.xpose.msrb.mxu1 %v6493_v43  ;;  %v6495_v14 = vmax.f32 %v5408_v63, 0.0  ;;  %v6965_v43 = vmax.f32 %v5396_v29, 0.0  ;;  %v6968_v29 = vld [vmem:[#allocation189_spill] sm:$0xff] }
 0x2cc   :  { %1824 = vmatpush.xpose.msrb.mxu3 %v6489_v15  ;;  %6957 = vst [vmem:[#allocation223_spill] sm:$0xff] %v5424_v53  ;;  %v6961_v15 = vld [vmem:[#allocation201_spill] sm:$0xff]  ;;  %v6505_v63 = vmax.f32 %v5441_v55, 0.0 }
 0x2cd   :  { %v5436_v44 = vadd.f32 %v6961_v15, %v6941_v38  ;;  %6964 = vst [vmem:[#allocation27_spill] sm:$0xff] %v5441_v55  ;;  %1805 = vmatpush.xpose.msrb.mxu2 %v6965_v43  ;;  %1767 = vmatpush.xpose.msrb.mxu0 %v6499_v24  ;;  %v5452_v15 = vadd.f32 %v6966_v13, %v6948_v8  ;;  %v6498_v38 = vmax.f32 %v5424_v53, 0.0  ;;  %v1509_v13 = vld [vmem:[%s6060_s3 + $0x60] sm:$0xff] }
 0x2ce   :  { %v5460_v43 = vadd.f32 %v6968_v29, %v6948_v8  ;;  %v6970_v29 = vld [vmem:[#allocation174_spill] sm:$0xff]  ;;  %v6976_v53 = vld [vmem:[#allocation37_spill] sm:$0xff] }
 0x2cf   :  { %6962 = vst [vmem:[#allocation210_spill] sm:$0xff] %v5436_v44  ;;  %1787 = vmatpush.xpose.msrb.mxu1 %v6497_v10  ;;  %v5475_v8 = vadd.f32 %v6970_v29, %v6958_v52  ;;  %v6506_v10 = vmax.f32 %v5452_v15, 0.0  ;;  %v6977_v17 = vmax.f32 %v6976_v53, 0.0  ;;  %v1510_v29 = vld [vmem:[%s6060_s3 + $0x68] sm:$0xff] }
 0x2d0   :  { %1825 = vmatpush.xpose.msrb.mxu3 %v6495_v14  ;;  %6967 = vst [vmem:[#allocation178_spill] sm:$0xff] %v5452_v15  ;;  %v6500_v14 = vmax.f32 %v5436_v44, 0.0  ;;  %v6982_v53 = vld [vmem:[#allocation46_spill] sm:$0xff] }
 0x2d1   :  { %6969 = vst [vmem:[#allocation213_spill] sm:$0xff] %v5460_v43  ;;  %1806 = vmatpush.xpose.msrb.mxu2 %v6498_v38  ;;  %1768 = vmatpush.xpose.msrb.mxu0 %v6502_v27  ;;  %v6972_v38 = vld [vmem:[#allocation36_spill] sm:$0xff]  ;;  %v6509_v27 = vmax.f32 %v5460_v43, 0.0 }
 0x2d2   :  { %6971 = vst [vmem:[#allocation180_spill] sm:$0xff] %v5475_v8  ;;  %v6973_v24 = vmax.f32 %v6972_v38, 0.0 }
 0x2d3   :  { %1788 = vmatpush.xpose.msrb.mxu1 %v6505_v63 }
 0x2d4   :  { %1826 = vmatpush.xpose.msrb.mxu3 %v6500_v14  ;;  %v6974_v14 = vld [vmem:[#allocation177_spill] sm:$0xff]  ;;  %1769 = vmatmul.f32.vlgmr.msrb.gmra.mxu0 %v1509_v13  ;;  %v6983_v13 = vmax.f32 %v6982_v53, 0.0  ;;  %v6990_v53 = vld [vmem:[#allocation38_spill] sm:$0xff] }
 0x2d5   :  { %1835 = vmatpush.msra.mxu0 %v6973_v24  ;;  %v5484_v44 = vadd.f32 %v6974_v14, %v6958_v52  ;;  %1807 = vmatpush.xpose.msrb.mxu2 %v6506_v10  ;;  %v6978_v24 = vld [vmem:[#allocation42_spill] sm:$0xff]  ;;  %v6508_v14 = vmax.f32 %v5475_v8, 0.0  ;;  %v6980_v52 = vld [vmem:[#allocation43_spill] sm:$0xff]  ;;  %v6984_v10 = vld [vmem:[#allocation48_spill] sm:$0xff] }
 0x2d6   :  { %v6979_v38 = vmax.f32 %v6978_v24, 0.0  ;;  %v6981_v63 = vmax.f32 %v6980_v52, 0.0  ;;  %1789 = vmatmul.f32.vlgmr.msrb.gmra.mxu1 %v1510_v29  ;;  %v6985_v15 = vmax.f32 %v6984_v10, 0.0  ;;  %v1511_v24 = vld [vmem:[%s6060_s3 + $0x70] sm:$0xff]  ;;  %v6992_v10 = vld [vmem:[#allocation40_spill] sm:$0xff]  ;;  %v7006_v8 = vld [vmem:[#allocation49_spill] sm:$0xff] }
 0x2d7   :  { %6975 = vst [vmem:[#allocation198_spill] sm:$0xff] %v5484_v44  ;;  %1855 = vmatpush.msra.mxu1 %v6977_v17  ;;  %v6511_v17 = vmax.f32 %v5484_v44, 0.0  ;;  %v6988_v29 = vld [vmem:[#allocation55_spill] sm:$0xff]  ;;  %v7007_v43 = vmax.f32 %v7006_v8, 0.0 }
 0x2d8   :  { %1827 = vmatpush.xpose.msrb.mxu3 %v6509_v27  ;;  %1836 = vmatpush.msra.mxu0 %v6979_v38  ;;  %v6989_v52 = vmax.f32 %v6988_v29, 0.0  ;;  %v6994_v27 = vld [vmem:[#allocation58_spill] sm:$0xff]  ;;  %v7020_v8 = vld [vmem:[#allocation79_spill] sm:$0xff] }
 0x2d9   :  { %1856 = vmatpush.msra.mxu1 %v6981_v63  ;;  %1808 = vmatpush.xpose.msrb.mxu2 %v6508_v14  ;;  %v6986_v63 = vld [vmem:[#allocation54_spill] sm:$0xff]  ;;  %v1512_v14 = vld [vmem:[%s6060_s3 + $0x78] sm:$0xff]  ;;  %v6995_v44 = vmax.f32 %v6994_v27, 0.0 }
 0x2da   :  { %1837 = vmatpush.msra.mxu0 %v6983_v13  ;;  %v6987_v38 = vmax.f32 %v6986_v63, 0.0  ;;  %v6991_v13 = vmax.f32 %v6990_v53, 0.0 }
 0x2db   :  { %1857 = vmatpush.msra.mxu1 %v6985_v15  ;;  %v6993_v15 = vmax.f32 %v6992_v10, 0.0 }
 0x2dc   :  { %1828 = vmatpush.xpose.msrb.mxu3 %v6511_v17  ;;  %1838 = vmatpush.msra.mxu0 %v6987_v38  ;;  %v6996_v17 = vld [vmem:[#allocation60_spill] sm:$0xff] }
 0x2dd   :  { %1858 = vmatpush.msra.mxu1 %v6989_v52  ;;  %1875 = vmatpush.msra.mxu2 %v6991_v13  ;;  %v6997_v63 = vmax.f32 %v6996_v17, 0.0  ;;  %v6998_v38 = vld [vmem:[#allocation44_spill] sm:$0xff]  ;;  %v7000_v52 = vld [vmem:[#allocation45_spill] sm:$0xff]  ;;  %v7002_v13 = vld [vmem:[#allocation66_spill] sm:$0xff] }
 0x2de   :  { %1809 = vmatmul.f32.vlgmr.msrb.gmra.mxu2 %v1511_v24  ;;  %1839 = vmatpush.msra.mxu0 %v6995_v44  ;;  %v6999_v29 = vmax.f32 %v6998_v38, 0.0  ;;  %v7001_v53 = vmax.f32 %v7000_v52, 0.0  ;;  %v7003_v10 = vmax.f32 %v7002_v13, 0.0  ;;  %v7004_v24 = vld [vmem:[#allocation67_spill] sm:$0xff]  ;;  %v7008_v44 = vld [vmem:[#allocation52_spill] sm:$0xff]  ;;  %v7010_v17 = vld [vmem:[#allocation70_spill] sm:$0xff] }
 0x2df   :  { %1859 = vmatpush.msra.mxu1 %v6997_v63  ;;  %1829 = vmatmul.f32.vlgmr.msrb.gmra.mxu3 %v1512_v14  ;;  %v7009_v27 = vmax.f32 %v7008_v44, 0.0  ;;  %v7011_v63 = vmax.f32 %v7010_v17, 0.0  ;;  %v7012_v38 = vld [vmem:[#allocation72_spill] sm:$0xff] }
 0x2e0   :  { %1895 = vmatpush.msra.mxu3 %v6993_v15  ;;  %1876 = vmatpush.msra.mxu2 %v6999_v29  ;;  %v7005_v15 = vmax.f32 %v7004_v24, 0.0  ;;  %v7013_v29 = vmax.f32 %v7012_v38, 0.0  ;;  %v7014_v52 = vld [vmem:[#allocation56_spill] sm:$0xff] }
 0x2e1   :  { %1840 = vmatpush.msra.mxu0 %v7003_v10  ;;  %v7015_v14 = vmax.f32 %v7014_v52, 0.0  ;;  %v7018_v10 = vld [vmem:[#allocation78_spill] sm:$0xff] }
 0x2e2   :  { %1896 = vmatpush.msra.mxu3 %v7001_v53  ;;  %1860 = vmatpush.msra.mxu1 %v7005_v15  ;;  %v7016_v53 = vld [vmem:[#allocation57_spill] sm:$0xff]  ;;  %v7019_v24 = vmax.f32 %v7018_v10, 0.0 }
 0x2e3   :  { %1877 = vmatpush.msra.mxu2 %v7007_v43  ;;  %1841 = vmatpush.msra.mxu0 %v7011_v63  ;;  %v7017_v13 = vmax.f32 %v7016_v53, 0.0  ;;  %v7021_v43 = vmax.f32 %v7020_v8, 0.0  ;;  %v7022_v15 = vld [vmem:[#allocation61_spill] sm:$0xff]  ;;  %v7026_v63 = vld [vmem:[#allocation82_spill] sm:$0xff] }
 0x2e4   :  { %1897 = vmatpush.msra.mxu3 %v7009_v27  ;;  %1861 = vmatpush.msra.mxu1 %v7013_v29  ;;  %v7023_v44 = vmax.f32 %v7022_v15, 0.0  ;;  %v7024_v27 = vld [vmem:[#allocation64_spill] sm:$0xff]  ;;  %v7027_v38 = vmax.f32 %v7026_v63, 0.0 }
 0x2e5   :  { %1878 = vmatpush.msra.mxu2 %v7015_v14  ;;  %1842 = vmatpush.msra.mxu0 %v7019_v24  ;;  %v7025_v17 = vmax.f32 %v7024_v27, 0.0  ;;  %v7028_v29 = vld [vmem:[#allocation84_spill] sm:$0xff]  ;;  %v7034_v24 = vld [vmem:[#allocation90_spill] sm:$0xff] }
 0x2e6   :  { %1898 = vmatpush.msra.mxu3 %v7017_v13  ;;  %1862 = vmatpush.msra.mxu1 %v7021_v43  ;;  %v7029_v52 = vmax.f32 %v7028_v29, 0.0  ;;  %v7030_v14 = vld [vmem:[#allocation68_spill] sm:$0xff]  ;;  %v7032_v13 = vld [vmem:[#allocation69_spill] sm:$0xff]  ;;  %v7035_v8 = vmax.f32 %v7034_v24, 0.0  ;;  %v7036_v43 = vld [vmem:[#allocation91_spill] sm:$0xff] }
 0x2e7   :  { %1879 = vmatpush.msra.mxu2 %v7023_v44  ;;  %1843 = vmatpush.msra.mxu0 %v7027_v38  ;;  %v7031_v53 = vmax.f32 %v7030_v14, 0.0  ;;  %v7033_v10 = vmax.f32 %v7032_v13, 0.0  ;;  %v7037_v15 = vmax.f32 %v7036_v43, 0.0  ;;  %v7038_v44 = vld [vmem:[#allocation73_spill] sm:$0xff]  ;;  %v7042_v38 = vld [vmem:[#allocation94_spill] sm:$0xff] }
 0x2e8   :  { %1899 = vmatpush.msra.mxu3 %v7025_v17  ;;  %1863 = vmatpush.msra.mxu1 %v7029_v52  ;;  %v7039_v27 = vmax.f32 %v7038_v44, 0.0  ;;  %v7040_v17 = vld [vmem:[#allocation76_spill] sm:$0xff]  ;;  %v7043_v29 = vmax.f32 %v7042_v38, 0.0 }
 0x2e9   :  { %1880 = vmatpush.msra.mxu2 %v7031_v53  ;;  %1844 = vmatpush.msra.mxu0 %v7035_v8  ;;  %v7041_v63 = vmax.f32 %v7040_v17, 0.0  ;;  %v7044_v52 = vld [vmem:[#allocation96_spill] sm:$0xff]  ;;  %v7050_v8 = vld [vmem:[#allocation101_spill] sm:$0xff] }
 0x2ea   :  { %1900 = vmatpush.msra.mxu3 %v7033_v10  ;;  %1864 = vmatpush.msra.mxu1 %v7037_v15  ;;  %v7045_v14 = vmax.f32 %v7044_v52, 0.0  ;;  %v7046_v53 = vld [vmem:[#allocation80_spill] sm:$0xff]  ;;  %v7048_v10 = vld [vmem:[#allocation81_spill] sm:$0xff]  ;;  %v7051_v43 = vmax.f32 %v7050_v8, 0.0  ;;  %v7052_v15 = vld [vmem:[#allocation102_spill] sm:$0xff] }
 0x2eb   :  { %1881 = vmatpush.msra.mxu2 %v7039_v27  ;;  %1845 = vmatpush.msra.mxu0 %v7043_v29  ;;  %v7047_v13 = vmax.f32 %v7046_v53, 0.0  ;;  %v7049_v24 = vmax.f32 %v7048_v10, 0.0  ;;  %v7053_v44 = vmax.f32 %v7052_v15, 0.0  ;;  %v7054_v27 = vld [vmem:[#allocation85_spill] sm:$0xff]  ;;  %v7058_v29 = vld [vmem:[#allocation30_spill] sm:$0xff] }
 0x2ec   :  { %1901 = vmatpush.msra.mxu3 %v7041_v63  ;;  %1865 = vmatpush.msra.mxu1 %v7045_v14  ;;  %v7055_v17 = vmax.f32 %v7054_v27, 0.0  ;;  %v7056_v63 = vld [vmem:[#allocation88_spill] sm:$0xff]  ;;  %v7059_v52 = vmax.f32 %v7058_v29, 0.0  ;;  %v7060_v14 = vld [vmem:[#allocation31_spill] sm:$0xff] }
 0x2ed   :  { %1882 = vmatpush.msra.mxu2 %v7047_v13  ;;  %1846 = vmatpush.msra.mxu0 %v7051_v43  ;;  %v7057_v38 = vmax.f32 %v7056_v63, 0.0  ;;  %v7061_v53 = vmax.f32 %v7060_v14, 0.0  ;;  %v7062_v13 = vld [vmem:[#allocation92_spill] sm:$0xff] }
 0x2ee   :  { %1902 = vmatpush.msra.mxu3 %v7049_v24  ;;  %1866 = vmatpush.msra.mxu1 %v7053_v44  ;;  %v7063_v10 = vmax.f32 %v7062_v13, 0.0  ;;  %v7064_v24 = vld [vmem:[#allocation93_spill] sm:$0xff]  ;;  %v7066_v43 = vld [vmem:[#allocation8_spill] sm:$0xff] }
 0x2ef   :  { %1883 = vmatpush.msra.mxu2 %v7055_v17  ;;  %1847 = vmatpush.msra.mxu0 %v7059_v52  ;;  %v7065_v8 = vmax.f32 %v7064_v24, 0.0  ;;  %v7067_v15 = vmax.f32 %v7066_v43, 0.0  ;;  %v7068_v44 = vld [vmem:[#allocation28_spill] sm:$0xff]  ;;  %v7070_v17 = vld [vmem:[#allocation97_spill] sm:$0xff]  ;;  %v7074_v52 = vld [vmem:[#allocation22_spill] sm:$0xff] }
 0x2f0   :  { %1903 = vmatpush.msra.mxu3 %v7057_v38  ;;  %1867 = vmatpush.msra.mxu1 %v7061_v53  ;;  %v7069_v27 = vmax.f32 %v7068_v44, 0.0  ;;  %v7071_v63 = vmax.f32 %v7070_v17, 0.0  ;;  %v7072_v38 = vld [vmem:[#allocation99_spill] sm:$0xff]  ;;  %v7075_v14 = vmax.f32 %v7074_v52, 0.0 }
 0x2f1   :  { %1884 = vmatpush.msra.mxu2 %v7063_v10  ;;  %1848 = vmatpush.msra.mxu0 %v7067_v15  ;;  %v7073_v29 = vmax.f32 %v7072_v38, 0.0  ;;  %v7076_v53 = vld [vmem:[#allocation23_spill] sm:$0xff]  ;;  %v7082_v15 = vld [vmem:[#allocation9_spill] sm:$0xff] }
 0x2f2   :  { %1904 = vmatpush.msra.mxu3 %v7065_v8  ;;  %1868 = vmatpush.msra.mxu1 %v7069_v27  ;;  %v7077_v13 = vmax.f32 %v7076_v53, 0.0  ;;  %v7078_v10 = vld [vmem:[#allocation103_spill] sm:$0xff]  ;;  %v7080_v8 = vld [vmem:[#allocation34_spill] sm:$0xff]  ;;  %v7083_v44 = vmax.f32 %v7082_v15, 0.0 }
 0x2f3   :  { %1885 = vmatpush.msra.mxu2 %v7071_v63  ;;  %1849 = vmatpush.msra.mxu0 %v7075_v14  ;;  %v7079_v24 = vmax.f32 %v7078_v10, 0.0  ;;  %v7081_v43 = vmax.f32 %v7080_v8, 0.0  ;;  %v7084_v27 = vld [vmem:[#allocation18_spill] sm:$0xff]  ;;  %v7086_v63 = vld [vmem:[#allocation32_spill] sm:$0xff]  ;;  %v7090_v14 = vld [vmem:[#allocation21_spill] sm:$0xff] }
 0x2f4   :  { %1905 = vmatpush.msra.mxu3 %v7073_v29  ;;  %1869 = vmatpush.msra.mxu1 %v7077_v13  ;;  %v7085_v17 = vmax.f32 %v7084_v27, 0.0  ;;  %v7087_v38 = vmax.f32 %v7086_v63, 0.0  ;;  %v7088_v29 = vld [vmem:[#allocation33_spill] sm:$0xff]  ;;  %v7091_v53 = vmax.f32 %v7090_v14, 0.0  ;;  %v7092_v13 = vld [vmem:[#allocation10_spill] sm:$0xff] }
 0x2f5   :  { %1886 = vmatpush.msra.mxu2 %v7079_v24  ;;  %1850 = vmatpush.msra.mxu0 %v7083_v44  ;;  %v7089_v52 = vmax.f32 %v7088_v29, 0.0  ;;  %v7093_v10 = vmax.f32 %v7092_v13, 0.0  ;;  %v7094_v24 = vld [vmem:[#allocation26_spill] sm:$0xff]  ;;  %v7098_v44 = vld [vmem:[#allocation15_spill] sm:$0xff] }
 0x2f6   :  { %1906 = vmatpush.msra.mxu3 %v7081_v43  ;;  %1870 = vmatpush.msra.mxu1 %v7085_v17  ;;  %v7095_v8 = vmax.f32 %v7094_v24, 0.0  ;;  %v7096_v43 = vld [vmem:[#allocation29_spill] sm:$0xff]  ;;  %v7099_v27 = vmax.f32 %v7098_v44, 0.0  ;;  %v7100_v17 = vld [vmem:[#allocation16_spill] sm:$0xff] }
 0x2f7   :  { %1887 = vmatpush.msra.mxu2 %v7087_v38  ;;  %1915 = vmatpush.msrb.mxu0 %v7091_v53  ;;  %v7097_v15 = vmax.f32 %v7096_v43, 0.0  ;;  %v7101_v63 = vmax.f32 %v7100_v17, 0.0  ;;  %v7102_v38 = vld [vmem:[#allocation24_spill] sm:$0xff] }
 0x2f8   :  { %1907 = vmatpush.msra.mxu3 %v7089_v52  ;;  %1935 = vmatpush.msrb.mxu1 %v7093_v10  ;;  %v7103_v29 = vmax.f32 %v7102_v38, 0.0  ;;  %v7104_v52 = vld [vmem:[#allocation25_spill] sm:$0xff]  ;;  %v7106_v53 = vld [vmem:[#allocation108_spill] sm:$0xff]  ;;  %v7108_v10 = vld [vmem:[#allocation110_spill] sm:$0xff] }
 0x2f9   :  { %1888 = vmatpush.msra.mxu2 %v7095_v8  ;;  %1916 = vmatpush.msrb.mxu0 %v7099_v27  ;;  %v7105_v14 = vmax.f32 %v7104_v52, 0.0  ;;  %v7107_v13 = vmax.f32 %v7106_v53, 0.0  ;;  %v7109_v24 = vmax.f32 %v7108_v10, 0.0  ;;  %v7110_v8 = vld [vmem:[#allocation19_spill] sm:$0xff]  ;;  %v7114_v27 = vld [vmem:[#allocation116_spill] sm:$0xff] }
 0x2fa   :  { %1908 = vmatpush.msra.mxu3 %v7097_v15  ;;  %1936 = vmatpush.msrb.mxu1 %v7101_v63  ;;  %v7111_v43 = vmax.f32 %v7110_v8, 0.0  ;;  %v7112_v15 = vld [vmem:[#allocation20_spill] sm:$0xff]  ;;  %v7115_v17 = vmax.f32 %v7114_v27, 0.0  ;;  %v7116_v63 = vld [vmem:[#allocation117_spill] sm:$0xff] }
 0x2fb   :  { %1889 = vmatpush.msra.mxu2 %v7103_v29  ;;  %1917 = vmatpush.msrb.mxu0 %v7107_v13  ;;  %v7113_v44 = vmax.f32 %v7112_v15, 0.0  ;;  %v7117_v38 = vmax.f32 %v7116_v63, 0.0  ;;  %v7118_v29 = vld [vmem:[#allocation11_spill] sm:$0xff]  ;;  %v7122_v13 = vld [vmem:[#allocation120_spill] sm:$0xff] }
 0x2fc   :  { %1909 = vmatpush.msra.mxu3 %v7105_v14  ;;  %1937 = vmatpush.msrb.mxu1 %v7109_v24  ;;  %v7119_v52 = vmax.f32 %v7118_v29, 0.0  ;;  %v7120_v14 = vld [vmem:[#allocation13_spill] sm:$0xff]  ;;  %v7123_v10 = vmax.f32 %v7122_v13, 0.0  ;;  %v7124_v24 = vld [vmem:[#allocation122_spill] sm:$0xff] }
 0x2fd   :  { %1890 = vmatpush.msra.mxu2 %v7111_v43  ;;  %1918 = vmatpush.msrb.mxu0 %v7115_v17  ;;  %v7121_v53 = vmax.f32 %v7120_v14, 0.0  ;;  %v7125_v8 = vmax.f32 %v7124_v24, 0.0  ;;  %v7126_v43 = vld [vmem:[#allocation17_spill] sm:$0xff]  ;;  %v7130_v17 = vld [vmem:[#allocation128_spill] sm:$0xff] }
 0x2fe   :  { %1910 = vmatpush.msra.mxu3 %v7113_v44  ;;  %1938 = vmatpush.msrb.mxu1 %v7117_v38  ;;  %v7127_v15 = vmax.f32 %v7126_v43, 0.0  ;;  %v7128_v44 = vld [vmem:[#allocation107_spill] sm:$0xff]  ;;  %v7131_v63 = vmax.f32 %v7130_v17, 0.0  ;;  %v7132_v38 = vld [vmem:[#allocation129_spill] sm:$0xff] }
 0x2ff   :  { %1955 = vmatpush.msrb.mxu2 %v7119_v52  ;;  %1919 = vmatpush.msrb.mxu0 %v7123_v10  ;;  %v7129_v27 = vmax.f32 %v7128_v44, 0.0  ;;  %v7133_v29 = vmax.f32 %v7132_v38, 0.0  ;;  %v7134_v52 = vld [vmem:[#allocation111_spill] sm:$0xff]  ;;  %v7138_v10 = vld [vmem:[#allocation132_spill] sm:$0xff] }
 0x300   :  { %1975 = vmatpush.msrb.mxu3 %v7121_v53  ;;  %1939 = vmatpush.msrb.mxu1 %v7125_v8  ;;  %v7135_v14 = vmax.f32 %v7134_v52, 0.0  ;;  %v7136_v53 = vld [vmem:[#allocation114_spill] sm:$0xff]  ;;  %v7139_v24 = vmax.f32 %v7138_v10, 0.0 }
 0x301   :  { %1956 = vmatpush.msrb.mxu2 %v7127_v15  ;;  %1920 = vmatpush.msrb.mxu0 %v7131_v63  ;;  %v7137_v13 = vmax.f32 %v7136_v53, 0.0  ;;  %v7140_v8 = vld [vmem:[#allocation134_spill] sm:$0xff]  ;;  %v7146_v63 = vld [vmem:[#allocation140_spill] sm:$0xff] }
 0x302   :  { %1976 = vmatpush.msrb.mxu3 %v7129_v27  ;;  %1940 = vmatpush.msrb.mxu1 %v7133_v29  ;;  %v7141_v43 = vmax.f32 %v7140_v8, 0.0  ;;  %v7142_v15 = vld [vmem:[#allocation118_spill] sm:$0xff]  ;;  %v7144_v27 = vld [vmem:[#allocation119_spill] sm:$0xff]  ;;  %v7147_v38 = vmax.f32 %v7146_v63, 0.0  ;;  %v7148_v29 = vld [vmem:[#allocation141_spill] sm:$0xff] }
 0x303   :  { %1957 = vmatpush.msrb.mxu2 %v7135_v14  ;;  %1921 = vmatpush.msrb.mxu0 %v7139_v24  ;;  %v7143_v44 = vmax.f32 %v7142_v15, 0.0  ;;  %v7145_v17 = vmax.f32 %v7144_v27, 0.0  ;;  %v7149_v52 = vmax.f32 %v7148_v29, 0.0  ;;  %v7150_v14 = vld [vmem:[#allocation123_spill] sm:$0xff]  ;;  %v7154_v24 = vld [vmem:[#allocation144_spill] sm:$0xff] }
 0x304   :  { %1977 = vmatpush.msrb.mxu3 %v7137_v13  ;;  %1941 = vmatpush.msrb.mxu1 %v7141_v43  ;;  %v7151_v53 = vmax.f32 %v7150_v14, 0.0  ;;  %v7152_v13 = vld [vmem:[#allocation126_spill] sm:$0xff]  ;;  %v7155_v8 = vmax.f32 %v7154_v24, 0.0 }
 0x305   :  { %1958 = vmatpush.msrb.mxu2 %v7143_v44  ;;  %1922 = vmatpush.msrb.mxu0 %v7147_v38  ;;  %v7153_v10 = vmax.f32 %v7152_v13, 0.0  ;;  %v7156_v43 = vld [vmem:[#allocation146_spill] sm:$0xff]  ;;  %v7162_v38 = vld [vmem:[#allocation152_spill] sm:$0xff] }
 0x306   :  { %1978 = vmatpush.msrb.mxu3 %v7145_v17  ;;  %1942 = vmatpush.msrb.mxu1 %v7149_v52  ;;  %v7157_v15 = vmax.f32 %v7156_v43, 0.0  ;;  %v7158_v44 = vld [vmem:[#allocation130_spill] sm:$0xff]  ;;  %v7160_v17 = vld [vmem:[#allocation131_spill] sm:$0xff]  ;;  %v7163_v29 = vmax.f32 %v7162_v38, 0.0  ;;  %v7164_v52 = vld [vmem:[#allocation153_spill] sm:$0xff] }
 0x307   :  { %1959 = vmatpush.msrb.mxu2 %v7151_v53  ;;  %1923 = vmatpush.msrb.mxu0 %v7155_v8  ;;  %v7159_v27 = vmax.f32 %v7158_v44, 0.0  ;;  %v7161_v63 = vmax.f32 %v7160_v17, 0.0  ;;  %v7165_v14 = vmax.f32 %v7164_v52, 0.0  ;;  %v7166_v53 = vld [vmem:[#allocation135_spill] sm:$0xff]  ;;  %v7170_v8 = vld [vmem:[#allocation156_spill] sm:$0xff] }
 0x308   :  { %1979 = vmatpush.msrb.mxu3 %v7153_v10  ;;  %1943 = vmatpush.msrb.mxu1 %v7157_v15  ;;  %v7167_v13 = vmax.f32 %v7166_v53, 0.0  ;;  %v7168_v10 = vld [vmem:[#allocation138_spill] sm:$0xff]  ;;  %v7171_v43 = vmax.f32 %v7170_v8, 0.0 }
 0x309   :  { %1960 = vmatpush.msrb.mxu2 %v7159_v27  ;;  %1924 = vmatpush.msrb.mxu0 %v7163_v29  ;;  %v7169_v24 = vmax.f32 %v7168_v10, 0.0  ;;  %v7172_v15 = vld [vmem:[#allocation158_spill] sm:$0xff]  ;;  %v7178_v29 = vld [vmem:[#allocation87_spill] sm:$0xff] }
 0x30a   :  { %1980 = vmatpush.msrb.mxu3 %v7161_v63  ;;  %1944 = vmatpush.msrb.mxu1 %v7165_v14  ;;  %v7173_v44 = vmax.f32 %v7172_v15, 0.0  ;;  %v7174_v27 = vld [vmem:[#allocation142_spill] sm:$0xff]  ;;  %v7176_v63 = vld [vmem:[#allocation143_spill] sm:$0xff]  ;;  %v7179_v52 = vmax.f32 %v7178_v29, 0.0  ;;  %v7180_v14 = vld [vmem:[#allocation89_spill] sm:$0xff] }
 0x30b   :  { %1961 = vmatpush.msrb.mxu2 %v7167_v13  ;;  %1925 = vmatpush.msrb.mxu0 %v7171_v43  ;;  %v7175_v17 = vmax.f32 %v7174_v27, 0.0  ;;  %v7177_v38 = vmax.f32 %v7176_v63, 0.0  ;;  %v7181_v53 = vmax.f32 %v7180_v14, 0.0  ;;  %v7182_v13 = vld [vmem:[#allocation147_spill] sm:$0xff] }
 0x30c   :  { %1981 = vmatpush.msrb.mxu3 %v7169_v24  ;;  %1945 = vmatpush.msrb.mxu1 %v7173_v44  ;;  %v7183_v10 = vmax.f32 %v7182_v13, 0.0  ;;  %v7184_v24 = vld [vmem:[#allocation150_spill] sm:$0xff]  ;;  %v7186_v43 = vld [vmem:[#allocation75_spill] sm:$0xff]  ;;  %v7188_v44 = vld [vmem:[#allocation77_spill] sm:$0xff] }
 0x30d   :  { %1962 = vmatpush.msrb.mxu2 %v7175_v17  ;;  %1926 = vmatpush.msrb.mxu0 %v7179_v52  ;;  %v7185_v8 = vmax.f32 %v7184_v24, 0.0  ;;  %v7187_v15 = vmax.f32 %v7186_v43, 0.0  ;;  %v7189_v27 = vmax.f32 %v7188_v44, 0.0  ;;  %v7190_v17 = vld [vmem:[#allocation154_spill] sm:$0xff]  ;;  %v7194_v52 = vld [vmem:[#allocation63_spill] sm:$0xff]  ;;  %v7200_v43 = vld [vmem:[#allocation161_spill] sm:$0xff] }
 0x30e   :  { %1982 = vmatpush.msrb.mxu3 %v7177_v38  ;;  %1946 = vmatpush.msrb.mxu1 %v7181_v53  ;;  %v7191_v63 = vmax.f32 %v7190_v17, 0.0  ;;  %v7192_v38 = vld [vmem:[#allocation155_spill] sm:$0xff]  ;;  %v7195_v14 = vmax.f32 %v7194_v52, 0.0  ;;  %v7196_v53 = vld [vmem:[#allocation65_spill] sm:$0xff]  ;;  %v7208_v52 = vld [vmem:[#allocation98_spill] sm:$0xff] }
 0x30f   :  { %1963 = vmatpush.msrb.mxu2 %v7183_v10  ;;  %1927 = vmatpush.msrb.mxu0 %v7187_v15  ;;  %v7193_v29 = vmax.f32 %v7192_v38, 0.0  ;;  %v7197_v13 = vmax.f32 %v7196_v53, 0.0  ;;  %v7198_v10 = vld [vmem:[#allocation159_spill] sm:$0xff]  ;;  %v7201_v15 = vmax.f32 %v7200_v43, 0.0  ;;  %v7204_v17 = vld [vmem:[#allocation53_spill] sm:$0xff] }
 0x310   :  { %1983 = vmatpush.msrb.mxu3 %v7185_v8  ;;  %1947 = vmatpush.msrb.mxu1 %v7189_v27  ;;  %v7199_v24 = vmax.f32 %v7198_v10, 0.0  ;;  %v5733_v8 = vld [vmem:[%s6061_s4] sm:$0x1]  ;;  %v7202_v44 = vld [vmem:[#allocation51_spill] sm:$0xff] }
 0x311   :  { %1964 = vmatpush.msrb.mxu2 %v7191_v63  ;;  %1928 = vmatpush.msrb.mxu0 %v7195_v14  ;;  %v7203_v27 = vmax.f32 %v7202_v44, 0.0  ;;  %v7205_v63 = vmax.f32 %v7204_v17, 0.0  ;;  %v7206_v38 = vld [vmem:[#allocation95_spill] sm:$0xff]  ;;  %v7209_v14 = vmax.f32 %v7208_v52, 0.0  ;;  %v7212_v10 = vld [vmem:[#allocation41_spill] sm:$0xff]  ;;  %v7216_v44 = vld [vmem:[#allocation86_spill] sm:$0xff] }
 0x312   :  { %1984 = vmatpush.msrb.mxu3 %v7193_v29  ;;  %1948 = vmatpush.msrb.mxu1 %v7197_v13  ;;  %v7207_v29 = vmax.f32 %v7206_v38, 0.0  ;;  %v7210_v53 = vld [vmem:[#allocation39_spill] sm:$0xff]  ;;  %v7220_v38 = vld [vmem:[#allocation164_spill] sm:$0xff] }
 0x313   :  { %1965 = vmatpush.msrb.mxu2 %v7199_v24  ;;  %1929 = vmatpush.msrb.mxu0 %v7203_v27  ;;  %v7211_v13 = vmax.f32 %v7210_v53, 0.0  ;;  %v7213_v24 = vmax.f32 %v7212_v10, 0.0  ;;  %v7214_v43 = vld [vmem:[#allocation83_spill] sm:$0xff]  ;;  %v7217_v27 = vmax.f32 %v7216_v44, 0.0  ;;  %v7224_v53 = vld [vmem:[#allocation74_spill] sm:$0xff]  ;;  %v7226_v10 = vld [vmem:[#allocation169_spill] sm:$0xff] }
 0x314   :  { %1985 = vmatpush.msrb.mxu3 %v7201_v15  ;;  %1949 = vmatpush.msrb.mxu1 %v7205_v63  ;;  %v7215_v15 = vmax.f32 %v7214_v43, 0.0  ;;  %v7218_v17 = vld [vmem:[#allocation163_spill] sm:$0xff]  ;;  %v7228_v43 = vld [vmem:[#allocation170_spill] sm:$0xff] }
 0x315   :  { %1966 = vmatpush.msrb.mxu2 %v7207_v29  ;;  %1911 = vmatmul.f32.vlgmr.msra.gmra.mxu3 %v5733_v8  ;;  %v7219_v63 = vmax.f32 %v7218_v17, 0.0  ;;  %v7221_v29 = vmax.f32 %v7220_v38, 0.0  ;;  %v7222_v52 = vld [vmem:[#allocation71_spill] sm:$0xff]  ;;  %v7232_v17 = vld [vmem:[#allocation62_spill] sm:$0xff]  ;;  %v7234_v38 = vld [vmem:[#allocation173_spill] sm:$0xff] }
 0x316   :  { %1986 = vmatpush.msrb.mxu3 %v7209_v14  ;;  %1891 = vmatmul.f32.vlgmr.msra.gmra.mxu2 %v5733_v8  ;;  %v7223_v14 = vmax.f32 %v7222_v52, 0.0  ;;  %v7230_v44 = vld [vmem:[#allocation59_spill] sm:$0xff] }
 0x317   :  { %1930 = vmatpush.msrb.mxu0 %v7211_v13  ;;  %1950 = vmatpush.msrb.mxu1 %v7213_v24  ;;  %v7225_v13 = vmax.f32 %v7224_v53, 0.0  ;;  %v7227_v24 = vmax.f32 %v7226_v10, 0.0  ;;  %v7236_v52 = vld [vmem:[#allocation175_spill] sm:$0xff]  ;;  %v7240_v10 = vld [vmem:[#allocation50_spill] sm:$0xff] }
 0x318   :  { %1967 = vmatpush.msrb.mxu2 %v7215_v15  ;;  %1987 = vmatpush.msrb.mxu3 %v7217_v27  ;;  %v7229_v15 = vmax.f32 %v7228_v43, 0.0  ;;  %v7231_v27 = vmax.f32 %v7230_v44, 0.0  ;;  %v7238_v53 = vld [vmem:[#allocation47_spill] sm:$0xff]  ;;  %v7242_v43 = vld [vmem:[#allocation181_spill] sm:$0xff]  ;;  %v7244_v44 = vld [vmem:[#allocation182_spill] sm:$0xff] }
 0x319   :  { %1851 = vmatmul.f32.vlgmr.msra.gmra.mxu0 %v5733_v8  ;;  %1871 = vmatmul.f32.vlgmr.msra.gmra.mxu1 %v5733_v8 }
 0x31a   :  { %1995 = vmatpush.msra.mxu0 %v7219_v63  ;;  %2015 = vmatpush.msra.mxu1 %v7221_v29  ;;  %v7233_v63 = vmax.f32 %v7232_v17, 0.0  ;;  %v7235_v29 = vmax.f32 %v7234_v38, 0.0  ;;  %v7246_v17 = vld [vmem:[#allocation165_spill] sm:$0xff]  ;;  %v7248_v38 = vld [vmem:[#allocation167_spill] sm:$0xff] }
 0x31b   :  { %1968 = vmatpush.msrb.mxu2 %v7223_v14  ;;  %1988 = vmatpush.msrb.mxu3 %v7225_v13  ;;  %v7237_v14 = vmax.f32 %v7236_v52, 0.0  ;;  %v7239_v13 = vmax.f32 %v7238_v53, 0.0  ;;  %v7250_v52 = vld [vmem:[#allocation185_spill] sm:$0xff]  ;;  %v7252_v53 = vld [vmem:[#allocation187_spill] sm:$0xff] }
 0x31c   :  { %1996 = vmatpush.msra.mxu0 %v7227_v24  ;;  %2016 = vmatpush.msra.mxu1 %v7229_v15  ;;  %v7241_v24 = vmax.f32 %v7240_v10, 0.0  ;;  %v7243_v15 = vmax.f32 %v7242_v43, 0.0  ;;  %v7254_v10 = vld [vmem:[#allocation171_spill] sm:$0xff]  ;;  %v7256_v43 = vld [vmem:[#allocation172_spill] sm:$0xff] }
 0x31d   :  { %1969 = vmatpush.msrb.mxu2 %v7231_v27  ;;  %1989 = vmatpush.msrb.mxu3 %v7233_v63  ;;  %v7245_v27 = vmax.f32 %v7244_v44, 0.0  ;;  %v7247_v63 = vmax.f32 %v7246_v17, 0.0  ;;  %v7258_v44 = vld [vmem:[#allocation193_spill] sm:$0xff]  ;;  %v7260_v17 = vld [vmem:[#allocation194_spill] sm:$0xff] }
 0x31e   :  { %1997 = vmatpush.msra.mxu0 %v7235_v29  ;;  %2017 = vmatpush.msra.mxu1 %v7237_v14  ;;  %v7249_v29 = vmax.f32 %v7248_v38, 0.0  ;;  %v7251_v14 = vmax.f32 %v7250_v52, 0.0  ;;  %v7262_v38 = vld [vmem:[#allocation176_spill] sm:$0xff]  ;;  %v7264_v52 = vld [vmem:[#allocation179_spill] sm:$0xff] }
 0x31f   :  { %1970 = vmatpush.msrb.mxu2 %v7239_v13  ;;  %1990 = vmatpush.msrb.mxu3 %v7241_v24  ;;  %v7253_v13 = vmax.f32 %v7252_v53, 0.0  ;;  %v7255_v24 = vmax.f32 %v7254_v10, 0.0  ;;  %v7266_v53 = vld [vmem:[#allocation197_spill] sm:$0xff]  ;;  %v7268_v10 = vld [vmem:[#allocation199_spill] sm:$0xff] }
 0x320   :  { %1971 = vmatmul.f32.vlgmr.msrb.gmra.mxu2 %v5733_v8  ;;  %1991 = vmatmul.f32.vlgmr.msrb.gmra.mxu3 %v5733_v8 }
 0x321   :  { %1998 = vmatpush.msra.mxu0 %v7243_v15  ;;  %2018 = vmatpush.msra.mxu1 %v7245_v27  ;;  %v7257_v15 = vmax.f32 %v7256_v43, 0.0  ;;  %v7259_v27 = vmax.f32 %v7258_v44, 0.0  ;;  %v7270_v43 = vld [vmem:[#allocation183_spill] sm:$0xff]  ;;  %v7272_v44 = vld [vmem:[#allocation184_spill] sm:$0xff] }
 0x322   :  { %2035 = vmatpush.msra.mxu2 %v7247_v63  ;;  %2055 = vmatpush.msra.mxu3 %v7249_v29  ;;  %v7261_v63 = vmax.f32 %v7260_v17, 0.0  ;;  %v7263_v29 = vmax.f32 %v7262_v38, 0.0  ;;  %v7274_v17 = vld [vmem:[#allocation205_spill] sm:$0xff]  ;;  %v7276_v38 = vld [vmem:[#allocation206_spill] sm:$0xff] }
 0x323   :  { %1999 = vmatpush.msra.mxu0 %v7251_v14  ;;  %2019 = vmatpush.msra.mxu1 %v7253_v13  ;;  %v7265_v14 = vmax.f32 %v7264_v52, 0.0  ;;  %v7267_v13 = vmax.f32 %v7266_v53, 0.0  ;;  %v7278_v52 = vld [vmem:[#allocation188_spill] sm:$0xff]  ;;  %v7280_v53 = vld [vmem:[#allocation191_spill] sm:$0xff] }
 0x324   :  { %2036 = vmatpush.msra.mxu2 %v7255_v24  ;;  %2056 = vmatpush.msra.mxu3 %v7257_v15  ;;  %v7269_v24 = vmax.f32 %v7268_v10, 0.0  ;;  %v7271_v15 = vmax.f32 %v7270_v43, 0.0  ;;  %v7282_v10 = vld [vmem:[#allocation209_spill] sm:$0xff]  ;;  %v7284_v43 = vld [vmem:[#allocation211_spill] sm:$0xff] }
 0x325   :  { %2000 = vmatpush.msra.mxu0 %v7259_v27  ;;  %2020 = vmatpush.msra.mxu1 %v7261_v63  ;;  %v7273_v27 = vmax.f32 %v7272_v44, 0.0  ;;  %v7275_v63 = vmax.f32 %v7274_v17, 0.0  ;;  %v7286_v44 = vld [vmem:[#allocation195_spill] sm:$0xff]  ;;  %v7288_v17 = vld [vmem:[#allocation196_spill] sm:$0xff] }
 0x326   :  { %2037 = vmatpush.msra.mxu2 %v7263_v29  ;;  %2057 = vmatpush.msra.mxu3 %v7265_v14  ;;  %v7277_v29 = vmax.f32 %v7276_v38, 0.0  ;;  %v7279_v14 = vmax.f32 %v7278_v52, 0.0  ;;  %v7290_v38 = vld [vmem:[#allocation215_spill] sm:$0xff]  ;;  %v7292_v52 = vld [vmem:[#allocation216_spill] sm:$0xff] }
 0x327   :  { %1931 = vmatmul.f32.vlgmr.msrb.gmra.mxu0 %v5733_v8  ;;  %1951 = vmatmul.f32.vlgmr.msrb.gmra.mxu1 %v5733_v8 }
 0x328   :  { %2001 = vmatpush.msra.mxu0 %v7267_v13  ;;  %2021 = vmatpush.msra.mxu1 %v7269_v24  ;;  %v7281_v13 = vmax.f32 %v7280_v53, 0.0  ;;  %v7283_v24 = vmax.f32 %v7282_v10, 0.0  ;;  %v7294_v53 = vld [vmem:[#allocation200_spill] sm:$0xff]  ;;  %v1550_v10 = vpop.f32.mrf.mxu1 }
 0x329   :  { %2038 = vmatpush.msra.mxu2 %v7271_v15  ;;  %2058 = vmatpush.msra.mxu3 %v7273_v27  ;;  %v7285_v15 = vmax.f32 %v7284_v43, 0.0  ;;  %v7287_v27 = vmax.f32 %v7286_v44, 0.0  ;;  %v7298_v43 = vld [vmem:[#allocation219_spill] sm:$0xff]  ;;  %v7300_v44 = vld [vmem:[#allocation221_spill] sm:$0xff] }
 0x32a   :  { %2002 = vmatpush.msra.mxu0 %v7275_v63  ;;  %2022 = vmatpush.msra.mxu1 %v7277_v29  ;;  %v7289_v63 = vmax.f32 %v7288_v17, 0.0  ;;  %v7291_v29 = vmax.f32 %v7290_v38, 0.0  ;;  %v7302_v17 = vld [vmem:[#allocation207_spill] sm:$0xff]  ;;  %v1530_v38 = vpop.f32.mrf.mxu0 }
 0x32b   :  { %2039 = vmatpush.msra.mxu2 %v7279_v14  ;;  %2059 = vmatpush.msra.mxu3 %v7281_v13  ;;  %v7293_v14 = vmax.f32 %v7292_v52, 0.0  ;;  %v7295_v13 = vmax.f32 %v7294_v53, 0.0 }
 0x32c   :  { %2003 = vmatpush.msra.mxu0 %v7283_v24  ;;  %2023 = vmatpush.msra.mxu1 %v7285_v15  ;;  %v7296_v24 = vld [vmem:[#allocation203_spill] sm:$0xff]  ;;  %v7299_v15 = vmax.f32 %v7298_v43, 0.0 }
 0x32d   :  { %2040 = vmatpush.msra.mxu2 %v7287_v27  ;;  %2060 = vmatpush.msra.mxu3 %v7289_v63  ;;  %v7297_v55 = vmax.f32 %v7296_v24, 0.0  ;;  %v7301_v27 = vmax.f32 %v7300_v44, 0.0  ;;  %v7303_v63 = vmax.f32 %v7302_v17, 0.0  ;;  %v7309_v24 = vmax.f32 %v7308_v9, 0.0  ;;  %v7312_v44 = vld [vmem:[#allocation214_spill] sm:$0xff]  ;;  %v7314_v17 = vld [vmem:[#allocation160_spill] sm:$0xff] }
 0x32e   :  { %2004 = vmatpush.msra.mxu0 %v7291_v29  ;;  %2024 = vmatpush.msra.mxu1 %v7293_v14  ;;  %v7304_v29 = vld [vmem:[#allocation208_spill] sm:$0xff]  ;;  %v7322_v9 = vld [vmem:[#allocation125_spill] sm:$0xff] }
 0x32f   :  { %2041 = vmatpush.msra.mxu2 %v7295_v13  ;;  %2061 = vmatpush.msra.mxu3 %v7297_v55  ;;  %v7305_v52 = vmax.f32 %v7304_v29, 0.0  ;;  %v7306_v14 = vld [vmem:[#allocation100_spill] sm:$0xff]  ;;  %v1551_v13 = vadd.f32 %v1550_v10, %v1530_v38  ;;  %v7317_v29 = vmax.f32 %v7316_v21, 0.0  ;;  %v7320_v10 = vld [vmem:[#allocation218_spill] sm:$0xff] }
 0x330   :  { %2005 = vmatpush.msra.mxu0 %v7299_v15  ;;  %2025 = vmatpush.msra.mxu1 %v7301_v27  ;;  %v7307_v53 = vmax.f32 %v7306_v14, 0.0  ;;  %v7310_v55 = vld [vmem:[#allocation212_spill] sm:$0xff]  ;;  %v1570_v15 = vpop.f32.mrf.mxu2  ;;  %v7313_v27 = vmax.f32 %v7312_v44, 0.0  ;;  %v7321_v38 = vmax.f32 %v7320_v10, 0.0  ;;  %v7326_v44 = vld [vmem:[#allocation222_spill] sm:$0xff] }
 0x331   :  { %2042 = vmatpush.msra.mxu2 %v7303_v63  ;;  %2062 = vmatpush.msra.mxu3 %v7305_v52  ;;  %v7311_v43 = vmax.f32 %v7310_v55, 0.0  ;;  %v7315_v63 = vmax.f32 %v7314_v17, 0.0  ;;  %v7318_v52 = vld [vmem:[#allocation217_spill] sm:$0xff]  ;;  %v7324_v55 = vld [vmem:[#allocation127_spill] sm:$0xff]  ;;  %v1590_v17 = vpop.f32.mrf.mxu3 }
 0x332   :  { %2006 = vmatpush.msra.mxu0 %v7307_v53  ;;  %2026 = vmatpush.msra.mxu1 %v7309_v24  ;;  %v7319_v14 = vmax.f32 %v7318_v52, 0.0  ;;  %v7323_v53 = vmax.f32 %v7322_v9, 0.0  ;;  %v1571_v24 = vadd.f32 %v1570_v15, %v1551_v13  ;;  %v7336_v13 = vld [vmem:[#allocation157_spill] sm:$0xff] }
 0x333   :  { %2043 = vmatpush.msra.mxu2 %v7311_v43  ;;  %2063 = vmatpush.msra.mxu3 %v7313_v27  ;;  %v7325_v43 = vmax.f32 %v7324_v55, 0.0  ;;  %v7327_v27 = vmax.f32 %v7326_v44, 0.0  ;;  %v7337_v15 = vmax.f32 %v7336_v13, 0.0  ;;  %v7340_v44 = vld [vmem:[#allocation14_spill] sm:$0xff]  ;;  %v7349_v13 = vld [vmem:[#allocation133_spill] sm:$0xff] }
 0x334   :  { %2007 = vmatpush.msra.mxu0 %v7315_v63  ;;  %2027 = vmatpush.msra.mxu1 %v7317_v29  ;;  %v7328_v63 = vld [vmem:[#allocation162_spill] sm:$0xff]  ;;  %v7330_v29 = vld [vmem:[#allocation113_spill] sm:$0xff] }
 0x335   :  { %2044 = vmatpush.msra.mxu2 %v7319_v14  ;;  %2064 = vmatpush.msra.mxu3 %v7321_v38  ;;  %v7329_v21 = vmax.f32 %v7328_v63, 0.0  ;;  %v7331_v52 = vmax.f32 %v7330_v29, 0.0  ;;  %v7332_v14 = vld [vmem:[#allocation115_spill] sm:$0xff]  ;;  %v1610_v29 = vpop.f32.mrf.mxu0 }
 0x336   :  { %2008 = vmatpush.msra.mxu0 %v7323_v53  ;;  %2028 = vmatpush.msra.mxu1 %v7325_v43  ;;  %v7333_v10 = vmax.f32 %v7332_v14, 0.0  ;;  %v7334_v38 = vld [vmem:[#allocation151_spill] sm:$0xff]  ;;  %v7338_v53 = vld [vmem:[#allocation12_spill] sm:$0xff]  ;;  %v1591_v43 = vadd.f32 %v1590_v17, %v1571_v24 }
 0x337   :  { %2045 = vmatpush.msra.mxu2 %v7327_v27  ;;  %2065 = vmatpush.msra.mxu3 %v7329_v21  ;;  %v7335_v9 = vmax.f32 %v7334_v38, 0.0  ;;  %v7339_v55 = vmax.f32 %v7338_v53, 0.0  ;;  %v7341_v27 = vmax.f32 %v7340_v44, 0.0  ;;  %v7342_v63 = vld [vmem:[#allocation139_spill] sm:$0xff]  ;;  %v7351_v24 = vld [vmem:[#allocation136_spill] sm:$0xff]  ;;  %v7353_v53 = vmax.f32 %v5069_v48, 0.0 }
 0x338   :  { %2009 = vmatpush.msra.mxu0 %v7331_v52  ;;  %2029 = vmatpush.msra.mxu1 %v7333_v10  ;;  %v7343_v21 = vmax.f32 %v7342_v63, 0.0  ;;  %v7344_v52 = vld [vmem:[#allocation148_spill] sm:$0xff]  ;;  %v7346_v10 = vmax.f32 %v5063_v49, 0.0  ;;  %v7347_v38 = vld [vmem:[#allocation35_spill] sm:$0xff]  ;;  %v7352_v17 = vmax.f32 %v7351_v24, 0.0  ;;  %v7354_v44 = vmax.f32 %v5073_v5, 0.0  ;;  %v1630_v49 = vpop.f32.mrf.mxu1 }
 0x339   :  { %2046 = vmatpush.msra.mxu2 %v7335_v9  ;;  %2066 = vmatpush.msra.mxu3 %v7337_v15  ;;  %v7345_v14 = vmax.f32 %v7344_v52, 0.0  ;;  %v7348_v9 = vmax.f32 %v7347_v38, 0.0  ;;  %v7350_v15 = vmax.f32 %v7349_v13, 0.0  ;;  %v7361_v38 = vld [vmem:[#allocation109_spill] sm:$0xff]  ;;  %v7365_v5 = vmax.f32 %v5103_v59, 0.0 }
 0x33a   :  { %2010 = vmatpush.msra.mxu0 %v7339_v55  ;;  %2030 = vmatpush.msra.mxu1 %v7341_v27  ;;  %v1611_v55 = vadd.f32 %v1610_v29, %v1591_v43  ;;  %v7355_v27 = vld [vmem:[#allocation121_spill] sm:$0xff]  ;;  %v7362_v48 = vmax.f32 %v7361_v38, 0.0  ;;  %v7363_v43 = vld [vmem:[#allocation112_spill] sm:$0xff]  ;;  %v7366_v13 = vmax.f32 %v5111_v47, 0.0  ;;  %v7369_v24 = vmax.f32 %v5127_v6, 0.0  ;;  %v1670_v6 = vpop.f32.mrf.mxu3 }
 0x33b   :  { %2047 = vmatpush.msra.mxu2 %v7343_v21  ;;  %2067 = vmatpush.msra.mxu3 %v7345_v14  ;;  %v7356_v63 = vmax.f32 %v7355_v27, 0.0  ;;  %v7357_v21 = vld [vmem:[#allocation124_spill] sm:$0xff]  ;;  %v7359_v14 = vmax.f32 %v5081_v39, 0.0  ;;  %v7364_v29 = vmax.f32 %v7363_v43, 0.0  ;;  %v1650_v39 = vpop.f32.mrf.mxu2  ;;  %v7371_v59 = vmax.f32 %v5097_v0, 0.0 }
 0x33c   :  { %2075 = vmatpush.msrb.mxu0 %v7346_v10  ;;  %2095 = vmatpush.msrb.mxu1 %v7348_v9  ;;  %v7358_v52 = vmax.f32 %v7357_v21, 0.0  ;;  %v7360_v10 = vmax.f32 %v5085_v26, 0.0  ;;  %v1631_v9 = vadd.f32 %v1630_v49, %v1611_v55  ;;  %v7368_v26 = vmax.f32 %v5092_v57, 0.0  ;;  %v7410_v43 = vld [vmem:[#allocation104_spill] sm:$0xff] }
 0x33d   :  { %2048 = vmatpush.msra.mxu2 %v7350_v15  ;;  %2068 = vmatpush.msra.mxu3 %v7352_v17  ;;  %v7367_v15 = vmax.f32 %v5089_v32, 0.0  ;;  %v7370_v17 = vmax.f32 %v5135_v35, 0.0  ;;  %v7373_v47 = vmax.f32 %v5152_v2, 0.0  ;;  %v7374_v55 = vmax.f32 %v5161_v12, 0.0 }
 0x33e   :  { %2076 = vmatpush.msrb.mxu0 %v7353_v53  ;;  %2096 = vmatpush.msrb.mxu1 %v7354_v44  ;;  %v7372_v53 = vmax.f32 %v5107_v11, 0.0  ;;  %v1651_v32 = vadd.f32 %v1650_v39, %v1631_v9  ;;  %v7375_v57 = vmax.f32 %v5121_v16, 0.0  ;;  %v7376_v35 = vmax.f32 %v5131_v18, 0.0  ;;  %v7416_v9 = vld [vmem:[#allocation202_spill] sm:$0xff]  ;;  %v7418_v39 = vld [vmem:[#allocation145_spill] sm:$0xff] }
 0x33f   :  { %2049 = vmatpush.msra.mxu2 %v7356_v63  ;;  %2069 = vmatpush.msra.mxu3 %v7358_v52  ;;  %v7377_v0 = vmax.f32 %v5179_v62, 0.0  ;;  %v7378_v11 = vmax.f32 %v5189_v61, 0.0  ;;  %v7379_v2 = vmax.f32 %v5145_v41, 0.0  ;;  %v7380_v44 = vmax.f32 %v5156_v40, 0.0  ;;  %v1690_v62 = vpop.f32.mrf.mxu0 }
 0x340   :  { %2077 = vmatpush.msrb.mxu0 %v7359_v14  ;;  %2097 = vmatpush.msrb.mxu1 %v7360_v10  ;;  %v7381_v12 = vmax.f32 %v5207_v30, 0.0  ;;  %v1671_v16 = vadd.f32 %v1670_v6, %v1651_v32  ;;  %v7382_v27 = vmax.f32 %v5217_v45, 0.0  ;;  %v7383_v18 = vmax.f32 %v5172_v33, 0.0  ;;  %v7404_v14 = vld [vmem:[#allocation224_spill] sm:$0xff] }
 0x341   :  { %2050 = vmatpush.msra.mxu2 %v7362_v48  ;;  %2070 = vmatpush.msra.mxu3 %v7364_v29  ;;  %v7384_v61 = vmax.f32 %v5184_v34, 0.0  ;;  %v7385_v41 = vmax.f32 %v5235_v56, 0.0  ;;  %v7386_v40 = vmax.f32 %v5245_v36, 0.0  ;;  %v7387_v30 = vmax.f32 %v5200_v37, 0.0  ;;  %v1710_v56 = vpop.f32.mrf.mxu1 }
 0x342   :  { %2078 = vmatpush.msrb.mxu0 %v7365_v5  ;;  %2098 = vmatpush.msrb.mxu1 %v7366_v13  ;;  %v7388_v63 = vmax.f32 %v5212_v50, 0.0  ;;  %v7389_v45 = vmax.f32 %v5263_v25, 0.0  ;;  %v1691_v33 = vadd.f32 %v1690_v62, %v1671_v16  ;;  %v7390_v49 = vmax.f32 %v5273_v60, 0.0 }
 0x343   :  { %2115 = vmatpush.msrb.mxu2 %v7367_v15  ;;  %2135 = vmatpush.msrb.mxu3 %v7368_v26  ;;  %v7391_v34 = vmax.f32 %v5228_v1, 0.0  ;;  %v7392_v36 = vmax.f32 %v5240_v54, 0.0  ;;  %v7393_v37 = vmax.f32 %v5291_v51, 0.0  ;;  %v7394_v50 = vmax.f32 %v5301_v22, 0.0  ;;  %v1730_v51 = vpop.f32.mrf.mxu2 }
 0x344   :  { %2079 = vmatpush.msrb.mxu0 %v7369_v24  ;;  %2099 = vmatpush.msrb.mxu1 %v7370_v17  ;;  %v7395_v25 = vmax.f32 %v5256_v28, 0.0  ;;  %v7396_v21 = vmax.f32 %v5268_v46, 0.0  ;;  %v7397_v60 = vmax.f32 %v5319_v7, 0.0  ;;  %v1711_v1 = vadd.f32 %v1710_v56, %v1691_v33  ;;  %v7420_v24 = vld [vmem:[#allocation192_spill] sm:$0xff] }
 0x345   :  { %2116 = vmatpush.msrb.mxu2 %v7371_v59  ;;  %2136 = vmatpush.msrb.mxu3 %v7372_v53  ;;  %v7398_v52 = vmax.f32 %v5329_v3, 0.0  ;;  %v7399_v54 = vmax.f32 %v5284_v23, 0.0  ;;  %v7400_v22 = vmax.f32 %v5296_v58, 0.0  ;;  %v7401_v28 = vmax.f32 %v5347_v31, 0.0  ;;  %v7408_v58 = vld [vmem:[#allocation225_spill] sm:$0xff]  ;;  %v1750_v31 = vpop.f32.mrf.mxu3  ;;  %v7422_v59 = vld [vmem:[#allocation27_spill] sm:$0xff] }
 0x346   :  { %2080 = vmatpush.msrb.mxu0 %v7373_v47  ;;  %2100 = vmatpush.msrb.mxu1 %v7374_v55  ;;  %v7402_v46 = vmax.f32 %v5357_v20, 0.0  ;;  %v7403_v7 = vmax.f32 %v5312_v19, 0.0  ;;  %v7405_v10 = vmax.f32 %v7404_v14, 0.0  ;;  %v7406_v3 = vmax.f32 %v5375_v4, 0.0  ;;  %v7412_v19 = vld [vmem:[#allocation220_spill] sm:$0xff]  ;;  %v7414_v4 = vld [vmem:[#allocation190_spill] sm:$0xff] }
 0x347   :  { %2117 = vmatpush.msrb.mxu2 %v7375_v57  ;;  %2137 = vmatpush.msrb.mxu3 %v7376_v35  ;;  %v1731_v23 = vadd.f32 %v1730_v51, %v1711_v1  ;;  %v7407_v38 = vmax.f32 %v5385_v42, 0.0  ;;  %v7409_v48 = vmax.f32 %v7408_v58, 0.0  ;;  %v7411_v20 = vmax.f32 %v7410_v43, 0.0  ;;  %v7424_v47 = vld [vmem:[#allocation204_spill] sm:$0xff]  ;;  %v7426_v55 = vld [vmem:[#allocation105_spill] sm:$0xff]  ;;  %v7428_v35 = vld [vmem:[#allocation223_spill] sm:$0xff] }
 0x348   :  { %2081 = vmatpush.msrb.mxu0 %v7377_v0  ;;  %2101 = vmatpush.msrb.mxu1 %v7378_v11  ;;  %v7413_v29 = vmax.f32 %v7412_v19, 0.0  ;;  %v7415_v5 = vmax.f32 %v7414_v4, 0.0  ;;  %v7417_v42 = vmax.f32 %v7416_v9, 0.0  ;;  %v7419_v26 = vmax.f32 %v7418_v39, 0.0 }
 0x349   :  { %2118 = vmatpush.msrb.mxu2 %v7379_v2  ;;  %2138 = vmatpush.msrb.mxu3 %v7380_v44  ;;  %v1751_v15 = vadd.f32 %v1750_v31, %v1731_v23  ;;  %v7421_v17 = vmax.f32 %v7420_v24, 0.0  ;;  %v7423_v53 = vmax.f32 %v7422_v59, 0.0  ;;  %v7425_v32 = vmax.f32 %v7424_v47, 0.0  ;;  %v7430_v2 = vld [vmem:[#allocation210_spill] sm:$0xff] }
 0x34a   :  { %2082 = vmatpush.msrb.mxu0 %v7381_v12  ;;  %2102 = vmatpush.msrb.mxu1 %v7382_v27  ;;  %v7427_v57 = vmax.f32 %v7426_v55, 0.0  ;;  %v7429_v0 = vmax.f32 %v7428_v35, 0.0  ;;  %v7431_v44 = vmax.f32 %v7430_v2, 0.0  ;;  %v7432_v12 = vld [vmem:[#allocation178_spill] sm:$0xff]  ;;  %v7434_v27 = vld [vmem:[#allocation213_spill] sm:$0xff] }
 0x34b   :  { %2119 = vmatpush.msrb.mxu2 %v7383_v18  ;;  %2139 = vmatpush.msrb.mxu3 %v7384_v61  ;;  %v7433_v16 = vmax.f32 %v7432_v12, 0.0  ;;  %v7435_v18 = vmax.f32 %v7434_v27, 0.0  ;;  %v7436_v61 = vld [vmem:[#allocation180_spill] sm:$0xff] }
 0x34c   :  { %2083 = vmatpush.msrb.mxu0 %v7385_v41  ;;  %2103 = vmatpush.msrb.mxu1 %v7386_v40  ;;  %v7437_v41 = vmax.f32 %v7436_v61, 0.0 }
 0x34d   :  { %2120 = vmatpush.msrb.mxu2 %v7387_v30  ;;  %2140 = vmatpush.msrb.mxu3 %v7388_v63  ;;  %v7438_v30 = vld [vmem:[#allocation198_spill] sm:$0xff] }
 0x34e   :  { %2084 = vmatpush.msrb.mxu0 %v7389_v45  ;;  %2104 = vmatpush.msrb.mxu1 %v7390_v49  ;;  %v7439_v63 = vmax.f32 %v7438_v30, 0.0 }
 0x34f   :  { %2121 = vmatpush.msrb.mxu2 %v7391_v34  ;;  %2141 = vmatpush.msrb.mxu3 %v7392_v36 }
 0x350   :  { %2085 = vmatpush.msrb.mxu0 %v7393_v37  ;;  %2105 = vmatpush.msrb.mxu1 %v7394_v50 }
 0x351   :  { %2122 = vmatpush.msrb.mxu2 %v7395_v25  ;;  %2142 = vmatpush.msrb.mxu3 %v7396_v21  ;;  %v1770_v13 = vpop.f32.mrf.mxu0 }
 0x352   :  { %2086 = vmatpush.msrb.mxu0 %v7397_v60  ;;  %2106 = vmatpush.msrb.mxu1 %v7398_v52  ;;  %v1771_v6 = vadd.f32 %v1770_v13, %v1751_v15 }
 0x353   :  { %2123 = vmatpush.msrb.mxu2 %v7399_v54  ;;  %2143 = vmatpush.msrb.mxu3 %v7400_v22  ;;  %v1790_v11 = vpop.f32.mrf.mxu1 }
 0x354   :  { %2087 = vmatpush.msrb.mxu0 %v7401_v28  ;;  %2107 = vmatpush.msrb.mxu1 %v7402_v46  ;;  %v1791_v62 = vadd.f32 %v1790_v11, %v1771_v6 }
 0x355   :  { %2124 = vmatpush.msrb.mxu2 %v7403_v7  ;;  %2144 = vmatpush.msrb.mxu3 %v7405_v10 }
 0x356   :  { %2088 = vmatpush.msrb.mxu0 %v7406_v3  ;;  %2108 = vmatpush.msrb.mxu1 %v7407_v38 }
 0x357   :  { %2125 = vmatpush.msrb.mxu2 %v7409_v48  ;;  %2145 = vmatpush.msrb.mxu3 %v7411_v20 }
 0x358   :  { %2051 = vmatmul.f32.vlgmr.msra.gmra.mxu2 %v5733_v8  ;;  %2071 = vmatmul.f32.vlgmr.msra.gmra.mxu3 %v5733_v8 }
 0x359   :  { %2089 = vmatpush.msrb.mxu0 %v7413_v29  ;;  %2109 = vmatpush.msrb.mxu1 %v7415_v5 }
 0x35a   :  { %2126 = vmatpush.msrb.mxu2 %v7417_v42  ;;  %2146 = vmatpush.msrb.mxu3 %v7419_v26 }
 0x35b   :  { %2090 = vmatpush.msrb.mxu0 %v7421_v17  ;;  %2110 = vmatpush.msrb.mxu1 %v7423_v53 }
 0x35c   :  { %2127 = vmatpush.msrb.mxu2 %v7425_v32  ;;  %2147 = vmatpush.msrb.mxu3 %v7427_v57 }
 0x35d   :  { %2031 = vmatmul.f32.vlgmr.msra.gmra.mxu1 %v5733_v8  ;;  %2011 = vmatmul.f32.vlgmr.msra.gmra.mxu0 %v5733_v8 }
 0x35e   :  { %2128 = vmatpush.msrb.mxu2 %v7429_v0  ;;  %2148 = vmatpush.msrb.mxu3 %v7431_v44 }
 0x360   :  { %2129 = vmatpush.msrb.mxu2 %v7433_v16  ;;  %2149 = vmatpush.msrb.mxu3 %v7435_v18 }
 0x361   :  { %v1810_v40 = vpop.f32.mrf.mxu2 }
 0x362   :  { %2130 = vmatpush.msrb.mxu2 %v7437_v41  ;;  %2150 = vmatpush.msrb.mxu3 %v7439_v63  ;;  %v1811_v45 = vadd.f32 %v1810_v40, %v1791_v62  ;;  %v1830_v33 = vpop.f32.mrf.mxu3 }
 0x363   :  { %2131 = vmatmul.f32.vlgmr.msrb.gmra.mxu2 %v5733_v8  ;;  %2151 = vmatmul.f32.vlgmr.msrb.gmra.mxu3 %v5733_v8 }
 0x364   :  { %v1831_v49 = vadd.f32 %v1830_v33, %v1811_v45 }
 0x365   :  { %2111 = vmatmul.f32.vlgmr.msrb.gmra.mxu1 %v5733_v8  ;;  %2091 = vmatmul.f32.vlgmr.msrb.gmra.mxu0 %v5733_v8 }
 0x366   :  { %1833 = vst [vmem:[#allocation2] sm:$0xff] %v1831_v49 }
 0x367   :  { %2220 = dma.vmem_to_hbm [thread:$0]  %s2216_s8, 128, %s2218_s30, [#allocation3]  }
 0x396   :  { %v1852_v56 = vpop.f32.mrf.mxu0  ;;  %v1872_v37 = vpop.f32.mrf.mxu1 }
 0x397   :  { %v2171_v50 = vrot.slane %v1872_v37, 7 }
 0x398   :  { %v1912_v36 = vpop.f32.mrf.mxu3 }
 0x399   :  { %v1892_v34 = vpop.f32.mrf.mxu2  ;;  %v2173_v21 = vrot.slane %v1912_v36, 5  ;;  %v2186_v7 = vsel %vm2185_vm2, %v1852_v56, %v2171_v50 }
 0x39a   :  { %v2172_v25 = vrot.slane %v1892_v34, 6 }
 0x39c   :  { %v2188_v28 = vsel %vm2187_vm1, %v2172_v25, %v2173_v21 }
 0x39d   :  { %v2190_v23 = vsel %vm2189_vm6, %v2186_v7, %v2188_v28 }
 0x3a3   :  { %v1972_v8 = vpop.f32.mrf.mxu2  ;;  %v1992_v52 = vpop.f32.mrf.mxu3 }
 0x3a4   :  { %v1932_v60 = vpop.f32.mrf.mxu0  ;;  %v2176_v1 = vrot.slane %v1972_v8, 2  ;;  %v1952_v51 = vpop.f32.mrf.mxu1  ;;  %v2177_v22 = vrot.slane %v1992_v52, 1 }
 0x3a5   :  { %v2174_v54 = vrot.slane %v1932_v60, 4  ;;  %v2175_v46 = vrot.slane %v1952_v51, 3 }
 0x3a6   :  { %v2194_v14 = vsel %vm2193_vm3, %v2176_v1, %v2177_v22 }
 0x3a7   :  { %v2192_v10 = vsel %vm2191_vm4, %v2174_v54, %v2175_v46 }
 0x3a8   :  { %v2196_v3 = vsel %vm2195_vm5, %v2192_v10, %v2194_v14 }
 0x3a9   :  { %v2198_v38 = vsel %vm2197_vm7, %v2190_v23, %v2196_v3 }
 0x3aa   :  { %2208 = vst [vmem:[#allocation4] sm:$0xff] %v2198_v38 }
 0x3da   :  { %v2032_v58 = vpop.f32.mrf.mxu1  ;;  %v2012_v48 = vpop.f32.mrf.mxu0 }
 0x3db   :  { %v2052_v31 = vpop.f32.mrf.mxu2  ;;  %v2072_v43 = vpop.f32.mrf.mxu3  ;;  %v2178_v19 = vrot.slane %v2032_v58, 7 }
 0x3dc   :  { %v2179_v4 = vrot.slane %v2052_v31, 6  ;;  %v2180_v5 = vrot.slane %v2072_v43, 5 }
 0x3dd   :  { %v2199_v24 = vsel %vm2185_vm2, %v2012_v48, %v2178_v19 }
 0x3de   :  { %v2200_v26 = vsel %vm2187_vm1, %v2179_v4, %v2180_v5 }
 0x3df   :  { %v2201_v47 = vsel %vm2189_vm6, %v2199_v24, %v2200_v26 }
 0x3e2   :  { %v2112_v20 = vpop.f32.mrf.mxu1  ;;  %v2092_v29 = vpop.f32.mrf.mxu0 }
 0x3e3   :  { %v2181_v9 = vrot.slane %v2092_v29, 4  ;;  %v2182_v42 = vrot.slane %v2112_v20, 3 }
 0x3e5   :  { %v2202_v17 = vsel %vm2191_vm4, %v2181_v9, %v2182_v42 }
 0x3e6   :  { %v2132_v13 = vpop.f32.mrf.mxu2  ;;  %v2152_v39 = vpop.f32.mrf.mxu3 }
 0x3e7   :  { %v2183_v15 = vrot.slane %v2132_v13, 2  ;;  %v2184_v59 = vrot.slane %v2152_v39, 1 }
 0x3e9   :  { %v2203_v53 = vsel %vm2193_vm3, %v2183_v15, %v2184_v59 }
 0x3ea   :  { %v2204_v32 = vsel %vm2195_vm5, %v2202_v17, %v2203_v53 }
 0x3eb   :  { %v2205_v55 = vsel %vm2197_vm7, %v2201_v47, %v2204_v32 }
 0x3ec   :  { %2209 = vst [vmem:[#allocation4 + $0x8] sm:$0xff] %v2205_v55 }
 0x3ed   :  { %2231 = dma.vmem_to_hbm [thread:$0]  %s2227_s9, 256, %s2229_s11, [#allocation5]  }
 0x3ee   :  { %2568 = dma.done.wait [#allocation3], 128  }
 0x3ef   :  { %2569 = vsyncadd [#allocation3], 4294967168 }
 0x3f0   :  { %2570 = dma.done.wait [#allocation5], 256  }
 0x3f1   :  { %2571 = vsyncadd [#allocation5], 4294967040 }
 0x3f2   :  { %2240 = vsyncpa [#allocation3], 1 }
 0x3f3   :  { %2241 = vsyncpa [#allocation5], 1 }

</bundles_post_ra>
